<compile_context>
chip_gen: v5e
topology: v5e:2x2
jax: 0.10.0
libtpu: 0.0.40
codegen_flags: <defaults>
</compile_context>

<pallas_src>
import jax
import jax.numpy as jnp
from jax.experimental import pallas as pl
from jax.experimental.pallas import tpu as pltpu


# ---------------------------------------------------------------------------
# Fused Bottleneck3D Pallas kernel
# ---------------------------------------------------------------------------

def _bottleneck_kernel(x_ref, w1_ref, b1_ref, w2_ref, b2_ref, w3d_ref,
                       b3d_ref, o_ref, pad_ref):
    """One grid step processes B (n,t) slices, flattened to rows = B*H*W.

    x_ref   : (rows, Cin)          bf16 input activations
    w1_ref  : (Cin, Cmid)          bf16, bn1 scale folded in
    w2_ref  : (9*Cmid, Cmid)       bf16, (dy,dx,ci)-major, bn2 scale folded in
    w3d_ref : (Cmid+Cin, Cout)     bf16, stacked [w3 ; wd], bn3/bnD folded in
    b*_ref  : (1, C)               f32 folded-BN biases (b3d = b3 + bd)
    o_ref   : (rows, Cout)         bf16 output block
    pad_ref : (B, H+2, W+2, Cmid)  f32 VMEM scratch (zero-padded out1)
    """
    B, Hp2, Wp2, Cmid = pad_ref.shape
    H, W = Hp2 - 2, Wp2 - 2
    rows = x_ref.shape[0]

    x = x_ref[...]                                        # (rows, Cin) bf16

    # --- conv1 (1x1x1) + folded bn1 + relu ---------------------------------
    h1 = jnp.dot(x, w1_ref[...], preferred_element_type=jnp.float32)
    h1 = jnp.maximum(h1 + b1_ref[...], 0.0)               # (rows, Cmid) f32

    # --- stage zero-padded out1 in VMEM for the (1,3,3) conv ---------------
    # NOTE: zero-once under pl.when(program_id(0)==0) is unsafe with a
    # megacore-sharded "parallel" axis (per-core private scratch), so the
    # cheap per-step fill is kept.
    pad_ref[...] = jnp.zeros_like(pad_ref)
    pad_ref[:, 1:H + 1, 1:W + 1, :] = h1.reshape(B, H, W, Cmid)

    # --- conv2 (1,3,3), pad=1, stride=1: ONE im2col matmul (K = 9*Cmid) ----
    taps = [pad_ref[:, dy:dy + H, dx:dx + W, :].reshape(rows, Cmid)
            for dy in range(3) for dx in range(3)]
    im2col = jnp.concatenate(taps, axis=-1).astype(jnp.bfloat16)
    h2 = jnp.dot(im2col, w2_ref[...], preferred_element_type=jnp.float32)
    h2 = jnp.maximum(h2 + b2_ref[...], 0.0)               # (rows, Cmid) f32

    # --- conv3+bn3 fused with downsample conv+bn: [h2 | x] @ [w3 ; wd] -----
    lhs = jnp.concatenate([h2.astype(jnp.bfloat16), x], axis=-1)
    out = jnp.dot(lhs, w3d_ref[...], preferred_element_type=jnp.float32)

    # --- residual add (inside the fused bias) + final relu -----------------
    o_ref[...] = jnp.maximum(out + b3d_ref[...], 0.0).astype(o_ref.dtype)


# ---------------------------------------------------------------------------
# Per-chip block sizing
# ---------------------------------------------------------------------------

def _vmem_budget_bytes():
    """~75% of the local chip's VMEM (fallback: v7x-safe 64 MiB physical)."""
    cap = 64 * 1024 * 1024
    try:
        cap = int(pltpu.get_tpu_info().vmem_capacity_bytes)
    except Exception:
        pass
    return (cap * 3) // 4


def _bytes_per_row(Cin, Cmid, Cout, H, W):
    """Rough per-row VMEM footprint of one grid step (over-estimate)."""
    halo = float((H + 2) * (W + 2)) / float(H * W)
    b = 0.0
    b += 2 * (Cin * 2)                 # x block (bf16, double-buffered)
    b += 2 * (Cout * 2)                # out block (bf16, double-buffered)
    b += halo * Cmid * 4               # padded-out1 scratch (f32)
    b += 9 * Cmid * (4 + 2)            # im2col taps (f32) + cast (bf16)
    b += 2 * Cmid * 4                  # h1 / h2 f32 live values
    b += (Cmid + Cin) * 2              # fused conv3/downsample LHS (bf16)
    b += Cout * 4                      # f32 pre-ReLU value
    return int(b) + 1


def _pick_block_nt(NT, H, W, bytes_per_row, vmem_budget):
    """Largest divisor of NT whose block fits the VMEM budget; prefer an even
    grid (>=2 steps) so v7x can shard the 'parallel' axis across its 2 TCs."""
    max_rows = max(H * W, int(vmem_budget * 0.6) // max(bytes_per_row, 1))
    divisors = [b for b in range(1, NT + 1)
                if NT % b == 0 and b * H * W <= max_rows]
    if not divisors:
        return 1
    best = max(divisors)
    even = [b for b in divisors if (NT // b) % 2 == 0]
    if even and 2 * max(even) >= best:
        return max(even)
    return best


# ---------------------------------------------------------------------------
# Bottleneck3D forward (thin JAX wrapper around the fused kernel)
# ---------------------------------------------------------------------------

def bottleneck3d_forward(x_ncthw, params):
    N, Cin, T, H, W = x_ncthw.shape
    Cmid = params['w1'].shape[1]
    Cout = params['w3'].shape[1]
    NT = N * T

    budget = _vmem_budget_bytes()
    B = _pick_block_nt(NT, H, W, _bytes_per_row(Cin, Cmid, Cout, H, W), budget)
    rows = B * H * W
    grid = NT // B

    # Fold BN scale into the conv weights; bf16 weights for the MXU.
    w1 = (params['w1'] * params['s1'][None, :]).astype(jnp.bfloat16)
    w2 = (params['w2'] * params['s2'][None, None, None, :]
          ).reshape(9 * Cmid, Cmid).astype(jnp.bfloat16)
    w3 = params['w3'] * params['s3'][None, :]
    wd = params['wd'] * params['sd'][None, :]
    w3d = jnp.concatenate([w3, wd], axis=0).astype(jnp.bfloat16)  # (Cmid+Cin, Cout)
    b1 = params['b1'].reshape(1, Cmid).astype(jnp.float32)
    b2 = params['b2'].reshape(1, Cmid).astype(jnp.float32)
    b3d = (params['b3'] + params['bd']).reshape(1, Cout).astype(jnp.float32)

    # NCTHW -> NTHWC (channels-last).  Cast to bf16 BEFORE transposing so the
    # transpose moves half the bytes.
    # TODO(synk): keep the surrounding model channels-last to drop these
    # boundary transposes entirely.
    x = jnp.transpose(x_ncthw.astype(jnp.bfloat16), (0, 2, 3, 4, 1))
    x2d = x.reshape(NT * H * W, Cin)

    # TODO(synk): weight/bias inputs never change across the grid; for real
    # channel counts they should be single-buffered (saves VMEM on v7x).
    out2d = pl.pallas_call(
        _bottleneck_kernel,
        out_shape=jax.ShapeDtypeStruct((NT * H * W, Cout), jnp.bfloat16),
        grid=(grid,),
        in_specs=[
            pl.BlockSpec((rows, Cin), lambda i: (i, 0)),          # x block
            pl.BlockSpec((Cin, Cmid), lambda i: (0, 0)),          # w1
            pl.BlockSpec((1, Cmid), lambda i: (0, 0)),            # b1
            pl.BlockSpec((9 * Cmid, Cmid), lambda i: (0, 0)),     # w2 (im2col)
            pl.BlockSpec((1, Cmid), lambda i: (0, 0)),            # b2
            pl.BlockSpec((Cmid + Cin, Cout), lambda i: (0, 0)),   # [w3 ; wd]
            pl.BlockSpec((1, Cout), lambda i: (0, 0)),            # b3 + bd
        ],
        out_specs=pl.BlockSpec((rows, Cout), lambda i: (i, 0)),
        scratch_shapes=[
            pltpu.VMEM((B, H + 2, W + 2, Cmid), jnp.float32),     # padded out1
        ],
        compiler_params=pltpu.CompilerParams(
            dimension_semantics=("parallel",),
            vmem_limit_bytes=int(budget),
        ),
    )(x2d, w1, b1, w2, b2, w3d, b3d)

    out = out2d.reshape(N, T, H, W, Cout)
    return jnp.transpose(out, (0, 4, 1, 2, 3))  # back to NCTHW (bf16)


# ---------------------------------------------------------------------------
# Deterministic parameter construction (eval-mode BN folded to scale/bias)
# ---------------------------------------------------------------------------

def _fold_bn(gamma, beta, mean, var, eps=1e-5):
    scale = gamma / jnp.sqrt(var + eps)
    bias = beta - mean * scale
    return scale, bias


def make_params(key, c_in, planes, expansion=4):
    c_out = planes * expansion
    ks = jax.random.split(key, 8)

    def bn_params(k, c):
        k1, k2, k3, k4 = jax.random.split(k, 4)
        gamma = 1.0 + 0.1 * jax.random.normal(k1, (c,), jnp.float32)
        beta = 0.1 * jax.random.normal(k2, (c,), jnp.float32)
        mean = 0.1 * jax.random.normal(k3, (c,), jnp.float32)
        var = 0.5 + jax.random.uniform(k4, (c,), jnp.float32)
        return _fold_bn(gamma, beta, mean, var)

    w1 = 0.1 * jax.random.normal(ks[0], (c_in, planes), jnp.float32)
    w2 = 0.1 * jax.random.normal(ks[1], (3, 3, planes, planes), jnp.float32)
    w3 = 0.1 * jax.random.normal(ks[2], (planes, c_out), jnp.float32)
    wd = 0.1 * jax.random.normal(ks[3], (c_in, c_out), jnp.float32)

    s1, b1 = bn_params(ks[4], planes)
    s2, b2 = bn_params(ks[5], planes)
    s3, b3 = bn_params(ks[6], c_out)
    sd, bd = bn_params(ks[7], c_out)

    return dict(w1=w1, s1=s1, b1=b1, w2=w2, s2=s2, b2=b2,
                w3=w3, s3=s3, b3=b3, wd=wd, sd=sd, bd=bd)


# ---------------------------------------------------------------------------
# Pure-JAX f32 reference for correctness check
# ---------------------------------------------------------------------------

def ref_forward(x_ncthw, p):
    x = jnp.transpose(x_ncthw, (0, 2, 3, 4, 1)).astype(jnp.float32)
    N, T, H, W, C = x.shape

    o = jnp.einsum('nthwc,cd->nthwd', x, p['w1']) * p['s1'] + p['b1']
    o = jnp.maximum(o, 0.0)

    o4 = jax.lax.conv_general_dilated(
        o.reshape(N * T, H, W, -1), p['w2'], (1, 1), 'SAME',
        dimension_numbers=('NHWC', 'HWIO', 'NHWC'))
    o = o4.reshape(N, T, H, W, -1) * p['s2'] + p['b2']
    o = jnp.maximum(o, 0.0)

    o = jnp.einsum('nthwc,cd->nthwd', o, p['w3']) * p['s3'] + p['b3']

    r = jnp.einsum('nthwc,cd->nthwd', x, p['wd']) * p['sd'] + p['bd']
    out = jnp.maximum(o + r, 0.0)
    return jnp.transpose(out, (0, 4, 1, 2, 3))


# ---------------------------------------------------------------------------
# TODO(synk): the `inflate_time=True` path (temporal attention `block` with
# temperature / contrastive_att) is external to this module and is not
# reproduced; conv2 follows the default inflate_conv(time_dim=1) branch.
# ---------------------------------------------------------------------------

if __name__ == "__main__":
    key = jax.random.PRNGKey(0)
    k_x, k_p = jax.random.split(key)

    # NCTHW, like the PyTorch module.  Channels picked so Cout = 128 is
    # lane-dense for the output stores.
    N, C_IN, T, H, W = 2, 64, 4, 8, 8
    PLANES, EXPANSION = 32, 4                # Cmid = 32, Cout = 128

    x = jax.random.normal(k_x, (N, C_IN, T, H, W), jnp.float32)
    params = make_params(k_p, C_IN, PLANES, EXPANSION)

    fwd = jax.jit(bottleneck3d_forward)
    out = jax.block_until_ready(fwd(x, params))

    ref = ref_forward(x, params)
    assert out.shape == (N, PLANES * EXPANSION, T, H, W), out.shape

    # bf16 MXU inputs + bf16 output -> relaxed tolerance vs. the f32 reference.
    err = float(jnp.max(jnp.abs(out.astype(jnp.float32) - ref)))
    scale = float(jnp.max(jnp.abs(ref))) + 1e-6
    assert err <= 4e-2 * scale + 2e-2, (err, scale)

    print("KERNEL_OK")
</pallas_src>

<mosaic_0001>
module attributes {stable_mosaic.version = 11 : i64} {
  func.func @_bottleneck_kernel(%arg0: i32, %arg1: memref<256x64xbf16, #tpu.memory_space<vmem>>, %arg2: memref<64x32xbf16, #tpu.memory_space<vmem>>, %arg3: memref<1x32xf32, #tpu.memory_space<vmem>>, %arg4: memref<288x32xbf16, #tpu.memory_space<vmem>>, %arg5: memref<1x32xf32, #tpu.memory_space<vmem>>, %arg6: memref<96x128xbf16, #tpu.memory_space<vmem>>, %arg7: memref<1x128xf32, #tpu.memory_space<vmem>>, %arg8: memref<256x128xbf16, #tpu.memory_space<vmem>>, %arg9: memref<4x10x10x32xf32, #tpu.memory_space<vmem>>) attributes {dimension_semantics = [#tpu.dimension_semantics<parallel>], iteration_bounds = array<i64: 2>, scalar_prefetch = 0 : i64, scratch_operands = 1 : i64, tpu.core_type = #tpu.core_type<tc>, window_params = [{transform_indices = @transform_0, window_bounds = array<i64: 256, 64>}, {pipeline_mode = #tpu.pipeline_mode<synchronous>, transform_indices = @transform_1, window_bounds = array<i64: 64, 32>}, {pipeline_mode = #tpu.pipeline_mode<synchronous>, transform_indices = @transform_2, window_bounds = array<i64: 1, 32>}, {pipeline_mode = #tpu.pipeline_mode<synchronous>, transform_indices = @transform_3, window_bounds = array<i64: 288, 32>}, {pipeline_mode = #tpu.pipeline_mode<synchronous>, transform_indices = @transform_4, window_bounds = array<i64: 1, 32>}, {pipeline_mode = #tpu.pipeline_mode<synchronous>, transform_indices = @transform_5, window_bounds = array<i64: 96, 128>}, {pipeline_mode = #tpu.pipeline_mode<synchronous>, transform_indices = @transform_6, window_bounds = array<i64: 1, 128>}, {transform_indices = @transform_7, window_bounds = array<i64: 256, 128>}]} {
    %c0 = arith.constant 0 : index
    %c0_0 = arith.constant 0 : index
    %0 = vector.load %arg1[%c0, %c0_0] : memref<256x64xbf16, #tpu.memory_space<vmem>>, vector<256x64xbf16>
    %c0_1 = arith.constant 0 : index
    %c0_2 = arith.constant 0 : index
    %1 = vector.load %arg2[%c0_1, %c0_2] : memref<64x32xbf16, #tpu.memory_space<vmem>>, vector<64x32xbf16>
    %cst = arith.constant dense<0.000000e+00> : vector<256x32xf32>
    %2 = tpu.matmul %0, %1, %cst {dimension_numbers = #tpu.dot_dimension_numbers<[1], [0], [0], [1], [0, 0, 1, 1], [], []>} : vector<256x64xbf16>, vector<64x32xbf16>, vector<256x32xf32> -> vector<256x32xf32>
    %c0_3 = arith.constant 0 : index
    %c0_4 = arith.constant 0 : index
    %3 = vector.load %arg3[%c0_3, %c0_4] : memref<1x32xf32, #tpu.memory_space<vmem>>, vector<1x32xf32>
    %4 = vector.broadcast %3 : vector<1x32xf32> to vector<256x32xf32>
    %5 = arith.addf %2, %4 : vector<256x32xf32>
    %cst_5 = arith.constant 0.000000e+00 : f32
    %6 = vector.broadcast %cst_5 : f32 to vector<256x32xf32>
    %7 = arith.maximumf %5, %6 : vector<256x32xf32>
    %cst_6 = arith.constant 0.000000e+00 : f32
    %8 = vector.broadcast %cst_6 : f32 to vector<4x10x10x32xf32>
    %c0_7 = arith.constant 0 : index
    %c0_8 = arith.constant 0 : index
    %c0_9 = arith.constant 0 : index
    %c0_10 = arith.constant 0 : index
    %9 = vector.load %arg9[%c0_7, %c0_8, %c0_9, %c0_10] : memref<4x10x10x32xf32, #tpu.memory_space<vmem>>, vector<4x10x10x32xf32>
    tpu.vector_store %arg9[%c0_7, %c0_8, %c0_9, %c0_10], %8 {strides = array<i32>} : memref<4x10x10x32xf32, #tpu.memory_space<vmem>>, vector<4x10x10x32xf32>,
    %10 = vector.shape_cast %7 : vector<256x32xf32> to vector<4x8x8x32xf32>
    %c0_11 = arith.constant 0 : index
    %c1 = arith.constant 1 : index
    %c1_12 = arith.constant 1 : index
    %c0_13 = arith.constant 0 : index
    %11 = vector.load %arg9[%c0_11, %c1, %c1_12, %c0_13] : memref<4x10x10x32xf32, #tpu.memory_space<vmem>>, vector<4x8x8x32xf32>
    tpu.vector_store %arg9[%c0_11, %c1, %c1_12, %c0_13], %10 {strides = array<i32>} : memref<4x10x10x32xf32, #tpu.memory_space<vmem>>, vector<4x8x8x32xf32>,
    %c0_14 = arith.constant 0 : index
    %c0_15 = arith.constant 0 : index
    %c0_16 = arith.constant 0 : index
    %c0_17 = arith.constant 0 : index
    %12 = vector.load %arg9[%c0_14, %c0_15, %c0_16, %c0_17] : memref<4x10x10x32xf32, #tpu.memory_space<vmem>>, vector<4x8x8x32xf32>
    %13 = vector.shape_cast %12 : vector<4x8x8x32xf32> to vector<256x32xf32>
    %c0_18 = arith.constant 0 : index
    %c0_19 = arith.constant 0 : index
    %c1_20 = arith.constant 1 : index
    %c0_21 = arith.constant 0 : index
    %14 = vector.load %arg9[%c0_18, %c0_19, %c1_20, %c0_21] : memref<4x10x10x32xf32, #tpu.memory_space<vmem>>, vector<4x8x8x32xf32>
    %15 = vector.shape_cast %14 : vector<4x8x8x32xf32> to vector<256x32xf32>
    %c0_22 = arith.constant 0 : index
    %c0_23 = arith.constant 0 : index
    %c2 = arith.constant 2 : index
    %c0_24 = arith.constant 0 : index
    %16 = vector.load %arg9[%c0_22, %c0_23, %c2, %c0_24] : memref<4x10x10x32xf32, #tpu.memory_space<vmem>>, vector<4x8x8x32xf32>
    %17 = vector.shape_cast %16 : vector<4x8x8x32xf32> to vector<256x32xf32>
    %c0_25 = arith.constant 0 : index
    %c1_26 = arith.constant 1 : index
    %c0_27 = arith.constant 0 : index
    %c0_28 = arith.constant 0 : index
    %18 = vector.load %arg9[%c0_25, %c1_26, %c0_27, %c0_28] : memref<4x10x10x32xf32, #tpu.memory_space<vmem>>, vector<4x8x8x32xf32>
    %19 = vector.shape_cast %18 : vector<4x8x8x32xf32> to vector<256x32xf32>
    %c0_29 = arith.constant 0 : index
    %c1_30 = arith.constant 1 : index
    %c1_31 = arith.constant 1 : index
    %c0_32 = arith.constant 0 : index
    %20 = vector.load %arg9[%c0_29, %c1_30, %c1_31, %c0_32] : memref<4x10x10x32xf32, #tpu.memory_space<vmem>>, vector<4x8x8x32xf32>
    %21 = vector.shape_cast %20 : vector<4x8x8x32xf32> to vector<256x32xf32>
    %c0_33 = arith.constant 0 : index
    %c1_34 = arith.constant 1 : index
    %c2_35 = arith.constant 2 : index
    %c0_36 = arith.constant 0 : index
    %22 = vector.load %arg9[%c0_33, %c1_34, %c2_35, %c0_36] : memref<4x10x10x32xf32, #tpu.memory_space<vmem>>, vector<4x8x8x32xf32>
    %23 = vector.shape_cast %22 : vector<4x8x8x32xf32> to vector<256x32xf32>
    %c0_37 = arith.constant 0 : index
    %c2_38 = arith.constant 2 : index
    %c0_39 = arith.constant 0 : index
    %c0_40 = arith.constant 0 : index
    %24 = vector.load %arg9[%c0_37, %c2_38, %c0_39, %c0_40] : memref<4x10x10x32xf32, #tpu.memory_space<vmem>>, vector<4x8x8x32xf32>
    %25 = vector.shape_cast %24 : vector<4x8x8x32xf32> to vector<256x32xf32>
    %c0_41 = arith.constant 0 : index
    %c2_42 = arith.constant 2 : index
    %c1_43 = arith.constant 1 : index
    %c0_44 = arith.constant 0 : index
    %26 = vector.load %arg9[%c0_41, %c2_42, %c1_43, %c0_44] : memref<4x10x10x32xf32, #tpu.memory_space<vmem>>, vector<4x8x8x32xf32>
    %27 = vector.shape_cast %26 : vector<4x8x8x32xf32> to vector<256x32xf32>
    %c0_45 = arith.constant 0 : index
    %c2_46 = arith.constant 2 : index
    %c2_47 = arith.constant 2 : index
    %c0_48 = arith.constant 0 : index
    %28 = vector.load %arg9[%c0_45, %c2_46, %c2_47, %c0_48] : memref<4x10x10x32xf32, #tpu.memory_space<vmem>>, vector<4x8x8x32xf32>
    %29 = vector.shape_cast %28 : vector<4x8x8x32xf32> to vector<256x32xf32>
    %30 = tpu.concatenate %13, %15, %17, %19, %21, %23, %25, %27, %29 in 1 : vector<256x32xf32>, vector<256x32xf32>, vector<256x32xf32>, vector<256x32xf32>, vector<256x32xf32>, vector<256x32xf32>, vector<256x32xf32>, vector<256x32xf32>, vector<256x32xf32> -> vector<256x288xf32>
    %31 = arith.truncf %30 : vector<256x288xf32> to vector<256x288xbf16>
    %c0_49 = arith.constant 0 : index
    %c0_50 = arith.constant 0 : index
    %32 = vector.load %arg4[%c0_49, %c0_50] : memref<288x32xbf16, #tpu.memory_space<vmem>>, vector<288x32xbf16>
    %cst_51 = arith.constant dense<0.000000e+00> : vector<256x32xf32>
    %33 = tpu.matmul %31, %32, %cst_51 {dimension_numbers = #tpu.dot_dimension_numbers<[1], [0], [0], [1], [0, 0, 1, 1], [], []>} : vector<256x288xbf16>, vector<288x32xbf16>, vector<256x32xf32> -> vector<256x32xf32>
    %c0_52 = arith.constant 0 : index
    %c0_53 = arith.constant 0 : index
    %34 = vector.load %arg5[%c0_52, %c0_53] : memref<1x32xf32, #tpu.memory_space<vmem>>, vector<1x32xf32>
    %35 = vector.broadcast %34 : vector<1x32xf32> to vector<256x32xf32>
    %36 = arith.addf %33, %35 : vector<256x32xf32>
    %cst_54 = arith.constant 0.000000e+00 : f32
    %37 = vector.broadcast %cst_54 : f32 to vector<256x32xf32>
    %38 = arith.maximumf %36, %37 : vector<256x32xf32>
    %39 = arith.truncf %38 : vector<256x32xf32> to vector<256x32xbf16>
    %40 = tpu.concatenate %39, %0 in 1 : vector<256x32xbf16>, vector<256x64xbf16> -> vector<256x96xbf16>
    %c0_55 = arith.constant 0 : index
    %c0_56 = arith.constant 0 : index
    %41 = vector.load %arg6[%c0_55, %c0_56] : memref<96x128xbf16, #tpu.memory_space<vmem>>, vector<96x128xbf16>
    %cst_57 = arith.constant dense<0.000000e+00> : vector<256x128xf32>
    %42 = tpu.matmul %40, %41, %cst_57 {dimension_numbers = #tpu.dot_dimension_numbers<[1], [0], [0], [1], [0, 0, 1, 1], [], []>} : vector<256x96xbf16>, vector<96x128xbf16>, vector<256x128xf32> -> vector<256x128xf32>
    %c0_58 = arith.constant 0 : index
    %c0_59 = arith.constant 0 : index
    %43 = vector.load %arg7[%c0_58, %c0_59] : memref<1x128xf32, #tpu.memory_space<vmem>>, vector<1x128xf32>
    %44 = vector.broadcast %43 : vector<1x128xf32> to vector<256x128xf32>
    %45 = arith.addf %42, %44 : vector<256x128xf32>
    %cst_60 = arith.constant 0.000000e+00 : f32
    %46 = vector.broadcast %cst_60 : f32 to vector<256x128xf32>
    %47 = arith.maximumf %45, %46 : vector<256x128xf32>
    %48 = arith.truncf %47 : vector<256x128xf32> to vector<256x128xbf16>
    %c0_61 = arith.constant 0 : index
    %c0_62 = arith.constant 0 : index
    %49 = vector.load %arg8[%c0_61, %c0_62] : memref<256x128xbf16, #tpu.memory_space<vmem>>, vector<256x128xbf16>
    tpu.vector_store %arg8[%c0_61, %c0_62], %48 {strides = array<i32>} : memref<256x128xbf16, #tpu.memory_space<vmem>>, vector<256x128xbf16>,
    return
  }
  func.func @transform_0(%arg0: i32) -> (i32, i32) {
    %c0_i32 = arith.constant 0 : i32
    %c0_i32_0 = arith.constant 0 : i32
    return %arg0, %c0_i32 : i32, i32
  }
  func.func @transform_1(%arg0: i32) -> (i32, i32) {
    %c0_i32 = arith.constant 0 : i32
    %c0_i32_0 = arith.constant 0 : i32
    %c0_i32_1 = arith.constant 0 : i32
    return %c0_i32, %c0_i32_0 : i32, i32
  }
  func.func @transform_2(%arg0: i32) -> (i32, i32) {
    %c0_i32 = arith.constant 0 : i32
    %c0_i32_0 = arith.constant 0 : i32
    %c0_i32_1 = arith.constant 0 : i32
    return %c0_i32, %c0_i32_0 : i32, i32
  }
  func.func @transform_3(%arg0: i32) -> (i32, i32) {
    %c0_i32 = arith.constant 0 : i32
    %c0_i32_0 = arith.constant 0 : i32
    %c0_i32_1 = arith.constant 0 : i32
    return %c0_i32, %c0_i32_0 : i32, i32
  }
  func.func @transform_4(%arg0: i32) -> (i32, i32) {
    %c0_i32 = arith.constant 0 : i32
    %c0_i32_0 = arith.constant 0 : i32
    %c0_i32_1 = arith.constant 0 : i32
    return %c0_i32, %c0_i32_0 : i32, i32
  }
  func.func @transform_5(%arg0: i32) -> (i32, i32) {
    %c0_i32 = arith.constant 0 : i32
    %c0_i32_0 = arith.constant 0 : i32
    %c0_i32_1 = arith.constant 0 : i32
    return %c0_i32, %c0_i32_0 : i32, i32
  }
  func.func @transform_6(%arg0: i32) -> (i32, i32) {
    %c0_i32 = arith.constant 0 : i32
    %c0_i32_0 = arith.constant 0 : i32
    %c0_i32_1 = arith.constant 0 : i32
    return %c0_i32, %c0_i32_0 : i32, i32
  }
  func.func @transform_7(%arg0: i32) -> (i32, i32) {
    %c0_i32 = arith.constant 0 : i32
    %c0_i32_0 = arith.constant 0 : i32
    return %arg0, %c0_i32 : i32, i32
  }
}

</mosaic_0001>

<bundles_post_ra>
// kernel: bottleneck3d_forward.1
= control target key start
LH: loop header
LB: loop body
LE: loop exit
PB: predicated region body
PF: predicated region fallthrough
CT: control target
= control target key end

     0   :  { %12 = vsyncpa [#allocation4], 0  ;;  %s5748_s0 = inlined_call_operand.vmem [shape: bf16[512,64], index: 0, kind: input, shape index: {}]   ;;  %s5749_s1 = inlined_call_operand.vmem [shape: bf16[64,32], index: 1, kind: input, shape index: {}]   ;;  %s5750_s2 = inlined_call_operand.vmem [shape: f32[1,32], index: 2, kind: input, shape index: {}]   ;;  %s5751_s3 = inlined_call_operand.vmem [shape: bf16[288,32], index: 3, kind: input, shape index: {}]   ;;  %s5752_s4 = inlined_call_operand.vmem [shape: f32[1,32], index: 4, kind: input, shape index: {}]   ;;  %s5753_s5 = inlined_call_operand.vmem [shape: bf16[96,128], index: 5, kind: input, shape index: {}]   ;;  %s5754_s6 = inlined_call_operand.vmem [shape: f32[1,128], index: 6, kind: input, shape index: {}]   ;;  %s5755_s7 = inlined_call_operand.hbm [shape: bf16[512,128], index: 7, kind: output, shape index: {}]  }
   0x1   :  { %14 = vsyncpa [#allocation4 + $0x1], 0  ;;  %s4088_s24 = smov 0   ;;  %s4090_s25 = smov 0  }
   0x2   :  { %s4092_s26 = smov 0   ;;  %s4094_s27 = smov 0  }
   0x3 LB: > { %s4109_s28 = sadd.s32 4294967295, %s4041_s27   ;;  %s3046_s29 = sadd.s32 4294967294, %s4041_s27   ;;  %s4041_s27 = sphi %s4094_s27, %s5773_s27   ;;  %s4037_s26 = sphi %s4092_s26, %s5772_s26   ;;  %s4033_s25 = sphi %s4090_s25, %s5771_s25   ;;  %s4029_s24 = sphi %s4088_s24, %s5770_s24  }
   0x4   : > { %s4113_s30 = sadd.s32 1, %s4041_s27   ;;  %s179_s8 = sadd.s32 1, %s4037_s26 }
   0x5   : > { %s176_s9 = ssub.s32 %s4041_s27, %s4113_s30  ;;  %p189_p0 = scmp.ne.s32.totalorder %s4037_s26, %s4033_s25 }
   0x6   : > { %p177_p1 = scmp.eq.s32.totalorder %s176_s9, 0  ;;  %p190_p2 = scmp.eq.s32.totalorder %s4109_s28, 1 }
   0x7   : > { %p195_p3 = scmp.ne.s32.totalorder %s4033_s25, %s4029_s24  ;;  %p196_p4 = scmp.eq.s32.totalorder %s3046_s29, 1 }
   0x8   : > { %s4124_s10 = scalar_select %p177_p1, %s4037_s26, %s179_s8  }
   0x9   : > { %p4126_p5 = por %p190_p2, %p189_p0  ;;  %p4130_p6 = por %p196_p4, %p195_p3 }
   0xa   : > { %p3049_p7 = scmp.ge.s32.totalorder %s4041_s27, 1  ;;  %p241_p8 = scmp.lt.s32.totalorder %s4041_s27, 3 }
   0xc   : > { %p242_p9 = pnand %p3049_p7, %p241_p8 }
   0xe   : > { %245 = sbr.rel (%p242_p9) target bundleno = 962 (0x3c2), region = 48 }
  0x13   : > { %v3301_v0 = vld [vmem:[%s5749_s1 + $0x18] sm:$0xff]  ;;  %s3051_s15 = sshll.u32 %s4109_s28, 5  ;;  %v3300_v1 = vld [vmem:[%s5749_s1 + $0x10] sm:$0xff]  ;;  %v3299_v2 = vld [vmem:[%s5749_s1 + $0x8] sm:$0xff]  ;;  %vm429_vm0 = vcmask 523264   ;;  %vm599_vm1 = vcmask 261120  }
  0x14   : > { %p274_p10 = scmp.lt.s32.totalorder %s3051_s15, 63  ;;  %482 = vmatpush.bf16.msra.mxu0 %v3301_v0  ;;  %3422 = vmatpush.bf16.msra.mxu1 %v3301_v0  ;;  %v3298_v3 = vld [vmem:[%s5749_s1] sm:$0xff]  ;;  %vm601_vm2 = vcmask 254976   ;;  %v4043_v11 = vmov 0.0   ;;  %s4044_s14 = smov 32   ;;  %v4309_v29 = vld [vmem:[%s5751_s3 + $0x88] sm:$0xff] }
  0x15   : > { %3423 = vmatpush.bf16.msra.mxu2 %v3301_v0  ;;  %603 = vst.msk [vmem:[#allocation2 + $0x10] sm:$0xff] %vm599_vm1, %v4043_v11  ;;  %v4223_v13 = vld [vmem:[%s5750_s2] ss:$0 sm:$0xff]  ;;  %3431 = vmatpush.bf16.msra.mxu3 %v4309_v29  ;;  %vm1835_vm3 = vcmask 785408   ;;  %s270_s17 = sand.u32 1, %s4033_s25   ;;  %s3326_s22 = sshll.u32 %s4109_s28, 7 }
  0x16   : > { %s5775_s15 = smov (!%p274_p10, %s3051_s15), 63  ;;  %604 = vst.msk [vmem:[#allocation2 + $0x18] sm:$0x3] %vm601_vm2, %v4043_v11  ;;  %v4330_v30 = vld [vmem:[%s5751_s3 + $0x80] sm:$0xff]  ;;  %s3050_s18 = sshll.u32 %s270_s17, 7 }
  0x17   : > { %s3052_s20 = sshll.u32 %s5775_s15, 2  ;;  %600 = vst.msk [vmem:[#allocation2] sm:$0xff] %vm599_vm1, %v4043_v11  ;;  %s4045_s15 = smov 64  }
  0x18   : > { %483 = vmatpush.bf16.msra.mxu0 %v3300_v1  ;;  %3424 = vmatpush.bf16.msra.mxu1 %v3300_v1  ;;  %s4152_s8 = scalar_lea.vmem %s5748_s0, %s3052_s20  ;;  %602 = vst.msk [vmem:[#allocation2 + $0x8] sm:$0x3] %vm601_vm2, %v4043_v11  ;;  %s4046_s20 = smov 96  }
  0x19   : > { %3425 = vmatpush.bf16.msra.mxu2 %v3300_v1  ;;  %v3282_v4 = vld [vmem:[%s4152_s8] sm:$0xff]  ;;  %v3283_v5 = vld [vmem:[%s4152_s8 + $0x8] sm:$0xff]  ;;  %v3284_v6 = vld [vmem:[%s4152_s8 + $0x10] sm:$0xff]  ;;  %605 = vst.msk [vmem:[#allocation2 + $0x20] sm:$0xff] %vm599_vm1, %v4043_v11  ;;  %3433 = vmatpush.bf16.msra.mxu3 %v4330_v30  ;;  %s5614_s19 = scalar_lea.vmem [#allocation3], %s3050_s18  ;;  %s2969_s28 = scalar_lea.sflag [#allocation4], %s270_s17 }
  0x1a   : > { %v3285_v7 = vld [vmem:[%s4152_s8 + $0x18] sm:$0xff]  ;;  %v3286_v8 = vld [vmem:[%s4152_s8 + $0x20] sm:$0xff]  ;;  %v3287_v9 = vld [vmem:[%s4152_s8 + $0x28] sm:$0xff]  ;;  %606 = vst.msk [vmem:[#allocation2 + $0x28] sm:$0x3] %vm601_vm2, %v4043_v11  ;;  %s2981_s29 = sshll.u32 %s5614_s19, 4  ;;  %s2982_s29 = int_to_ptr.vmem [resolvable:$true] %s2981_s29 }
  0x1b   : > { %v3288_v10 = vld [vmem:[%s4152_s8 + $0x30] sm:$0xff]  ;;  %607 = vst.msk [vmem:[#allocation2 + $0x30] sm:$0xff] %vm599_vm1, %v4043_v11  ;;  %v3289_v12 = vld [vmem:[%s4152_s8 + $0x38] sm:$0xff]  ;;  %v3290_v14 = vld [vmem:[%s4152_s8 + $0x40] sm:$0xff]  ;;  %s3999_s21 = scalar_lea.hbm %s5755_s7, 256 }
  0x1c   : > { %484 = vmatpush.bf16.msra.mxu0 %v3299_v2  ;;  %3426 = vmatpush.bf16.msra.mxu1 %v3299_v2  ;;  %608 = vst.msk [vmem:[#allocation2 + $0x38] sm:$0x3] %vm601_vm2, %v4043_v11  ;;  %v3291_v23 = vld [vmem:[%s4152_s8 + $0x48] sm:$0xff]  ;;  %v3292_v24 = vld [vmem:[%s4152_s8 + $0x50] sm:$0xff]  ;;  %v3293_v32 = vld [vmem:[%s4152_s8 + $0x58] sm:$0xff] }
  0x1d   : > { %3427 = vmatpush.bf16.msra.mxu2 %v3299_v2  ;;  %609 = vst.msk [vmem:[#allocation2 + $0x40] sm:$0xff] %vm599_vm1, %v4043_v11  ;;  %v3294_v33 = vld [vmem:[%s4152_s8 + $0x60] sm:$0xff]  ;;  %v3295_v45 = vld [vmem:[%s4152_s8 + $0x68] sm:$0xff] }
  0x1e   : > { %610 = vst.msk [vmem:[#allocation2 + $0x48] sm:$0x3] %vm601_vm2, %v4043_v11 }
  0x1f   : > { %611 = vst.msk [vmem:[#allocation2 + $0x50] sm:$0xff] %vm599_vm1, %v4043_v11  ;;  %v746_v19 = vld [vmem:[#allocation2 + $0x1] sm:$0xff] }
  0x20   : > { %485 = vmatpush.bf16.msra.mxu0 %v3298_v3  ;;  %3428 = vmatpush.bf16.msra.mxu1 %v3298_v3  ;;  %612 = vst.msk [vmem:[#allocation2 + $0x58] sm:$0x3] %vm601_vm2, %v4043_v11  ;;  %v778_v25 = vld [vmem:[#allocation2 + $0x2] sm:$0xff] }
  0x21   : > { %3429 = vmatpush.bf16.msra.mxu2 %v3298_v3  ;;  %613 = vst.msk [vmem:[#allocation2 + $0x60] sm:$0xff] %vm599_vm1, %v4043_v11 }
  0x22   : > { %614 = vst.msk [vmem:[#allocation2 + $0x68] sm:$0x3] %vm601_vm2, %v4043_v11 }
  0x23   : > { %3133 = vmatmul.msk.bf16.vlgmr.msra.gmra.mxu0 %vm429_vm0, %v3282_v4  ;;  %615 = vst.msk [vmem:[#allocation2 + $0x70] sm:$0xff] %vm599_vm1, %v4043_v11  ;;  %3143 = vmatmul.msk.bf16.vlgmr.msra.gmra.mxu1 %vm429_vm0, %v3292_v24 }
  0x24   : > { %616 = vst.msk [vmem:[#allocation2 + $0x78] sm:$0x3] %vm601_vm2, %v4043_v11  ;;  %2392 = vmatpush.bf16.msrb.mxu0 %v4309_v29  ;;  %3145 = vmatmul.msk.bf16.vlgmr.msra.gmra.mxu2 %vm429_vm0, %v3294_v33 }
  0x25   : > { %617 = vst.msk [vmem:[#allocation2 + $0x80] sm:$0xff] %vm599_vm1, %v4043_v11 }
  0x26   : > { %618 = vst.msk [vmem:[#allocation2 + $0x88] sm:$0x3] %vm601_vm2, %v4043_v11 }
  0x27   : > { %619 = vst.msk [vmem:[#allocation2 + $0x90] sm:$0xff] %vm599_vm1, %v4043_v11 }
  0x28   : > { %620 = vst.msk [vmem:[#allocation2 + $0x98] sm:$0x3] %vm601_vm2, %v4043_v11  ;;  %2393 = vmatpush.bf16.msrb.mxu0 %v4330_v30 }
  0x29   : > { %621 = vst.msk [vmem:[#allocation2 + $0xa0] sm:$0xff] %vm599_vm1, %v4043_v11 }
  0x2a   : > { %622 = vst.msk [vmem:[#allocation2 + $0xa8] sm:$0x3] %vm601_vm2, %v4043_v11 }
  0x2b   : > { %623 = vst.msk [vmem:[#allocation2 + $0xb0] sm:$0xff] %vm599_vm1, %v4043_v11 }
  0x2c   : > { %624 = vst.msk [vmem:[#allocation2 + $0xb8] sm:$0x3] %vm601_vm2, %v4043_v11 }
  0x2d   : > { %625 = vst.msk [vmem:[#allocation2 + $0xc0] sm:$0xff] %vm599_vm1, %v4043_v11 }
  0x2e   : > { %626 = vst.msk [vmem:[#allocation2 + $0xc8] sm:$0x3] %vm601_vm2, %v4043_v11 }
  0x2f   : > { %627 = vst.msk [vmem:[#allocation2 + $0xd0] sm:$0xff] %vm599_vm1, %v4043_v11 }
  0x30   : > { %628 = vst.msk [vmem:[#allocation2 + $0xd8] sm:$0x3] %vm601_vm2, %v4043_v11 }
  0x31   : > { %629 = vst.msk [vmem:[#allocation2 + $0xe0] sm:$0xff] %vm599_vm1, %v4043_v11 }
  0x32   : > { %630 = vst.msk [vmem:[#allocation2 + $0xe8] sm:$0x3] %vm601_vm2, %v4043_v11 }
  0x33   : > { %3134 = vmatmul.msk.bf16.gmra.mxu0 %vm429_vm0, %v3283_v5  ;;  %631 = vst.msk [vmem:[#allocation2 + $0xf0] sm:$0xff] %vm599_vm1, %v4043_v11  ;;  %3144 = vmatmul.msk.bf16.gmra.mxu1 %vm429_vm0, %v3293_v32 }
  0x34   : > { %632 = vst.msk [vmem:[#allocation2 + $0xf8] sm:$0x3] %vm601_vm2, %v4043_v11  ;;  %3146 = vmatmul.msk.bf16.gmra.mxu2 %vm429_vm0, %v3295_v45 }
  0x35   : > { %633 = vst.msk [vmem:[#allocation2 + $0x100] sm:$0xff] %vm599_vm1, %v4043_v11 }
  0x36   : > { %634 = vst.msk [vmem:[#allocation2 + $0x108] sm:$0x3] %vm601_vm2, %v4043_v11 }
  0x37   : > { %635 = vst.msk [vmem:[#allocation2 + $0x110] sm:$0xff] %vm599_vm1, %v4043_v11 }
  0x38   : > { %636 = vst.msk [vmem:[#allocation2 + $0x118] sm:$0x3] %vm601_vm2, %v4043_v11 }
  0x39   : > { %637 = vst.msk [vmem:[#allocation2 + $0x120] sm:$0xff] %vm599_vm1, %v4043_v11 }
  0x3a   : > { %638 = vst.msk [vmem:[#allocation2 + $0x128] sm:$0x3] %vm601_vm2, %v4043_v11 }
  0x3b   : > { %639 = vst.msk [vmem:[#allocation2 + $0x130] sm:$0xff] %vm599_vm1, %v4043_v11 }
  0x3c   : > { %640 = vst.msk [vmem:[#allocation2 + $0x138] sm:$0x3] %vm601_vm2, %v4043_v11 }
  0x3d   : > { %641 = vst.msk [vmem:[#allocation2 + $0x140] sm:$0xff] %vm599_vm1, %v4043_v11 }
  0x3e   : > { %642 = vst.msk [vmem:[#allocation2 + $0x148] sm:$0x3] %vm601_vm2, %v4043_v11 }
  0x3f   : > { %643 = vst.msk [vmem:[#allocation2 + $0x150] sm:$0xff] %vm599_vm1, %v4043_v11 }
  0x40   : > { %644 = vst.msk [vmem:[#allocation2 + $0x158] sm:$0x3] %vm601_vm2, %v4043_v11 }
  0x41   : > { %645 = vst.msk [vmem:[#allocation2 + $0x160] sm:$0xff] %vm599_vm1, %v4043_v11 }
  0x42   : > { %646 = vst.msk [vmem:[#allocation2 + $0x168] sm:$0x3] %vm601_vm2, %v4043_v11 }
  0x43   : > { %3135 = vmatmul.msk.bf16.gmra.mxu0 %vm429_vm0, %v3284_v6  ;;  %647 = vst.msk [vmem:[#allocation2 + $0x170] sm:$0xff] %vm599_vm1, %v4043_v11  ;;  %v3296_v6 = vld [vmem:[%s4152_s8 + $0x70] sm:$0xff] }
  0x44   : > { %648 = vst.msk [vmem:[#allocation2 + $0x178] sm:$0x3] %vm601_vm2, %v4043_v11  ;;  %3147 = vmatmul.msk.bf16.gmra.mxu2 %vm429_vm0, %v3296_v6 }
  0x45   : > { %649 = vst.msk [vmem:[#allocation2 + $0x180] sm:$0xff] %vm599_vm1, %v4043_v11 }
  0x46   : > { %650 = vst.msk [vmem:[#allocation2 + $0x188] sm:$0x3] %vm601_vm2, %v4043_v11 }
  0x47   : > { %651 = vst.msk [vmem:[#allocation2 + $0x190] sm:$0xff] %vm599_vm1, %v4043_v11 }
  0x48   : > { %652 = vst.msk [vmem:[#allocation2 + $0x198] sm:$0x3] %vm601_vm2, %v4043_v11 }
  0x49   : > { %653 = vst.msk [vmem:[#allocation2 + $0x1a0] sm:$0xff] %vm599_vm1, %v4043_v11 }
  0x4a   : > { %654 = vst.msk [vmem:[#allocation2 + $0x1a8] sm:$0x3] %vm601_vm2, %v4043_v11 }
  0x4b   : > { %655 = vst.msk [vmem:[#allocation2 + $0x1b0] sm:$0xff] %vm599_vm1, %v4043_v11 }
  0x4c   : > { %656 = vst.msk [vmem:[#allocation2 + $0x1b8] sm:$0x3] %vm601_vm2, %v4043_v11 }
  0x4d   : > { %657 = vst.msk [vmem:[#allocation2 + $0x1c0] sm:$0xff] %vm599_vm1, %v4043_v11 }
  0x4e   : > { %658 = vst.msk [vmem:[#allocation2 + $0x1c8] sm:$0x3] %vm601_vm2, %v4043_v11 }
  0x4f   : > { %659 = vst.msk [vmem:[#allocation2 + $0x1d0] sm:$0xff] %vm599_vm1, %v4043_v11 }
  0x50   : > { %660 = vst.msk [vmem:[#allocation2 + $0x1d8] sm:$0x3] %vm601_vm2, %v4043_v11 }
  0x51   : > { %661 = vst.msk [vmem:[#allocation2 + $0x1e0] sm:$0xff] %vm599_vm1, %v4043_v11 }
  0x52   : > { %662 = vst.msk [vmem:[#allocation2 + $0x1e8] sm:$0x3] %vm601_vm2, %v4043_v11 }
  0x53   : > { %3136 = vmatmul.msk.bf16.gmra.mxu0 %vm429_vm0, %v3285_v7  ;;  %663 = vst.msk [vmem:[#allocation2 + $0x1f0] sm:$0xff] %vm599_vm1, %v4043_v11 }
  0x54   : > { %664 = vst.msk [vmem:[#allocation2 + $0x1f8] sm:$0x3] %vm601_vm2, %v4043_v11 }
  0x55   : > { %665 = vst.msk [vmem:[#allocation2 + $0x200] sm:$0xff] %vm599_vm1, %v4043_v11 }
  0x56   : > { %666 = vst.msk [vmem:[#allocation2 + $0x208] sm:$0x3] %vm601_vm2, %v4043_v11 }
  0x57   : > { %667 = vst.msk [vmem:[#allocation2 + $0x210] sm:$0xff] %vm599_vm1, %v4043_v11 }
  0x58   : > { %668 = vst.msk [vmem:[#allocation2 + $0x218] sm:$0x3] %vm601_vm2, %v4043_v11 }
  0x59   : > { %669 = vst.msk [vmem:[#allocation2 + $0x220] sm:$0xff] %vm599_vm1, %v4043_v11 }
  0x5a   : > { %670 = vst.msk [vmem:[#allocation2 + $0x228] sm:$0x3] %vm601_vm2, %v4043_v11 }
  0x5b   : > { %671 = vst.msk [vmem:[#allocation2 + $0x230] sm:$0xff] %vm599_vm1, %v4043_v11 }
  0x5c   : > { %672 = vst.msk [vmem:[#allocation2 + $0x238] sm:$0x3] %vm601_vm2, %v4043_v11 }
  0x5d   : > { %673 = vst.msk [vmem:[#allocation2 + $0x240] sm:$0xff] %vm599_vm1, %v4043_v11 }
  0x5e   : > { %674 = vst.msk [vmem:[#allocation2 + $0x248] sm:$0x3] %vm601_vm2, %v4043_v11 }
  0x5f   : > { %675 = vst.msk [vmem:[#allocation2 + $0x250] sm:$0xff] %vm599_vm1, %v4043_v11 }
  0x60   : > { %676 = vst.msk [vmem:[#allocation2 + $0x258] sm:$0x3] %vm601_vm2, %v4043_v11 }
  0x61   : > { %677 = vst.msk [vmem:[#allocation2 + $0x260] sm:$0xff] %vm599_vm1, %v4043_v11 }
  0x62   : > { %678 = vst.msk [vmem:[#allocation2 + $0x268] sm:$0x3] %vm601_vm2, %v4043_v11 }
  0x63   : > { %3137 = vmatmul.msk.bf16.gmra.mxu0 %vm429_vm0, %v3286_v8  ;;  %679 = vst.msk [vmem:[#allocation2 + $0x270] sm:$0xff] %vm599_vm1, %v4043_v11 }
  0x64   : > { %680 = vst.msk [vmem:[#allocation2 + $0x278] sm:$0x3] %vm601_vm2, %v4043_v11 }
  0x73   : > { %3138 = vmatmul.msk.bf16.gmra.mxu0 %vm429_vm0, %v3287_v9 }
  0x83   : > { %3139 = vmatmul.msk.bf16.gmra.mxu0 %vm429_vm0, %v3288_v10 }
  0x93   : > { %3140 = vmatmul.msk.bf16.gmra.mxu0 %vm429_vm0, %v3289_v12 }
  0xa0   : > { %v487_v15 = vpop.f32.mrf.mxu0 }
  0xa1   : > { %v488_v16 = vadd.f32 %v4223_v13, %v487_v15 }
  0xa3   : > { %v567_v17 = vmax.f32 %v488_v16, 0.0  ;;  %3141 = vmatmul.msk.bf16.gmra.mxu0 %vm429_vm0, %v3290_v14 }
  0xa5   : > { %682 = vst.msk [vmem:[#allocation2 + $0x11] sm:$0xff] %vm599_vm1, %v567_v17 }
  0xa8   : > { %v489_v18 = vpop.f32.mrf.mxu0 }
  0xa9   : > { %v490_v34 = vadd.f32 %v4223_v13, %v489_v18 }
  0xab   : > { %v568_v39 = vmax.f32 %v490_v34, 0.0  ;;  %v3297_v34 = vld [vmem:[%s4152_s8 + $0x78] sm:$0xff] }
  0xac   : > { %v747_v20 = vld [vmem:[#allocation2 + $0x11] sm:$0xff]  ;;  %3148 = vmatmul.msk.bf16.gmra.mxu2 %vm429_vm0, %v3297_v34 }
  0xad   : > { %v3478_v21 = vpack.i.bf16 %v747_v20, %v746_v19  ;;  %v4292_v26 = vld [vmem:[#allocation2 + $0x12] sm:$0xff]  ;;  %683 = vst.msk [vmem:[#allocation2 + $0x21] sm:$0xff] %vm599_vm1, %v568_v39 }
  0xae   : > { %v3483_v27 = vpack.i.bf16 %v4292_v26, %v778_v25  ;;  %v4379_v49 = vld [vmem:[#allocation2 + $0x10] sm:$0xff] }
  0xaf   : > { %3479 = vrot.lane.b32.xlu0 %v3478_v21, %s4044_s14 }
  0xb0   : > { %v492_v22 = vpop.f32.mrf.mxu0 }
  0xb1   : > { %v493_v35 = vadd.f32 %v4223_v13, %v492_v22 }
  0xb3   : > { %3142 = vmatmul.msk.bf16.gmra.mxu0 %vm429_vm0, %v3291_v23  ;;  %v569_v41 = vmax.f32 %v493_v35, 0.0  ;;  %v754_v23 = vld [vmem:[#allocation2 + $0xa1] sm:$0xff] }
  0xb4   : > { %v4381_v50 = vld [vmem:[#allocation2 + $0x20] sm:$0xff] }
  0xb5   : > { %684 = vst.msk [vmem:[#allocation2 + $0x31] sm:$0xff] %vm599_vm1, %v569_v41  ;;  %v3488_v51 = vpack.i.bf16 %v4381_v50, %v4379_v49  ;;  %v4386_v52 = vld [vmem:[#allocation2 + $0x22] sm:$0xff] }
  0xb6   : > { %v748_v63 = vld [vmem:[#allocation2 + $0x21] sm:$0xff] }
  0xb7   : > { %3484 = vrot.lane.b32.xlu0 %v3483_v27, %s4045_s15  ;;  %3489 = vrot.lane.b32.xlu1 %v3488_v51, %s4046_s20  ;;  %v3309_v51 = vld [vmem:[%s5751_s3 + $0x38] sm:$0xff] }
  0xb8   : > { %v494_v28 = vpop.f32.mrf.mxu0  ;;  %2208 = vmatpush.bf16.msrb.mxu1 %v3309_v51 }
  0xb9   : > { %v495_v36 = vadd.f32 %v4223_v13, %v494_v28 }
  0xbb   : > { %v570_v42 = vmax.f32 %v495_v36, 0.0 }
  0xbc   : > { %v4388_v53 = vld [vmem:[#allocation2 + $0x32] sm:$0xff] }
  0xbd   : > { %685 = vst.msk [vmem:[#allocation2 + $0x41] sm:$0xff] %vm599_vm1, %v570_v42  ;;  %v3498_v54 = vpack.i.bf16 %v4388_v53, %v4386_v52  ;;  %v1966_v55 = vpack.c.bf16 %v4388_v53, %v4386_v52  ;;  %v749_v59 = vld [vmem:[#allocation2 + $0x31] sm:$0xff] }
  0xbe   : > { %v4404_v0 = vpack.i.bf16 %v749_v59, %v748_v63  ;;  %v4406_v1 = vld [vmem:[#allocation2 + $0x30] sm:$0xff] }
  0xbf   : > { %3499 = vrot.lane.b32.xlu2 %v3498_v54, %s4045_s15 }
  0xc0   : > { %v497_v31 = vpop.f32.mrf.mxu0  ;;  %3494 = vrot.lane.b32.xlu1 %v4404_v0, %s4044_s14 }
  0xc1   : > { %v498_v38 = vadd.f32 %v4223_v13, %v497_v31 }
  0xc3   : > { %v571_v43 = vmax.f32 %v498_v38, 0.0  ;;  %3221 = vmatmul.msk.bf16.vlgmr.msrb.gmra.mxu0 %vm599_vm1, %v1966_v55 }
  0xc4   : > { %v750_v56 = vld [vmem:[#allocation2 + $0x41] sm:$0xff] }
  0xc5   : > { %686 = vst.msk [vmem:[#allocation2 + $0x51] sm:$0xff] %vm599_vm1, %v571_v43  ;;  %v4399_v61 = vld [vmem:[#allocation2 + $0x40] sm:$0xff] }
  0xc6   : > { %v3503_v4 = vpack.i.bf16 %v4399_v61, %v4406_v1  ;;  %v4423_v12 = vld [vmem:[#allocation2 + $0x42] sm:$0xff] }
  0xc8   : > { %v499_v37 = vpop.f32.mrf.mxu0  ;;  %3504 = vrot.lane.b32.xlu2 %v3503_v4, %s4046_s20 }
  0xc9   : > { %v500_v40 = vadd.f32 %v4223_v13, %v499_v37  ;;  %v786_v37 = vld [vmem:[#allocation2 + $0xa2] sm:$0xff] }
  0xcb   : > { %v572_v44 = vmax.f32 %v500_v40, 0.0 }
  0xcc   : > { %v751_v57 = vld [vmem:[#allocation2 + $0x51] sm:$0xff] }
  0xcd   : > { %687 = vst.msk [vmem:[#allocation2 + $0x61] sm:$0xff] %vm599_vm1, %v572_v44  ;;  %v4397_v60 = vpack.i.bf16 %v751_v57, %v750_v56  ;;  %v4417_v9 = vld [vmem:[#allocation2 + $0x52] sm:$0xff] }
  0xce   : > { %v3513_v15 = vpack.i.bf16 %v4417_v9, %v4423_v12  ;;  %v4429_v16 = vld [vmem:[#allocation2 + $0x50] sm:$0xff]  ;;  %v1969_v18 = vpack.c.bf16 %v4417_v9, %v4423_v12 }
  0xcf   : > { %3509 = vrot.lane.b32.xlu0 %v4397_v60, %s4044_s14 }
  0xd0   : > { %v502_v46 = vpop.f32.mrf.mxu0  ;;  %3514 = vrot.lane.b32.xlu1 %v3513_v15, %s4045_s15  ;;  %v3568_v15 = vpack.i.bf16 %v4406_v1, %v4381_v50 }
  0xd1   : > { %v503_v47 = vadd.f32 %v4223_v13, %v502_v46 }
  0xd3   : > { %v573_v48 = vmax.f32 %v503_v47, 0.0  ;;  %3222 = vmatmul.msk.bf16.gmra.mxu0 %vm599_vm1, %v1969_v18 }
  0xd4   : > { %v752_v5 = vld [vmem:[#allocation2 + $0x61] sm:$0xff] }
  0xd5   : > { %688 = vst.msk [vmem:[#allocation2 + $0x71] sm:$0xff] %vm599_vm1, %v573_v48  ;;  %v4420_v11 = vld [vmem:[#allocation2 + $0x60] sm:$0xff] }
  0xd6   : > { %v3518_v17 = vpack.i.bf16 %v4420_v11, %v4429_v16  ;;  %v4444_v24 = vld [vmem:[#allocation2 + $0x62] sm:$0xff] }
  0xd8   : > { %v504_v58 = vpop.f32.mrf.mxu0  ;;  %3519 = vrot.lane.b32.xlu2 %v3518_v17, %s4046_s20 }
  0xd9   : > { %v505_v62 = vadd.f32 %v4223_v13, %v504_v58 }
  0xdb   : > { %v574_v2 = vmax.f32 %v505_v62, 0.0 }
  0xdc   : > { %v753_v3 = vld [vmem:[#allocation2 + $0x71] sm:$0xff] }
  0xdd   : > { %689 = vst.msk [vmem:[#allocation2 + $0x81] sm:$0xff] %vm599_vm1, %v574_v2  ;;  %v4412_v7 = vpack.i.bf16 %v753_v3, %v752_v5  ;;  %v4439_v20 = vld [vmem:[#allocation2 + $0x72] sm:$0xff] }
  0xde   : > { %v3528_v27 = vpack.i.bf16 %v4439_v20, %v4444_v24  ;;  %v4448_v28 = vld [vmem:[#allocation2 + $0x70] sm:$0xff]  ;;  %v1972_v46 = vpack.c.bf16 %v4439_v20, %v4444_v24 }
  0xdf   : > { %3524 = vrot.lane.b32.xlu0 %v4412_v7, %s4044_s14  ;;  %v978_v3 = vld [vmem:[#allocation2 + $0x92] sm:$0xff] }
  0xe0   : > { %v507_v8 = vpop.f32.mrf.mxu0  ;;  %3529 = vrot.lane.b32.xlu1 %v3528_v27, %s4045_s15 }
  0xe1   : > { %v508_v10 = vadd.f32 %v4223_v13, %v507_v8 }
  0xe3   : > { %v575_v14 = vmax.f32 %v508_v10, 0.0  ;;  %3223 = vmatmul.msk.bf16.gmra.mxu0 %vm599_vm1, %v1972_v46  ;;  %v3588_v46 = vpack.i.bf16 %v4423_v12, %v4388_v53 }
  0xe4   : > { %v4442_v22 = vld [vmem:[#allocation2 + $0x80] sm:$0xff] }
  0xe5   : > { %690 = vst.msk [vmem:[#allocation2 + $0xb1] sm:$0xff] %vm599_vm1, %v575_v14  ;;  %v3533_v32 = vpack.i.bf16 %v4442_v22, %v4448_v28  ;;  %v4493_v2 = vld [vmem:[#allocation2 + $0x82] sm:$0xff]  ;;  %v3558_v14 = vpack.i.bf16 %v4386_v52, %v4292_v26  ;;  %v3308_v26 = vld [vmem:[%s5751_s3 + $0x30] sm:$0xff] }
  0xe6   : > { %v1975_v18 = vpack.c.bf16 %v978_v3, %v4493_v2  ;;  %2209 = vmatpush.bf16.msrb.mxu1 %v3308_v26  ;;  %v3618_v26 = vpack.i.bf16 %v4444_v24, %v4417_v9  ;;  %v3302_v9 = vld [vmem:[%s5751_s3] sm:$0xff] }
  0xe7   : > { %3534 = vrot.lane.b32.xlu2 %v3533_v32, %s4046_s20  ;;  %v794_v24 = vld [vmem:[#allocation2 + $0x142] sm:$0xff] }
  0xe8   : > { %v509_v19 = vpop.f32.mrf.mxu0 }
  0xe9   : > { %v510_v21 = vadd.f32 %v4223_v13, %v509_v19 }
  0xeb   : > { %v576_v25 = vmax.f32 %v510_v21, 0.0 }
  0xec   : > { %v755_v31 = vld [vmem:[#allocation2 + $0xb1] sm:$0xff] }
  0xed   : > { %691 = vst.msk [vmem:[#allocation2 + $0xc1] sm:$0xff] %vm599_vm1, %v576_v25  ;;  %v3538_v33 = vpack.i.bf16 %v755_v31, %v754_v23  ;;  %v4458_v38 = vld [vmem:[#allocation2 + $0xb2] sm:$0xff]  ;;  %v3307_v31 = vld [vmem:[%s5751_s3 + $0x28] sm:$0xff] }
  0xee   : > { %v3543_v40 = vpack.i.bf16 %v4458_v38, %v786_v37  ;;  %v4462_v41 = vld [vmem:[#allocation2 + $0xb0] sm:$0xff]  ;;  %2210 = vmatpush.bf16.msrb.mxu1 %v3307_v31 }
  0xef   : > { %3539 = vrot.lane.b32.xlu0 %v3538_v33, %s4044_s14 }
  0xf0   : > { %v512_v35 = vpop.f32.mrf.mxu0  ;;  %3544 = vrot.lane.b32.xlu1 %v3543_v40, %s4045_s15  ;;  %v3306_v40 = vld [vmem:[%s5751_s3 + $0x20] sm:$0xff] }
  0xf1   : > { %v513_v36 = vadd.f32 %v4223_v13, %v512_v35 }
  0xf2   : > { %2211 = vmatpush.bf16.msrb.mxu1 %v3306_v40 }
  0xf3   : > { %v577_v39 = vmax.f32 %v513_v36, 0.0  ;;  %3224 = vmatmul.msk.bf16.gmra.mxu0 %vm599_vm1, %v1975_v18 }
  0xf4   : > { %v4464_v42 = vld [vmem:[#allocation2 + $0xc0] sm:$0xff] }
  0xf5   : > { %v4466_v43 = vld [vmem:[#allocation2 + $0xc2] sm:$0xff]  ;;  %692 = vst.msk [vmem:[#allocation2 + $0xd1] sm:$0xff] %vm599_vm1, %v577_v39  ;;  %v3548_v44 = vpack.i.bf16 %v4464_v42, %v4462_v41 }
  0xf6   : > { %v3678_v45 = vpack.i.bf16 %v4466_v43, %v4458_v38  ;;  %v756_v56 = vld [vmem:[#allocation2 + $0xc1] sm:$0xff] }
  0xf7   : > { %3549 = vrot.lane.b32.xlu2 %v3548_v44, %s4046_s20 }
  0xf8   : > { %v514_v47 = vpop.f32.mrf.mxu0 }
  0xf9   : > { %v515_v48 = vadd.f32 %v4223_v13, %v514_v47  ;;  %v3598_v47 = vpack.i.bf16 %v4429_v16, %v4399_v61 }
  0xfb   : > { %v578_v54 = vmax.f32 %v515_v48, 0.0  ;;  %v3305_v48 = vld [vmem:[%s5751_s3 + $0x18] sm:$0xff] }
  0xfc   : > { %v4482_v55 = vld [vmem:[#allocation2 + $0xd2] sm:$0xff]  ;;  %2212 = vmatpush.bf16.msrb.mxu1 %v3305_v48 }
  0xfd   : > { %v757_v57 = vld [vmem:[#allocation2 + $0xd1] sm:$0xff]  ;;  %693 = vst.msk [vmem:[#allocation2 + $0xe1] sm:$0xff] %vm599_vm1, %v578_v54  ;;  %v3563_v58 = vpack.i.bf16 %v4482_v55, %v4466_v43  ;;  %v1978_v54 = vpack.c.bf16 %v4482_v55, %v4466_v43  ;;  %v843_v43 = vld [vmem:[#allocation2 + $0x21] sm:$0xff] }
  0xfe   : > { %v4487_v59 = vpack.i.bf16 %v757_v57, %v756_v56  ;;  %v4495_v5 = vld [vmem:[#allocation2 + $0xd0] sm:$0xff] }
  0xff   : > { %3564 = vrot.lane.b32.xlu1 %v3563_v58, %s4045_s15 }
 0x100   : > { %3554 = vrot.lane.b32.xlu0 %v4487_v59, %s4044_s14  ;;  %v517_v62 = vpop.f32.mrf.mxu0 }
 0x101   : > { %v518_v63 = vadd.f32 %v4223_v13, %v517_v62 }
 0x103   : > { %v579_v4 = vmax.f32 %v518_v63, 0.0  ;;  %3225 = vmatmul.msk.bf16.gmra.mxu0 %vm599_vm1, %v1978_v54 }
 0x104   : > { %v4497_v6 = vld [vmem:[#allocation2 + $0xe0] sm:$0xff] }
 0x105   : > { %v4499_v8 = vld [vmem:[#allocation2 + $0xe2] sm:$0xff]  ;;  %694 = vst.msk [vmem:[#allocation2 + $0xf1] sm:$0xff] %vm599_vm1, %v579_v4  ;;  %v3573_v10 = vpack.i.bf16 %v4497_v6, %v4495_v5  ;;  %v3304_v4 = vld [vmem:[%s5751_s3 + $0x10] sm:$0xff] }
 0x106   : > { %v3713_v17 = vpack.i.bf16 %v4499_v8, %v4482_v55  ;;  %v758_v23 = vld [vmem:[#allocation2 + $0xe1] sm:$0xff]  ;;  %2213 = vmatpush.bf16.msrb.mxu1 %v3304_v4  ;;  %v3648_v4 = vpack.i.bf16 %v4493_v2, %v4439_v20  ;;  %v946_v2 = vld [vmem:[#allocation2 + $0x91] sm:$0xff] }
 0x107   : > { %3574 = vrot.lane.b32.xlu2 %v3573_v10, %s4046_s20  ;;  %3569 = vrot.lane.b32.xlu1 %v3568_v15, %s4045_s15  ;;  %v4638_v20 = vld [vmem:[#allocation2 + $0x81] sm:$0xff] }
 0x108   : > { %3559 = vrot.lane.b32.xlu0 %v3558_v14, %s4044_s14  ;;  %v519_v19 = vpop.f32.mrf.mxu0  ;;  %v3303_v14 = vld [vmem:[%s5751_s3 + $0x8] sm:$0xff] }
 0x109   : > { %v520_v21 = vadd.f32 %v4223_v13, %v519_v19 }
 0x10a   : > { %2214 = vmatpush.bf16.msrb.mxu1 %v3303_v14 }
 0x10b   : > { %v580_v52 = vmax.f32 %v520_v21, 0.0 }
 0x10c   : > { %v4519_v25 = vld [vmem:[#allocation2 + $0xf2] sm:$0xff] }
 0x10d   : > { %v759_v27 = vld [vmem:[#allocation2 + $0xf1] sm:$0xff]  ;;  %695 = vst.msk [vmem:[#allocation2 + $0x101] sm:$0xff] %vm599_vm1, %v580_v52  ;;  %v3593_v32 = vpack.i.bf16 %v4519_v25, %v4499_v8  ;;  %v3628_v52 = vpack.i.bf16 %v4448_v28, %v4420_v11 }
 0x10e   : > { %v4527_v33 = vpack.i.bf16 %v759_v27, %v758_v23  ;;  %v4535_v37 = vld [vmem:[#allocation2 + $0xf0] sm:$0xff]  ;;  %v1981_v23 = vpack.c.bf16 %v4519_v25, %v4499_v8  ;;  %2215 = vmatpush.bf16.msrb.mxu1 %v3302_v9  ;;  %v3314_v8 = vld [vmem:[%s5751_s3 + $0x60] sm:$0xff] }
 0x10f   : > { %3579 = vrot.lane.b32.xlu2 %v4404_v0, %s4046_s20  ;;  %3594 = vrot.lane.b32.xlu1 %v3593_v32, %s4045_s15 }
 0x110   : > { %3584 = vrot.lane.b32.xlu0 %v4527_v33, %s4044_s14  ;;  %v522_v34 = vpop.f32.mrf.mxu0 }
 0x111   : > { %v523_v35 = vadd.f32 %v4223_v13, %v522_v34  ;;  %v762_v34 = vld [vmem:[#allocation2 + $0x141] sm:$0xff] }
 0x112   : > { %3430 = vmatpush.bf16.msra.mxu1 %v4309_v29 }
 0x113   : > { %v581_v36 = vmax.f32 %v523_v35, 0.0  ;;  %3226 = vmatmul.msk.bf16.gmra.mxu0 %vm599_vm1, %v1981_v23 }
 0x114   : > { %v4537_v39 = vld [vmem:[#allocation2 + $0x100] sm:$0xff] }
 0x115   : > { %v4542_v44 = vld [vmem:[#allocation2 + $0x102] sm:$0xff]  ;;  %696 = vst.msk [vmem:[#allocation2 + $0x111] sm:$0xff] %vm599_vm1, %v581_v36  ;;  %v3603_v0 = vpack.i.bf16 %v4537_v39, %v4535_v37 }
 0x116   : > { %v3748_v51 = vpack.i.bf16 %v4542_v44, %v4519_v25  ;;  %v760_v58 = vld [vmem:[#allocation2 + $0x101] sm:$0xff]  ;;  %3432 = vmatpush.bf16.msra.mxu1 %v4330_v30  ;;  %v3312_v25 = vld [vmem:[%s5751_s3 + $0x50] sm:$0xff] }
 0x117   : > { %3604 = vrot.lane.b32.xlu2 %v3603_v0, %s4046_s20  ;;  %3599 = vrot.lane.b32.xlu1 %v3598_v47, %s4045_s15  ;;  %v537_v47 = vpop.f32.mrf.mxu1 }
 0x118   : > { %3589 = vrot.lane.b32.xlu0 %v3588_v46, %s4044_s14  ;;  %v524_v53 = vpop.f32.mrf.mxu0  ;;  %v538_v54 = vadd.f32 %v4223_v13, %v537_v47 }
 0x119   : > { %v525_v12 = vadd.f32 %v4223_v13, %v524_v53 }
 0x11b   : > { %v582_v56 = vmax.f32 %v525_v12, 0.0  ;;  %v587_v12 = vmax.f32 %v538_v54, 0.0 }
 0x11c   : > { %v4563_v57 = vld [vmem:[#allocation2 + $0x112] sm:$0xff] }
 0x11d   : > { %v761_v62 = vld [vmem:[#allocation2 + $0x111] sm:$0xff]  ;;  %697 = vst.msk [vmem:[#allocation2 + $0x121] sm:$0xff] %vm599_vm1, %v582_v56  ;;  %v3623_v63 = vpack.i.bf16 %v4563_v57, %v4542_v44  ;;  %v1984_v30 = vpack.c.bf16 %v4563_v57, %v4542_v44 }
 0x11e   : > { %v4568_v3 = vpack.i.bf16 %v761_v62, %v760_v58  ;;  %v4582_v19 = vld [vmem:[#allocation2 + $0x110] sm:$0xff]  ;;  %702 = vst.msk [vmem:[#allocation2 + $0x191] sm:$0xff] %vm599_vm1, %v587_v12 }
 0x11f   : > { %3609 = vrot.lane.b32.xlu2 %v4397_v60, %s4046_s20  ;;  %3624 = vrot.lane.b32.xlu1 %v3623_v63, %s4045_s15  ;;  %v914_v56 = vld [vmem:[#allocation2 + $0x90] sm:$0xff]  ;;  %v4624_v63 = vpop.permute.xlu2 %3499  ;;  %v539_v14 = vpop.f32.mrf.mxu1 }
 0x120   : > { %3614 = vrot.lane.b32.xlu0 %v4568_v3, %s4044_s14  ;;  %v527_v10 = vpop.f32.mrf.mxu0  ;;  %v3658_v62 = vpack.i.bf16 %v914_v56, %v4442_v22 }
 0x121   : > { %v528_v15 = vadd.f32 %v4223_v13, %v527_v10 }
 0x123   : > { %v583_v18 = vmax.f32 %v528_v15, 0.0  ;;  %v3480_v15 = vpop.permute.xlu0 %3479  ;;  %3227 = vmatmul.msk.bf16.gmra.mxu0 %vm599_vm1, %v1984_v30 }
 0x124   : > { %v4584_v21 = vld [vmem:[#allocation2 + $0x120] sm:$0xff] }
 0x125   : > { %698 = vst.msk [vmem:[#allocation2 + $0x151] sm:$0xff] %vm599_vm1, %v583_v18  ;;  %v3633_v60 = vpack.i.bf16 %v4584_v21, %v4582_v19  ;;  %v540_v18 = vadd.f32 %v4223_v13, %v539_v14  ;;  %v767_v38 = vld [vmem:[#allocation2 + $0x191] sm:$0xff] }
 0x127   : > { %3634 = vrot.lane.b32.xlu2 %v3633_v60, %s4046_s20  ;;  %3629 = vrot.lane.b32.xlu1 %v3628_v52, %s4045_s15  ;;  %v588_v52 = vmax.f32 %v540_v18, 0.0  ;;  %v3688_v18 = vpack.i.bf16 %v4495_v5, %v4464_v42 }
 0x128   : > { %3619 = vrot.lane.b32.xlu0 %v3618_v26, %s4044_s14  ;;  %v529_v27 = vpop.f32.mrf.mxu0 }
 0x129   : > { %v530_v31 = vadd.f32 %v4223_v13, %v529_v27  ;;  %703 = vst.msk [vmem:[#allocation2 + $0x1a1] sm:$0xff] %vm599_vm1, %v588_v52 }
 0x12b   : > { %v584_v32 = vmax.f32 %v530_v31, 0.0  ;;  %v3485_v47 = vpop.permute.xlu0 %3484 }
 0x12c   : > { %v4603_v35 = vld [vmem:[#allocation2 + $0x152] sm:$0xff]  ;;  %v3487_v14 = vunpack.i.h.bf16 %v3485_v47 }
 0x12d   : > { %v763_v36 = vld [vmem:[#allocation2 + $0x151] sm:$0xff]  ;;  %699 = vst.msk [vmem:[#allocation2 + $0x161] sm:$0xff] %vm599_vm1, %v584_v32  ;;  %v3653_v40 = vpack.i.bf16 %v4603_v35, %v794_v24 }
 0x12e   : > { %v3643_v0 = vpack.i.bf16 %v763_v36, %v762_v34  ;;  %v4616_v29 = vld [vmem:[#allocation2 + $0x150] sm:$0xff]  ;;  %v3668_v34 = vpack.i.bf16 %v946_v2, %v4638_v20  ;;  %v542_v36 = vpop.f32.mrf.mxu1 }
 0x12f   : > { %3639 = vrot.lane.b32.xlu2 %v4412_v7, %s4046_s20  ;;  %3654 = vrot.lane.b32.xlu1 %v3653_v40, %s4045_s15  ;;  %v3317_v40 = vld [vmem:[%s5751_s3 + $0x78] sm:$0xff] }
 0x130   : > { %3644 = vrot.lane.b32.xlu0 %v3643_v0, %s4044_s14  ;;  %v532_v46 = vpop.f32.mrf.mxu0  ;;  %v4656_v0 = vpop.permute.xlu2 %3504  ;;  %2297 = vmatpush.bf16.msrb.mxu2 %v3317_v40 }
 0x131   : > { %v533_v48 = vadd.f32 %v4223_v13, %v532_v46  ;;  %v543_v46 = vadd.f32 %v4223_v13, %v542_v36  ;;  %v3490_v40 = vpop.permute.xlu1 %3489 }
 0x133   : > { %v585_v53 = vmax.f32 %v533_v48, 0.0  ;;  %v4661_v48 = vld [vmem:[#allocation2 + $0x122] sm:$0xff]  ;;  %v589_v54 = vmax.f32 %v543_v46, 0.0 }
 0x134   : > { %v4618_v7 = vld [vmem:[#allocation2 + $0x160] sm:$0xff] }
 0x135   : > { %700 = vst.msk [vmem:[#allocation2 + $0x171] sm:$0xff] %vm599_vm1, %v585_v53  ;;  %v3663_v58 = vpack.i.bf16 %v4618_v7, %v4616_v29  ;;  %v4636_v60 = vld [vmem:[#allocation2 + $0x162] sm:$0xff]  ;;  %v986_v53 = vld [vmem:[#allocation2 + $0x132] sm:$0xff] }
 0x136   : > { %v764_v27 = vld [vmem:[#allocation2 + $0x161] sm:$0xff]  ;;  %704 = vst.msk [vmem:[#allocation2 + $0x1b1] sm:$0xff] %vm599_vm1, %v589_v54  ;;  %v1987_v52 = vpack.c.bf16 %v986_v53, %v4661_v48  ;;  %v3491_v54 = vunpack.i.l.bf16 %v3490_v40 }
 0x137   : > { %3664 = vrot.lane.b32.xlu2 %v3663_v58, %s4046_s20  ;;  %3659 = vrot.lane.b32.xlu1 %v3658_v62, %s4045_s15  ;;  %v3482_v58 = vunpack.i.h.bf16 %v3480_v15  ;;  %v3481_v62 = vunpack.i.l.bf16 %v3480_v15  ;;  %v544_v15 = vpop.f32.mrf.mxu1 }
 0x138   : > { %v534_v10 = vpop.f32.mrf.mxu0  ;;  %3649 = vrot.lane.b32.xlu0 %v3648_v4, %s4044_s14  ;;  %v547_v4 = vpop.f32.mrf.mxu2  ;;  %3228 = vmatmul.msk.bf16.gmra.mxu0 %vm599_vm1, %v1987_v52 }
 0x139   : > { %v535_v22 = vadd.f32 %v4223_v13, %v534_v10  ;;  %v714_v10 = vld [vmem:[#allocation2] sm:$0xff] }
 0x13b   : > { %v586_v26 = vmax.f32 %v535_v22, 0.0  ;;  %v3486_v22 = vunpack.i.l.bf16 %v3485_v47 }
 0x13c   : > { %v4640_v23 = vld [vmem:[#allocation2 + $0x172] sm:$0xff] }
 0x13d   : > { %v765_v31 = vld [vmem:[#allocation2 + $0x171] sm:$0xff]  ;;  %701 = vst.msk [vmem:[#allocation2 + $0x181] sm:$0xff] %vm599_vm1, %v586_v26  ;;  %v3683_v9 = vpack.i.bf16 %v4640_v23, %v4636_v60  ;;  %v548_v26 = vadd.f32 %v4223_v13, %v547_v4 }
 0x13e   : > { %v4647_v24 = vpack.i.bf16 %v765_v31, %v764_v27  ;;  %v4663_v12 = vld [vmem:[#allocation2 + $0x170] sm:$0xff]  ;;  %v1771_v27 = vsel %vm599_vm1, %v714_v10, %v3481_v62  ;;  %v1772_v31 = vsel %vm599_vm1, %v4379_v49, %v3482_v58  ;;  %v3492_v49 = vunpack.i.h.bf16 %v3490_v40 }
 0x13f   : > { %3669 = vrot.lane.b32.xlu2 %v3668_v34, %s4046_s20  ;;  %3684 = vrot.lane.b32.xlu1 %v3683_v9, %s4045_s15  ;;  %v591_v2 = vmax.f32 %v548_v26, 0.0  ;;  %v4679_v9 = vpop.permute.xlu2 %3519  ;;  %v545_v34 = vadd.f32 %v4223_v13, %v544_v15  ;;  %v1803_v46 = vsel %vm429_vm0, %v1771_v27, %v3486_v22  ;;  %v1804_v47 = vsel %vm429_vm0, %v1772_v31, %v3487_v14  ;;  %v4692_v58 = vld [vmem:[#allocation2 + $0x192] sm:$0xff]  ;;  %v3495_v15 = vpop.permute.xlu1 %3494  ;;  %v4717_v27 = vld [vmem:[#allocation2 + $0x1a2] sm:$0xff] }
 0x140   : > { %3674 = vrot.lane.b32.xlu0 %v4647_v24, %s4044_s14  ;;  %v3316_v22 = vld [vmem:[%s5751_s3 + $0x70] sm:$0xff]  ;;  %v3497_v31 = vunpack.i.h.bf16 %v3495_v15 }
 0x141   : > { %706 = vst.msk [vmem:[#allocation2 + $0x1f1] sm:$0xff] %vm599_vm1, %v591_v2  ;;  %v590_v53 = vmax.f32 %v545_v34, 0.0  ;;  %2298 = vmatpush.bf16.msrb.mxu2 %v3316_v22  ;;  %v994_v2 = vld [vmem:[#allocation2 + $0x1d2] sm:$0xff]  ;;  %v3496_v34 = vunpack.i.l.bf16 %v3495_v15  ;;  %v3510_v15 = vpop.permute.xlu0 %3509 }
 0x143   : > { %705 = vst.msk [vmem:[#allocation2 + $0x1c1] sm:$0xff] %vm599_vm1, %v590_v53  ;;  %v4728_v53 = vld [vmem:[#allocation2 + $0x190] sm:$0xff] }
 0x144   : > { %v4665_v56 = vld [vmem:[#allocation2 + $0x180] sm:$0xff] }
 0x145   : > { %v3693_v30 = vpack.i.bf16 %v4665_v56, %v4663_v12  ;;  %v4687_v36 = vld [vmem:[#allocation2 + $0x182] sm:$0xff] }
 0x146   : > { %v766_v62 = vld [vmem:[#allocation2 + $0x181] sm:$0xff]  ;;  %v3718_v10 = vpack.i.bf16 %v4692_v58, %v4687_v36 }
 0x147   : > { %3694 = vrot.lane.b32.xlu2 %v3693_v30, %s4046_s20  ;;  %3689 = vrot.lane.b32.xlu1 %v3688_v18, %s4045_s15  ;;  %v1837_v30 = vsel %vm1835_vm3, %v1804_v47, %v3492_v49  ;;  %v4701_v14 = vpack.i.bf16 %v767_v38, %v766_v62  ;;  %v549_v18 = vpop.f32.mrf.mxu2  ;;  %v4708_v26 = vpop.permute.xlu2 %3534  ;;  %v1774_v49 = vsel %vm599_vm1, %v4406_v1, %v3497_v31 }
 0x148   : > { %3679 = vrot.lane.b32.xlu0 %v3678_v45, %s4044_s14  ;;  %v1836_v45 = vsel %vm1835_vm3, %v1803_v46, %v3491_v54  ;;  %v550_v52 = vadd.f32 %v4223_v13, %v549_v18  ;;  %v4719_v46 = vld [vmem:[#allocation2 + $0x1a0] sm:$0xff]  ;;  %v1773_v54 = vsel %vm599_vm1, %v4381_v50, %v3496_v34  ;;  %v1990_v50 = vpack.c.bf16 %v4640_v23, %v4636_v60  ;;  %v3515_v31 = vpop.permute.xlu1 %3514 }
 0x149   : > { %v1964_v4 = vpack.c.bf16 %v1837_v30, %v1836_v45  ;;  %v3502_v45 = vunpack.i.h.bf16 %v4624_v63  ;;  %v3501_v30 = vunpack.i.l.bf16 %v4624_v63  ;;  %v3723_v1 = vpack.i.bf16 %v4535_v37, %v4497_v6 }
 0x14a   : > { %v592_v40 = vmax.f32 %v550_v52, 0.0  ;;  %v4721_v47 = vld [vmem:[#allocation2 + $0x1c2] sm:$0xff]  ;;  %v3507_v63 = vunpack.i.h.bf16 %v4656_v0  ;;  %v3506_v52 = vunpack.i.l.bf16 %v4656_v0  ;;  %3229 = vmatmul.msk.bf16.gmra.mxu0 %vm599_vm1, %v1990_v50  ;;  %v3511_v50 = vunpack.i.l.bf16 %v3510_v15 }
 0x14b   : > { %2216 = vmatmul.bf16.vlgmr.msrb.gmra.mxu1 %v1964_v4  ;;  %v1999_v62 = vpack.c.bf16 %v994_v2, %v4721_v47  ;;  %v3703_v4 = vpack.i.bf16 %v4719_v46, %v4728_v53  ;;  %v1806_v22 = vsel %vm429_vm0, %v1774_v49, %v3502_v45  ;;  %v4758_v49 = vld [vmem:[#allocation2 + $0x1b2] sm:$0xff]  ;;  %v3536_v38 = vunpack.i.l.bf16 %v4708_v26 }
 0x14c   : > { %707 = vst.msk [vmem:[#allocation2 + $0x201] sm:$0xff] %vm599_vm1, %v592_v40  ;;  %v1839_v40 = vsel %vm1835_vm3, %v1806_v22, %v3507_v63 }
 0x14d   : > { %3232 = vmatmul.msk.bf16.vlgmr.msra.gmra.mxu3 %vm599_vm1, %v1999_v62  ;;  %v769_v62 = vld [vmem:[#allocation2 + $0x1b1] sm:$0xff] }
 0x14f   : > { %3699 = vrot.lane.b32.xlu2 %v4487_v59, %s4046_s20  ;;  %3719 = vrot.lane.b32.xlu1 %v3718_v10, %s4045_s15  ;;  %v3315_v59 = vld [vmem:[%s5751_s3 + $0x68] sm:$0xff]  ;;  %v1805_v10 = vsel %vm429_vm0, %v1773_v54, %v3501_v30  ;;  %v552_v18 = vpop.f32.mrf.mxu2  ;;  %v3738_v30 = vpack.i.bf16 %v4758_v49, %v4717_v27 }
 0x150   : > { %3709 = vrot.lane.b32.xlu0 %v4701_v14, %s4044_s14  ;;  %2299 = vmatpush.bf16.msrb.mxu2 %v3315_v59  ;;  %v553_v2 = vadd.f32 %v4223_v13, %v552_v18  ;;  %v1838_v34 = vsel %vm1835_vm3, %v1805_v10, %v3506_v52  ;;  %v768_v54 = vld [vmem:[#allocation2 + $0x1a1] sm:$0xff] }
 0x151   : > { %v4748_v59 = vpop.permute.xlu2 %3549  ;;  %v1967_v45 = vpack.c.bf16 %v1839_v40, %v1838_v34  ;;  %v4765_v55 = vpack.i.bf16 %v769_v62, %v768_v54  ;;  %v3516_v34 = vunpack.i.l.bf16 %v3515_v31  ;;  %v1775_v54 = vsel %vm599_vm1, %v4399_v61, %v3511_v50  ;;  %v4794_v62 = vld [vmem:[#allocation2 + $0x1b0] sm:$0xff] }
 0x152   : > { %v593_v0 = vmax.f32 %v553_v2, 0.0  ;;  %v4776_v18 = vpop.permute.xlu1 %3529  ;;  %v3517_v2 = vunpack.i.h.bf16 %v3515_v31  ;;  %v3753_v61 = vpack.i.bf16 %v4582_v19, %v4537_v39  ;;  %v3522_v50 = vunpack.i.h.bf16 %v4679_v9 }
 0x153   : > { %v4783_v63 = vld [vmem:[#allocation2 + $0x202] sm:$0xff] }
 0x154   : > { %708 = vst.msk [vmem:[#allocation2 + $0x211] sm:$0xff] %vm599_vm1, %v593_v0  ;;  %2300 = vmatpush.bf16.msrb.mxu2 %v3314_v8  ;;  %v1807_v8 = vsel %vm429_vm0, %v1775_v54, %v3516_v34 }
 0x157   : > { %3704 = vrot.lane.b32.xlu2 %v3703_v4, %s4046_s20  ;;  %3724 = vrot.lane.b32.xlu1 %v3723_v1, %s4045_s15  ;;  %v3512_v4 = vunpack.i.h.bf16 %v3510_v15  ;;  %v4770_v1 = vpop.permute.xlu0 %3524  ;;  %v4785_v15 = vld [vmem:[#allocation2 + $0x1c0] sm:$0xff] }
 0x158   : > { %3714 = vrot.lane.b32.xlu0 %v3713_v17, %s4044_s14  ;;  %v554_v17 = vpop.f32.mrf.mxu2  ;;  %v3743_v31 = vpack.i.bf16 %v4785_v15, %v4794_v62 }
 0x159   : > { %v555_v10 = vadd.f32 %v4223_v13, %v554_v17  ;;  %v1776_v0 = vsel %vm599_vm1, %v4429_v16, %v3512_v4  ;;  %v1993_v16 = vpack.c.bf16 %v4692_v58, %v4687_v36 }
 0x15a   : > { %v1808_v17 = vsel %vm429_vm0, %v1776_v0, %v3517_v2  ;;  %v802_v2 = vld [vmem:[#allocation2 + $0x1e2] sm:$0xff]  ;;  %v4825_v0 = vld [vmem:[#allocation2 + $0x1f2] sm:$0xff] }
 0x15b   : > { %2221 = vmatmul.bf16.gmra.mxu1 %v1967_v45  ;;  %v594_v52 = vmax.f32 %v555_v10, 0.0  ;;  %v4787_v40 = vld [vmem:[#allocation2 + $0x212] sm:$0xff]  ;;  %v3521_v10 = vunpack.i.l.bf16 %v4679_v9  ;;  %3230 = vmatmul.msk.bf16.gmra.mxu0 %vm599_vm1, %v1993_v16  ;;  %v1841_v54 = vsel %vm1835_vm3, %v1808_v17, %v3522_v50  ;;  %v4842_v17 = vld [vmem:[%s5750_s2] ss:$0 sm:$0xff] }
 0x15c   : > { %v2002_v45 = vpack.c.bf16 %v4787_v40, %v4783_v63  ;;  %v771_v16 = vld [vmem:[#allocation2 + $0x1f1] sm:$0xff] }
 0x15d   : > { %709 = vst.msk [vmem:[#allocation2 + $0x221] sm:$0xff] %vm599_vm1, %v594_v52  ;;  %v1840_v9 = vsel %vm1835_vm3, %v1807_v8, %v3521_v10  ;;  %v3526_v8 = vunpack.i.l.bf16 %v4770_v1 }
 0x15e   : > { %3233 = vmatmul.msk.bf16.gmra.mxu3 %vm599_vm1, %v2002_v45 }
 0x15f   : > { %3729 = vrot.lane.b32.xlu2 %v4527_v33, %s4046_s20  ;;  %3739 = vrot.lane.b32.xlu1 %v3738_v30, %s4045_s15  ;;  %v3313_v33 = vld [vmem:[%s5751_s3 + $0x58] sm:$0xff] }
 0x160   : > { %3734 = vrot.lane.b32.xlu0 %v4765_v55, %s4044_s14  ;;  %2301 = vmatpush.bf16.msrb.mxu2 %v3313_v33  ;;  %v557_v4 = vpop.f32.mrf.mxu2 }
 0x161   : > { %v4774_v22 = vpop.permute.xlu2 %3574  ;;  %v4813_v33 = vpop.permute.xlu0 %3539  ;;  %v558_v39 = vadd.f32 %v4223_v13, %v557_v4  ;;  %v3768_v13 = vpack.i.bf16 %v4825_v0, %v802_v2 }
 0x162   : > { %v4819_v34 = vpop.permute.xlu1 %3544 }
 0x163   : > { %v595_v45 = vmax.f32 %v558_v39, 0.0 }
 0x164   : > { %2302 = vmatpush.bf16.msrb.mxu2 %v3312_v25  ;;  %v4855_v2 = vld [vmem:[#allocation2 + $0x222] sm:$0xff]  ;;  %v1777_v25 = vsel %vm599_vm1, %v4420_v11, %v3526_v8  ;;  %v3778_v8 = vpack.i.bf16 %v4661_v48, %v4563_v57 }
 0x165   : > { %710 = vst.msk [vmem:[#allocation2 + $0x231] sm:$0xff] %vm599_vm1, %v595_v45  ;;  %v4859_v45 = vld [vmem:[#allocation2 + $0x200] sm:$0xff] }
 0x167   : > { %3744 = vrot.lane.b32.xlu2 %v3743_v31, %s4046_s20  ;;  %3754 = vrot.lane.b32.xlu1 %v3753_v61, %s4045_s15  ;;  %v770_v31 = vld [vmem:[#allocation2 + $0x1e1] sm:$0xff]  ;;  %v1970_v61 = vpack.c.bf16 %v1841_v54, %v1840_v9  ;;  %v4857_v54 = vld [vmem:[#allocation2 + $0x1f0] sm:$0xff] }
 0x168   : > { %3749 = vrot.lane.b32.xlu0 %v3748_v51, %s4044_s14  ;;  %v3763_v4 = vpack.i.bf16 %v771_v16, %v770_v31  ;;  %v559_v44 = vpop.f32.mrf.mxu2  ;;  %v3527_v51 = vunpack.i.h.bf16 %v4770_v1  ;;  %v3311_v1 = vld [vmem:[%s5751_s3 + $0x48] sm:$0xff]  ;;  %5760 = vst [vmem:[#allocation6_spill] sm:$0xff] %v4857_v54  ;;  %v3532_v31 = vunpack.i.h.bf16 %v4776_v18  ;;  %v3531_v16 = vunpack.i.l.bf16 %v4776_v18  ;;  %v3310_v18 = vld [vmem:[%s5751_s3 + $0x40] sm:$0xff] }
 0x169   : > { %v4817_v52 = vpop.permute.xlu2 %3579  ;;  %v560_v50 = vadd.f32 %v4842_v17, %v559_v44  ;;  %2303 = vmatpush.bf16.msrb.mxu2 %v3311_v1 }
 0x16a   : > { %v1809_v11 = vsel %vm429_vm0, %v1777_v25, %v3531_v16 }
 0x16b   : > { %2226 = vmatmul.bf16.gmra.mxu1 %v1970_v61  ;;  %v596_v9 = vmax.f32 %v560_v50, 0.0  ;;  %v3773_v50 = vpack.i.bf16 %v4859_v45, %v4857_v54  ;;  %v1842_v57 = vsel %vm1835_vm3, %v1809_v11, %v3536_v38  ;;  %v3582_v11 = vunpack.i.h.bf16 %v4817_v52 }
 0x16c   : > { %v4863_v61 = vld [vmem:[#allocation2 + $0x232] sm:$0xff] }
 0x16d   : > { %711 = vst.msk [vmem:[#allocation2 + $0x241] sm:$0xff] %vm599_vm1, %v596_v9  ;;  %v2005_v44 = vpack.c.bf16 %v4863_v61, %v4855_v2  ;;  %v3537_v9 = vunpack.i.h.bf16 %v4708_v26  ;;  %2304 = vmatpush.bf16.msrb.mxu2 %v3310_v18  ;;  %v954_v26 = vld [vmem:[#allocation2 + $0x131] sm:$0xff] }
 0x16e   : > { %v773_v18 = vld [vmem:[#allocation2 + $0x211] sm:$0xff] }
 0x16f   : > { %3759 = vrot.lane.b32.xlu2 %v4568_v3, %s4046_s20  ;;  %3769 = vrot.lane.b32.xlu1 %v3768_v13, %s4045_s15  ;;  %v922_v13 = vld [vmem:[#allocation2 + $0x130] sm:$0xff] }
 0x170   : > { %3764 = vrot.lane.b32.xlu0 %v3763_v4, %s4044_s14  ;;  %v1778_v4 = vsel %vm599_vm1, %v4448_v28, %v3527_v51  ;;  %v3783_v28 = vpack.i.bf16 %v922_v13, %v4584_v21  ;;  %3234 = vmatmul.msk.bf16.gmra.mxu3 %vm599_vm1, %v2005_v44  ;;  %v562_v1 = vpop.f32.mrf.mxu2 }
 0x171   : > { %v4845_v10 = vpop.permute.xlu2 %3604  ;;  %v4850_v39 = vpop.permute.xlu1 %3564  ;;  %v1810_v51 = vsel %vm429_vm0, %v1778_v4, %v3532_v31  ;;  %v563_v21 = vadd.f32 %v4842_v17, %v562_v1  ;;  %v842_v1 = vld [vmem:[#allocation2 + $0x11] sm:$0xff] }
 0x172   : > { %v4847_v3 = vpop.permute.xlu0 %3554  ;;  %v1843_v48 = vsel %vm1835_vm3, %v1810_v51, %v3537_v9  ;;  %v3581_v51 = vunpack.i.l.bf16 %v4817_v52  ;;  %v3798_v9 = vpack.i.bf16 %v4787_v40, %v4783_v63 }
 0x173   : > { %v597_v25 = vmax.f32 %v563_v21, 0.0  ;;  %v1973_v54 = vpack.c.bf16 %v1843_v48, %v1842_v57  ;;  %v3542_v21 = vunpack.i.h.bf16 %v4813_v33  ;;  %v3541_v57 = vunpack.i.l.bf16 %v4813_v33 }
 0x175   : > { %712 = vst.msk [vmem:[#allocation2 + $0x251] sm:$0xff] %vm599_vm1, %v597_v25 }
 0x177   : > { %3774 = vrot.lane.b32.xlu2 %v3773_v50, %s4046_s20  ;;  %3784 = vrot.lane.b32.xlu1 %v3783_v28, %s4045_s15  ;;  %v4895_v50 = vld [vmem:[#allocation2 + $0x121] sm:$0xff] }
 0x178   : > { %3779 = vrot.lane.b32.xlu0 %v3778_v8, %s4044_s14  ;;  %5761 = vst [vmem:[#allocation7_spill] sm:$0xff] %v4895_v50  ;;  %v3788_v38 = vpack.i.bf16 %v954_v26, %v4895_v50 }
 0x179   : > { %v4890_v13 = vpop.permute.xlu2 %3609  ;;  %v3570_v31 = vpop.permute.xlu1 %3569 }
 0x17a   : > { %v3560_v44 = vpop.permute.xlu0 %3559  ;;  %v3572_v28 = vunpack.i.h.bf16 %v3570_v31  ;;  %v3571_v30 = vunpack.i.l.bf16 %v3570_v31 }
 0x17b   : > { %v3562_v16 = vunpack.i.h.bf16 %v3560_v44  ;;  %v3561_v4 = vunpack.i.l.bf16 %v3560_v44  ;;  %v772_v44 = vld [vmem:[#allocation2 + $0x201] sm:$0xff]  ;;  %2231 = vmatmul.bf16.gmra.mxu1 %v1973_v54 }
 0x17d   : > { %v1869_v8 = vsel %vm599_vm1, %v843_v43, %v3562_v16  ;;  %v1868_v32 = vsel %vm599_vm1, %v842_v1, %v3561_v4  ;;  %v4907_v43 = vpack.i.bf16 %v773_v18, %v772_v44  ;;  %v564_v4 = vpop.f32.mrf.mxu2  ;;  %v722_v1 = vld [vmem:[#allocation2 + $0xa0] sm:$0xff]  ;;  %v3547_v44 = vunpack.i.h.bf16 %v4819_v34 }
 0x17e   : > { %v1900_v31 = vsel %vm429_vm0, %v1868_v32, %v3571_v30  ;;  %v1901_v16 = vsel %vm429_vm0, %v1869_v8, %v3572_v28  ;;  %v565_v26 = vadd.f32 %v4842_v17, %v564_v4  ;;  %v4924_v30 = vld [vmem:[#allocation2 + $0x242] sm:$0xff]  ;;  %v3546_v18 = vunpack.i.l.bf16 %v4819_v34  ;;  %v775_v34 = vld [vmem:[#allocation2 + $0x231] sm:$0xff] }
 0x17f   : > { %3789 = vrot.lane.b32.xlu2 %v3788_v38, %s4046_s20  ;;  %3799 = vrot.lane.b32.xlu1 %v3798_v9, %s4045_s15  ;;  %v1932_v54 = vsel %vm1835_vm3, %v1900_v31, %v3581_v51  ;;  %v1933_v25 = vsel %vm1835_vm3, %v1901_v16, %v3582_v11  ;;  %v4926_v28 = vld [vmem:[#allocation2 + $0x220] sm:$0xff]  ;;  %v4930_v38 = vld [vmem:[#allocation2 + $0x252] sm:$0xff]  ;;  %v1780_v17 = vsel %vm599_vm1, %v4462_v41, %v3542_v21  ;;  %v3552_v4 = vunpack.i.h.bf16 %v4748_v59 }
 0x180   : > { %3794 = vrot.lane.b32.xlu0 %v4907_v43, %s4044_s14  ;;  %v1965_v33 = vpack.c.bf16 %v1933_v25, %v1932_v54  ;;  %v598_v8 = vmax.f32 %v565_v26, 0.0  ;;  %v1779_v11 = vsel %vm599_vm1, %v722_v1, %v3541_v57  ;;  %v4935_v51 = vld [vmem:[#allocation2 + $0x210] sm:$0xff]  ;;  %v2008_v9 = vpack.c.bf16 %v4930_v38, %v4924_v30 }
 0x181   : > { %v4913_v52 = vpop.permute.xlu2 %3634  ;;  %v4922_v32 = vpop.permute.xlu1 %3594  ;;  %v3803_v31 = vpack.i.bf16 %v4926_v28, %v4935_v51  ;;  %v3813_v16 = vpack.i.bf16 %v4663_v12, %v4618_v7  ;;  %v1811_v41 = vsel %vm429_vm0, %v1779_v11, %v3546_v18  ;;  %v1812_v21 = vsel %vm429_vm0, %v1780_v17, %v3547_v44  ;;  %v845_v11 = vld [vmem:[#allocation2 + $0x41] sm:$0xff] }
 0x182   : > { %v4915_v48 = vpop.permute.xlu0 %3584  ;;  %2305 = vmatmul.bf16.vlgmr.msrb.gmra.mxu2 %v1965_v33  ;;  %713 = vst.msk [vmem:[#allocation2 + $0x261] sm:$0xff] %vm599_vm1, %v598_v8  ;;  %3235 = vmatmul.msk.bf16.gmra.mxu3 %vm599_vm1, %v2008_v9  ;;  %v3551_v57 = vunpack.i.l.bf16 %v4748_v59  ;;  %v5762_v7 = vpack.i.bf16 %v4636_v60, %v4603_v35  ;;  %v1845_v44 = vsel %vm1835_vm3, %v1812_v21, %v3552_v4  ;;  %v844_v59 = vld [vmem:[#allocation2 + $0x31] sm:$0xff]  ;;  %v3612_v35 = vunpack.i.h.bf16 %v4890_v13 }
 0x183   : > { %v3611_v60 = vunpack.i.l.bf16 %v4890_v13  ;;  %v3556_v13 = vunpack.i.l.bf16 %v4847_v3 }
 0x184   : > { %v1844_v8 = vsel %vm1835_vm3, %v1811_v41, %v3551_v57  ;;  %v3828_v41 = vpack.i.bf16 %v4863_v61, %v4855_v2 }
 0x185   : > { %v1976_v50 = vpack.c.bf16 %v1845_v44, %v1844_v8  ;;  %v4988_v44 = vld [vmem:[#allocation2 + $0x240] sm:$0xff] }
 0x187   : > { %3804 = vrot.lane.b32.xlu2 %v3803_v31, %s4046_s20  ;;  %3814 = vrot.lane.b32.xlu1 %v3813_v16, %s4045_s15  ;;  %v774_v16 = vld [vmem:[#allocation2 + $0x221] sm:$0xff] }
 0x188   : > { %3809 = vrot.lane.b32.xlu0 %v5762_v7, %s4044_s14  ;;  %v4969_v21 = vpack.i.bf16 %v775_v34, %v774_v16  ;;  %v1002_v7 = vld [vmem:[#allocation2 + $0x272] sm:$0xff] }
 0x189   : > { %v4953_v54 = vpop.permute.xlu2 %3639  ;;  %v3600_v26 = vpop.permute.xlu1 %3599 }
 0x18a   : > { %v3590_v25 = vpop.permute.xlu0 %3589  ;;  %v3602_v18 = vunpack.i.h.bf16 %v3600_v26  ;;  %v3601_v17 = vunpack.i.l.bf16 %v3600_v26  ;;  %v3557_v26 = vunpack.i.h.bf16 %v4847_v3 }
 0x18b   : > { %v3592_v1 = vunpack.i.h.bf16 %v3590_v25  ;;  %v3591_v33 = vunpack.i.l.bf16 %v3590_v25  ;;  %2236 = vmatmul.bf16.gmra.mxu1 %v1976_v50  ;;  %v4973_v25 = vld [vmem:[#allocation2 + $0x262] sm:$0xff] }
 0x18c   : > { %v2011_v3 = vpack.c.bf16 %v1002_v7, %v4973_v25 }
 0x18d   : > { %v1871_v9 = vsel %vm599_vm1, %v845_v11, %v3592_v1  ;;  %v1870_v31 = vsel %vm599_vm1, %v844_v59, %v3591_v33  ;;  %v1782_v59 = vsel %vm599_vm1, %v4495_v5, %v3557_v26  ;;  %v1781_v11 = vsel %vm599_vm1, %v4464_v42, %v3556_v13 }
 0x18e   : > { %v1902_v4 = vsel %vm429_vm0, %v1870_v31, %v3601_v17  ;;  %v1903_v57 = vsel %vm429_vm0, %v1871_v9, %v3602_v18  ;;  %v3567_v18 = vunpack.i.h.bf16 %v4850_v39  ;;  %v3566_v17 = vunpack.i.l.bf16 %v4850_v39  ;;  %v4997_v9 = vld [vmem:[#allocation2 + $0x230] sm:$0xff] }
 0x18f   : > { %3819 = vrot.lane.b32.xlu2 %v4647_v24, %s4046_s20  ;;  %3829 = vrot.lane.b32.xlu1 %v3828_v41, %s4045_s15  ;;  %v1934_v50 = vsel %vm1835_vm3, %v1902_v4, %v3611_v60  ;;  %v1935_v24 = vsel %vm1835_vm3, %v1903_v57, %v3612_v35  ;;  %v3928_v31 = vpack.i.bf16 %v4924_v30, %v4863_v61  ;;  %v3577_v42 = vunpack.i.h.bf16 %v4774_v22 }
 0x190   : > { %3824 = vrot.lane.b32.xlu0 %v4969_v21, %s4044_s14  ;;  %v1968_v8 = vpack.c.bf16 %v1935_v24, %v1934_v50  ;;  %v3833_v16 = vpack.i.bf16 %v4988_v44, %v4997_v9  ;;  %v3848_v35 = vpack.i.bf16 %v4728_v53, %v4665_v56  ;;  %v1813_v39 = vsel %vm429_vm0, %v1781_v11, %v3566_v17 }
 0x191   : > { %v4984_v34 = vpop.permute.xlu2 %3664  ;;  %v4986_v33 = vpop.permute.xlu1 %3624  ;;  %v1814_v5 = vsel %vm429_vm0, %v1782_v59, %v3567_v18  ;;  %v3576_v60 = vunpack.i.l.bf16 %v4774_v22  ;;  %v5763_v4 = vpack.i.bf16 %v4687_v36, %v4640_v23  ;;  %v846_v22 = vld [vmem:[#allocation2 + $0x51] sm:$0xff]  ;;  %v776_v59 = vld [vmem:[#allocation2 + $0x241] sm:$0xff]  ;;  %v3642_v11 = vunpack.i.h.bf16 %v4953_v54 }
 0x192   : > { %v4978_v1 = vpop.permute.xlu0 %3614  ;;  %2310 = vmatmul.bf16.gmra.mxu2 %v1968_v8  ;;  %3236 = vmatmul.msk.bf16.gmra.mxu3 %vm599_vm1, %v2011_v3  ;;  %v1847_v50 = vsel %vm1835_vm3, %v1814_v5, %v3577_v42  ;;  %v847_v3 = vld [vmem:[#allocation2 + $0x61] sm:$0xff]  ;;  %v777_v23 = vld [vmem:[#allocation2 + $0x251] sm:$0xff] }
 0x193   : > { %v1846_v13 = vsel %vm1835_vm3, %v1813_v39, %v3576_v60  ;;  %v5028_v39 = vpack.i.bf16 %v777_v23, %v776_v59  ;;  %v3587_v60 = vunpack.i.h.bf16 %v4915_v48  ;;  %v3962_v23 = vld [vmem:[%s4152_s8] sm:$0xff] }
 0x194   : > { %v1979_v36 = vpack.c.bf16 %v1847_v50, %v1846_v13  ;;  %v5045_v13 = vld [vmem:[#allocation2 + $0x260] sm:$0xff]  ;;  %v3596_v50 = vunpack.i.l.bf16 %v4922_v32 }
 0x197   : > { %3834 = vrot.lane.b32.xlu2 %v3833_v16, %s4046_s20  ;;  %3849 = vrot.lane.b32.xlu1 %v3848_v35, %s4045_s15  ;;  %v3641_v16 = vunpack.i.l.bf16 %v4953_v54  ;;  %v3853_v35 = vpack.i.bf16 %v4930_v38, %v4924_v30  ;;  %v938_v30 = vld [vmem:[#allocation2 + $0x270] sm:$0xff] }
 0x198   : > { %3839 = vrot.lane.b32.xlu0 %v5763_v4, %s4044_s14 }
 0x199   : > { %v5016_v56 = vpop.permute.xlu2 %3669  ;;  %v3630_v57 = vpop.permute.xlu1 %3629 }
 0x19a   : > { %v3620_v41 = vpop.permute.xlu0 %3619  ;;  %v3632_v24 = vunpack.i.h.bf16 %v3630_v57  ;;  %v3631_v8 = vunpack.i.l.bf16 %v3630_v57 }
 0x19b   : > { %v3622_v7 = vunpack.i.h.bf16 %v3620_v41  ;;  %v3621_v26 = vunpack.i.l.bf16 %v3620_v41  ;;  %2241 = vmatmul.bf16.gmra.mxu1 %v1979_v36  ;;  %v3586_v41 = vunpack.i.l.bf16 %v4915_v48  ;;  %v3597_v48 = vunpack.i.h.bf16 %v4922_v32 }
 0x19c   : > { %v3606_v32 = vunpack.i.l.bf16 %v4845_v10 }
 0x19d   : > { %v1873_v18 = vsel %vm599_vm1, %v847_v3, %v3622_v7  ;;  %v1872_v17 = vsel %vm599_vm1, %v846_v22, %v3621_v26  ;;  %v5053_v22 = vld [vmem:[#allocation2 + $0x250] sm:$0xff]  ;;  %v3943_v3 = vpack.i.bf16 %v4973_v25, %v4930_v38 }
 0x19e   : > { %v1904_v5 = vsel %vm429_vm0, %v1872_v17, %v3631_v8  ;;  %v1905_v42 = vsel %vm429_vm0, %v1873_v18, %v3632_v24  ;;  %v1784_v24 = vsel %vm599_vm1, %v4535_v37, %v3587_v60  ;;  %v1783_v8 = vsel %vm599_vm1, %v4497_v6, %v3586_v41 }
 0x19f   : > { %3859 = vrot.lane.b32.xlu2 %v4701_v14, %s4046_s20  ;;  %3854 = vrot.lane.b32.xlu1 %v3853_v35, %s4045_s15  ;;  %v1936_v54 = vsel %vm1835_vm3, %v1904_v5, %v3641_v16  ;;  %v1937_v4 = vsel %vm1835_vm3, %v1905_v42, %v3642_v11  ;;  %v3863_v18 = vpack.i.bf16 %v5045_v13, %v5053_v22  ;;  %v3607_v37 = vunpack.i.h.bf16 %v4845_v10 }
 0x1a0   : > { %3844 = vrot.lane.b32.xlu0 %v5028_v39, %s4044_s14  ;;  %v1971_v7 = vpack.c.bf16 %v1937_v4, %v1936_v54  ;;  %v1815_v17 = vsel %vm429_vm0, %v1783_v8, %v3596_v50  ;;  %v1816_v59 = vsel %vm429_vm0, %v1784_v24, %v3597_v48  ;;  %v5764_v6 = vpack.i.bf16 %v4717_v27, %v4692_v58  ;;  %v848_v54 = vld [vmem:[#allocation2 + $0x71] sm:$0xff] }
 0x1a1   : > { %v5039_v14 = vpop.permute.xlu2 %3694  ;;  %v5041_v57 = vpop.permute.xlu1 %3654  ;;  %v1848_v16 = vsel %vm1835_vm3, %v1815_v17, %v3606_v32  ;;  %v1849_v35 = vsel %vm1835_vm3, %v1816_v59, %v3607_v37  ;;  %v3672_v48 = vunpack.i.h.bf16 %v5016_v56  ;;  %v3671_v50 = vunpack.i.l.bf16 %v5016_v56  ;;  %v3963_v17 = vld [vmem:[%s4152_s8 + $0x8] sm:$0xff] }
 0x1a2   : > { %v5043_v26 = vpop.permute.xlu0 %3644  ;;  %2315 = vmatmul.bf16.gmra.mxu2 %v1971_v7  ;;  %v1982_v4 = vpack.c.bf16 %v1849_v35, %v1848_v16  ;;  %v3873_v7 = vpack.i.bf16 %v4794_v62, %v4719_v46  ;;  %v5100_v16 = vld [vmem:[#allocation2 + $0x1c1] sm:$0xff]  ;;  %v962_v35 = vld [vmem:[#allocation2 + $0x1d1] sm:$0xff] }
 0x1a7   : > { %3864 = vrot.lane.b32.xlu2 %v3863_v18, %s4046_s20  ;;  %3869 = vrot.lane.b32.xlu1 %v5764_v6, %s4044_s14  ;;  %v3617_v18 = vunpack.i.h.bf16 %v4978_v1 }
 0x1a8   : > { %2619 = vrot.lane.b32.xlu0 %v3962_v23, %s4044_s14  ;;  %v3627_v23 = vunpack.i.h.bf16 %v4986_v33 }
 0x1a9   : > { %v5070_v36 = vpop.permute.xlu2 %3699  ;;  %v3660_v11 = vpop.permute.xlu1 %3659 }
 0x1aa   : > { %v3650_v5 = vpop.permute.xlu0 %3649  ;;  %v3662_v42 = vunpack.i.h.bf16 %v3660_v11  ;;  %v3661_v60 = vunpack.i.l.bf16 %v3660_v11  ;;  %v728_v11 = vld [vmem:[#allocation2 + $0x100] sm:$0xff] }
 0x1ab   : > { %v3652_v10 = vunpack.i.h.bf16 %v3650_v5  ;;  %v3651_v41 = vunpack.i.l.bf16 %v3650_v5  ;;  %2246 = vmatmul.bf16.gmra.mxu1 %v1982_v4  ;;  %v1786_v5 = vsel %vm599_vm1, %v4582_v19, %v3617_v18  ;;  %v3637_v4 = vunpack.i.h.bf16 %v4913_v52  ;;  %v851_v18 = vld [vmem:[#allocation2 + $0xc1] sm:$0xff] }
 0x1ac   : > { %v3636_v19 = vunpack.i.l.bf16 %v4913_v52 }
 0x1ad   : > { %v1875_v58 = vsel %vm599_vm1, %v4638_v20, %v3652_v10  ;;  %v1874_v27 = vsel %vm599_vm1, %v848_v54, %v3651_v41  ;;  %v3616_v20 = vunpack.i.l.bf16 %v4978_v1  ;;  %v3626_v1 = vunpack.i.l.bf16 %v4986_v33 }
 0x1ae   : > { %v1906_v24 = vsel %vm429_vm0, %v1874_v27, %v3661_v60  ;;  %v1907_v8 = vsel %vm429_vm0, %v1875_v58, %v3662_v42  ;;  %v930_v42 = vld [vmem:[#allocation2 + $0x1d0] sm:$0xff]  ;;  %v3893_v60 = vpack.i.bf16 %v962_v35, %v5100_v16  ;;  %v1818_v41 = vsel %vm429_vm0, %v1786_v5, %v3627_v23 }
 0x1af   : > { %3874 = vrot.lane.b32.xlu2 %v3873_v7, %s4045_s15  ;;  %2621 = vrot.lane.b32.xlu1 %v3963_v17, %s4044_s14  ;;  %v1938_v46 = vsel %vm1835_vm3, %v1906_v24, %v3671_v50  ;;  %v1939_v59 = vsel %vm1835_vm3, %v1907_v8, %v3672_v48  ;;  %v5765_v33 = vpack.i.bf16 %v4721_v47, %v4758_v49  ;;  %v850_v8 = vld [vmem:[#allocation2 + $0xb1] sm:$0xff]  ;;  %v3647_v35 = vunpack.i.h.bf16 %v5043_v26 }
 0x1b0   : > { %3879 = vrot.lane.b32.xlu0 %v4765_v55, %s4046_s20  ;;  %v1974_v32 = vpack.c.bf16 %v1939_v59, %v1938_v46  ;;  %v1785_v55 = vsel %vm599_vm1, %v728_v11, %v3616_v20  ;;  %v3888_v54 = vpack.i.bf16 %v930_v42, %v4785_v15  ;;  %v1851_v7 = vsel %vm1835_vm3, %v1818_v41, %v3637_v4  ;;  %v3964_v23 = vld [vmem:[%s4152_s8 + $0x10] sm:$0xff]  ;;  %v730_v42 = vld [vmem:[#allocation2 + $0x140] sm:$0xff] }
 0x1b1   : > { %v5092_v56 = vpop.permute.xlu2 %3704  ;;  %v5094_v37 = vpop.permute.xlu1 %3684  ;;  %v1817_v10 = vsel %vm429_vm0, %v1785_v55, %v3626_v1  ;;  %v3702_v46 = vunpack.i.h.bf16 %v5070_v36  ;;  %v3701_v59 = vunpack.i.l.bf16 %v5070_v36  ;;  %v3646_v5 = vunpack.i.l.bf16 %v5043_v26 }
 0x1b2   : > { %v5096_v6 = vpop.permute.xlu0 %3674  ;;  %2320 = vmatmul.bf16.gmra.mxu2 %v1974_v32  ;;  %v1850_v27 = vsel %vm1835_vm3, %v1817_v10, %v3636_v19  ;;  %v3903_v32 = vpack.i.bf16 %v4935_v51, %v4859_v45  ;;  %v5766_v45 = vpack.i.bf16 %v4783_v63, %v4825_v0  ;;  %v3657_v26 = vunpack.i.h.bf16 %v5041_v57 }
 0x1b3   : > { %v1985_v52 = vpack.c.bf16 %v1851_v7, %v1850_v27  ;;  %v1787_v4 = vsel %vm599_vm1, %v730_v42, %v3646_v5  ;;  %v3666_v27 = vunpack.i.l.bf16 %v4984_v34  ;;  %v3966_v5 = vld [vmem:[%s4152_s8 + $0x20] sm:$0xff] }
 0x1b7   : > { %3884 = vrot.lane.b32.xlu2 %v5765_v33, %s4044_s14  ;;  %3894 = vrot.lane.b32.xlu1 %v3893_v60, %s4046_s20  ;;  %v3656_v33 = vunpack.i.l.bf16 %v5041_v57  ;;  %v3965_v57 = vld [vmem:[%s4152_s8 + $0x18] sm:$0xff] }
 0x1b8   : > { %3889 = vrot.lane.b32.xlu0 %v3888_v54, %s4045_s15  ;;  %v1788_v54 = vsel %vm599_vm1, %v4616_v29, %v3647_v35  ;;  %v5767_v29 = vpack.i.bf16 %v4855_v2, %v4787_v40  ;;  %v853_v40 = vld [vmem:[#allocation2 + $0xe1] sm:$0xff]  ;;  %v3918_v2 = vpack.i.bf16 %v4997_v9, %v4926_v28  ;;  %v3677_v35 = vunpack.i.h.bf16 %v5096_v6 }
 0x1b9   : > { %v3690_v58 = vpop.permute.xlu1 %3689  ;;  %v5119_v48 = vpop.permute.xlu2 %3729  ;;  %v1819_v63 = vsel %vm429_vm0, %v1787_v4, %v3656_v33  ;;  %v1820_v0 = vsel %vm429_vm0, %v1788_v54, %v3657_v26  ;;  %v3686_v26 = vunpack.i.l.bf16 %v5094_v37  ;;  %v732_v33 = vld [vmem:[#allocation2 + $0x160] sm:$0xff] }
 0x1ba   : > { %v3680_v47 = vpop.permute.xlu0 %3679  ;;  %v3692_v49 = vunpack.i.h.bf16 %v3690_v58  ;;  %v3691_v50 = vunpack.i.l.bf16 %v3690_v58  ;;  %v3667_v58 = vunpack.i.h.bf16 %v4984_v34  ;;  %v1852_v7 = vsel %vm1835_vm3, %v1819_v63, %v3666_v27 }
 0x1bb   : > { %v3682_v15 = vunpack.i.h.bf16 %v3680_v47  ;;  %v3681_v24 = vunpack.i.l.bf16 %v3680_v47  ;;  %2251 = vmatmul.bf16.gmra.mxu1 %v1985_v52  ;;  %v852_v52 = vld [vmem:[#allocation2 + $0xd1] sm:$0xff]  ;;  %v1790_v54 = vsel %vm599_vm1, %v4663_v12, %v3677_v35  ;;  %v3696_v12 = vunpack.i.l.bf16 %v5039_v14 }
 0x1bc   : > { %v1853_v47 = vsel %vm1835_vm3, %v1820_v0, %v3667_v58  ;;  %v3697_v58 = vunpack.i.h.bf16 %v5039_v14 }
 0x1bd   : > { %v1877_v20 = vsel %vm599_vm1, %v851_v18, %v3682_v15  ;;  %v1876_v17 = vsel %vm599_vm1, %v850_v8, %v3681_v24  ;;  %v1988_v18 = vpack.c.bf16 %v1853_v47, %v1852_v7 }
 0x1be   : > { %v1908_v1 = vsel %vm429_vm0, %v1876_v17, %v3691_v50  ;;  %v1909_v11 = vsel %vm429_vm0, %v1877_v20, %v3692_v49  ;;  %v3732_v20 = vunpack.i.h.bf16 %v5119_v48  ;;  %v3731_v17 = vunpack.i.l.bf16 %v5119_v48 }
 0x1bf   : > { %2623 = vrot.lane.b32.xlu2 %v3964_v23, %s4044_s14  ;;  %3904 = vrot.lane.b32.xlu1 %v3903_v32, %s4045_s15  ;;  %v1940_v55 = vsel %vm1835_vm3, %v1908_v1, %v3701_v59  ;;  %v1941_v36 = vsel %vm1835_vm3, %v1909_v11, %v3702_v46  ;;  %v3325_v23 = vld [vmem:[%s5753_s5 + $0x28] sm:$0xff]  ;;  %v3676_v48 = vunpack.i.l.bf16 %v5096_v6 }
 0x1c0   : > { %3899 = vrot.lane.b32.xlu0 %v5766_v45, %s4044_s14  ;;  %v1977_v60 = vpack.c.bf16 %v1941_v36, %v1940_v55  ;;  %2785 = vmatpush.bf16.msrb.mxu3 %v3325_v23  ;;  %v3967_v23 = vld [vmem:[%s4152_s8 + $0x28] sm:$0xff] }
 0x1c1   : > { %v5140_v10 = vpop.permute.xlu1 %3719  ;;  %v5149_v19 = vpop.permute.xlu2 %3744  ;;  %v1789_v4 = vsel %vm599_vm1, %v732_v33, %v3676_v48 }
 0x1c2   : > { %v5142_v41 = vpop.permute.xlu0 %3709  ;;  %2325 = vmatmul.bf16.gmra.mxu2 %v1977_v60  ;;  %v3687_v60 = vunpack.i.h.bf16 %v5094_v37  ;;  %v3933_v37 = vpack.i.bf16 %v5053_v22, %v4988_v44 }
 0x1c4   : > { %v1822_v0 = vsel %vm429_vm0, %v1790_v54, %v3687_v60  ;;  %v970_v60 = vld [vmem:[#allocation2 + $0x271] sm:$0xff] }
 0x1c7   : > { %3909 = vrot.lane.b32.xlu2 %v4907_v43, %s4046_s20  ;;  %3914 = vrot.lane.b32.xlu1 %v5767_v29, %s4044_s14 }
 0x1c8   : > { %2625 = vrot.lane.b32.xlu0 %v3965_v57, %s4044_s14  ;;  %v5165_v24 = vpop.f32.mrf.mxu1  ;;  %v1855_v57 = vsel %vm1835_vm3, %v1822_v0, %v3697_v58  ;;  %v3969_v0 = vld [vmem:[%s4152_s8 + $0x30] sm:$0xff] }
 0x1c9   : > { %v3725_v49 = vpop.permute.xlu1 %3724  ;;  %v5171_v46 = vpop.permute.xlu2 %3759 }
 0x1ca   : > { %v3727_v50 = vunpack.i.h.bf16 %v3725_v49  ;;  %v3726_v15 = vunpack.i.l.bf16 %v3725_v49  ;;  %v3715_v43 = vpop.permute.xlu0 %3714 }
 0x1cb   : > { %v3717_v8 = vunpack.i.h.bf16 %v3715_v43  ;;  %v3716_v34 = vunpack.i.l.bf16 %v3715_v43  ;;  %2256 = vmatmul.bf16.gmra.mxu1 %v1988_v18  ;;  %v854_v43 = vld [vmem:[#allocation2 + $0xf1] sm:$0xff]  ;;  %v3762_v18 = vunpack.i.h.bf16 %v5171_v46 }
 0x1cd   : > { %v1879_v59 = vsel %vm599_vm1, %v853_v40, %v3717_v8  ;;  %v1878_v32 = vsel %vm599_vm1, %v852_v52, %v3716_v34  ;;  %v855_v8 = vld [vmem:[#allocation2 + $0x101] sm:$0xff]  ;;  %v3948_v34 = vpack.i.bf16 %v938_v30, %v5045_v13  ;;  %v3761_v52 = vunpack.i.l.bf16 %v5171_v46 }
 0x1ce   : > { %v1910_v1 = vsel %vm429_vm0, %v1878_v32, %v3726_v15  ;;  %v1911_v11 = vsel %vm429_vm0, %v1879_v59, %v3727_v50  ;;  %v3712_v59 = vunpack.i.h.bf16 %v5142_v41  ;;  %v3711_v32 = vunpack.i.l.bf16 %v5142_v41 }
 0x1cf   : > { %3919 = vrot.lane.b32.xlu2 %v3918_v2, %s4045_s15  ;;  %2627 = vrot.lane.b32.xlu1 %v3966_v5, %s4044_s14  ;;  %v1942_v55 = vsel %vm1835_vm3, %v1910_v1, %v3731_v17  ;;  %v1943_v36 = vsel %vm1835_vm3, %v1911_v11, %v3732_v20  ;;  %v5236_v1 = vpop.f32.mrf.mxu0  ;;  %v3722_v41 = vunpack.i.h.bf16 %v5140_v10  ;;  %v3721_v5 = vunpack.i.l.bf16 %v5140_v10  ;;  %v3323_v10 = vld [vmem:[%s5753_s5 + $0x18] sm:$0xff] }
 0x1d0   : > { %3924 = vrot.lane.b32.xlu0 %v4969_v21, %s4046_s20  ;;  %v1980_v42 = vpack.c.bf16 %v1943_v36, %v1942_v55  ;;  %v5198_v63 = vpop.f32.mrf.mxu1  ;;  %v1821_v21 = vsel %vm429_vm0, %v1789_v4, %v3686_v26  ;;  %v734_v55 = vld [vmem:[#allocation2 + $0x180] sm:$0xff]  ;;  %v1792_v38 = vsel %vm599_vm1, %v4728_v53, %v3712_v59  ;;  %v3707_v4 = vunpack.i.h.bf16 %v5092_v56 }
 0x1d1   : > { %v5189_v45 = vpop.permute.xlu1 %3739  ;;  %v5210_v27 = vpop.permute.xlu2 %3774  ;;  %v1854_v29 = vsel %vm1835_vm3, %v1821_v21, %v3696_v12  ;;  %v1791_v25 = vsel %vm599_vm1, %v734_v55, %v3711_v32  ;;  %v1824_v54 = vsel %vm429_vm0, %v1792_v38, %v3722_v41  ;;  %v3706_v53 = vunpack.i.l.bf16 %v5092_v56  ;;  %v3968_v21 = vld [vmem:[%s4152_s8 + $0x38] sm:$0xff]  ;;  %v3970_v59 = vld [vmem:[%s4152_s8 + $0x40] sm:$0xff]  ;;  %v3971_v32 = vld [vmem:[%s4152_s8 + $0x50] sm:$0xff] }
 0x1d2   : > { %v5193_v6 = vpop.permute.xlu0 %3734  ;;  %2330 = vmatmul.bf16.gmra.mxu2 %v1980_v42  ;;  %v1991_v15 = vpack.c.bf16 %v1855_v57, %v1854_v29  ;;  %v5248_v42 = vld [vmem:[#allocation2 + $0x261] sm:$0xff]  ;;  %v1823_v33 = vsel %vm429_vm0, %v1791_v25, %v3721_v5  ;;  %v1857_v58 = vsel %vm1835_vm3, %v1824_v54, %v3707_v4  ;;  %v3322_v25 = vld [vmem:[%s5753_s5 + $0x10] sm:$0xff]  ;;  %v3973_v54 = vld [vmem:[%s4152_s8 + $0x58] sm:$0xff] }
 0x1d3   : > { %v3953_v26 = vpack.i.bf16 %v970_v60, %v5248_v42  ;;  %v3974_v4 = vld [vmem:[%s4152_s8 + $0x68] sm:$0xff] }
 0x1d7   : > { %3929 = vrot.lane.b32.xlu2 %v3928_v31, %s4044_s14  ;;  %3939 = vrot.lane.b32.xlu1 %v5028_v39, %s4046_s20  ;;  %v3324_v39 = vld [vmem:[%s5753_s5 + $0x20] sm:$0xff]  ;;  %v5270_v29 = vpop.f32.mrf.mxu0 }
 0x1d8   : > { %3934 = vrot.lane.b32.xlu0 %v3933_v37, %s4045_s15  ;;  %v5217_v49 = vpop.f32.mrf.mxu1  ;;  %2786 = vmatpush.bf16.msrb.mxu3 %v3324_v39  ;;  %v1856_v37 = vsel %vm1835_vm3, %v1823_v33, %v3706_v53  ;;  %v3746_v33 = vunpack.i.l.bf16 %v5149_v19  ;;  %v3975_v53 = vld [vmem:[%s4152_s8 + $0x60] sm:$0xff] }
 0x1d9   : > { %v3755_v61 = vpop.permute.xlu1 %3754  ;;  %v3790_v35 = vpop.permute.xlu2 %3789 }
 0x1da   : > { %v3757_v31 = vunpack.i.h.bf16 %v3755_v61  ;;  %v3756_v7 = vunpack.i.l.bf16 %v3755_v61  ;;  %v3750_v47 = vpop.permute.xlu0 %3749 }
 0x1db   : > { %v3752_v50 = vunpack.i.h.bf16 %v3750_v47  ;;  %v3751_v14 = vunpack.i.l.bf16 %v3750_v47  ;;  %2261 = vmatmul.bf16.gmra.mxu1 %v1991_v15  ;;  %v3792_v15 = vunpack.i.h.bf16 %v3790_v35 }
 0x1dc   : > { %2787 = vmatpush.bf16.msrb.mxu3 %v3323_v10 }
 0x1dd   : > { %v1881_v40 = vsel %vm599_vm1, %v855_v8, %v3752_v50  ;;  %v1880_v2 = vsel %vm599_vm1, %v854_v43, %v3751_v14  ;;  %v1994_v50 = vpack.c.bf16 %v1857_v58, %v1856_v37  ;;  %v856_v14 = vld [vmem:[#allocation2 + $0x111] sm:$0xff]  ;;  %v3791_v43 = vunpack.i.l.bf16 %v3790_v35  ;;  %v5768_v8 = vld [vmem:[#allocation7_spill] sm:$0xff]  ;;  %v736_v35 = vld [vmem:[#allocation2 + $0x1a0] sm:$0xff] }
 0x1de   : > { %v1912_v20 = vsel %vm429_vm0, %v1880_v2, %v3756_v7  ;;  %v1913_v17 = vsel %vm429_vm0, %v1881_v40, %v3757_v31  ;;  %v3737_v40 = vunpack.i.h.bf16 %v5193_v6  ;;  %v3736_v2 = vunpack.i.l.bf16 %v5193_v6 }
 0x1df   : > { %2629 = vrot.lane.b32.xlu2 %v3967_v23, %s4044_s14  ;;  %3949 = vrot.lane.b32.xlu1 %v3948_v34, %s4045_s15  ;;  %v1944_v13 = vsel %vm1835_vm3, %v1912_v20, %v3761_v52  ;;  %v1945_v46 = vsel %vm1835_vm3, %v1913_v17, %v3762_v18  ;;  %v3741_v6 = vunpack.i.l.bf16 %v5189_v45  ;;  %v5302_v38 = vpop.f32.mrf.mxu0 }
 0x1e0   : > { %3944 = vrot.lane.b32.xlu0 %v3943_v3, %s4044_s14  ;;  %v1983_v11 = vpack.c.bf16 %v1945_v46, %v1944_v13  ;;  %v5253_v3 = vpop.f32.mrf.mxu1  ;;  %v3972_v13 = vld [vmem:[%s4152_s8 + $0x48] sm:$0xff]  ;;  %v1794_v5 = vsel %vm599_vm1, %v4794_v62, %v3737_v40  ;;  %v1793_v55 = vsel %vm599_vm1, %v736_v35, %v3736_v2  ;;  %2788 = vmatpush.bf16.msrb.mxu3 %v3322_v25  ;;  %v3747_v62 = vunpack.i.h.bf16 %v5149_v19 }
 0x1e1   : > { %v5242_v48 = vpop.permute.xlu1 %3769  ;;  %v5274_v56 = vpop.permute.xlu2 %3804  ;;  %v1825_v10 = vsel %vm429_vm0, %v1793_v55, %v3741_v6  ;;  %v5769_v55 = vld [vmem:[#allocation6_spill] sm:$0xff] }
 0x1e2   : > { %v5246_v36 = vpop.permute.xlu0 %3764  ;;  %2335 = vmatmul.bf16.gmra.mxu2 %v1983_v11  ;;  %v3742_v11 = vunpack.i.h.bf16 %v5189_v45  ;;  %v3772_v6 = vunpack.i.h.bf16 %v5242_v48  ;;  %v3771_v35 = vunpack.i.l.bf16 %v5242_v48 }
 0x1e3   : > { %v3766_v40 = vunpack.i.l.bf16 %v5246_v36 }
 0x1e7   : > { %3954 = vrot.lane.b32.xlu2 %v3953_v26, %s4046_s20  ;;  %2633 = vrot.lane.b32.xlu1 %v3968_v21, %s4044_s14  ;;  %v1826_v26 = vsel %vm429_vm0, %v1794_v5, %v3742_v11  ;;  %v1858_v21 = vsel %vm1835_vm3, %v1825_v10, %v3746_v33  ;;  %v5340_v11 = vld [vmem:[%s5752_s4] ss:$0 sm:$0xff] }
 0x1e8   : > { %2631 = vrot.lane.b32.xlu0 %v3969_v0, %s4044_s14  ;;  %v5272_v31 = vpop.f32.mrf.mxu1  ;;  %v1859_v0 = vsel %vm1835_vm3, %v1826_v26, %v3747_v62  ;;  %v3321_v26 = vld [vmem:[%s5753_s5 + $0x8] sm:$0xff]  ;;  %v2218_v62 = vadd.f32 %v5340_v11, %v5165_v24 }
 0x1e9   : > { %v3785_v12 = vpop.permute.xlu1 %3784  ;;  %v3820_v45 = vpop.permute.xlu2 %3819  ;;  %2789 = vmatpush.bf16.msrb.mxu3 %v3321_v26 }
 0x1ea   : > { %v3787_v57 = vunpack.i.h.bf16 %v3785_v12  ;;  %v3786_v61 = vunpack.i.l.bf16 %v3785_v12  ;;  %v3780_v30 = vpop.permute.xlu0 %3779 }
 0x1eb   : > { %v3782_v7 = vunpack.i.h.bf16 %v3780_v30  ;;  %v3781_v47 = vunpack.i.l.bf16 %v3780_v30  ;;  %2266 = vmatmul.bf16.gmra.mxu1 %v1994_v50  ;;  %v859_v50 = vld [vmem:[#allocation2 + $0x161] sm:$0xff] }
 0x1ed   : > { %v1883_v39 = vsel %vm599_vm1, %v5768_v8, %v3782_v7  ;;  %v1882_v34 = vsel %vm599_vm1, %v856_v14, %v3781_v47  ;;  %v1997_v7 = vpack.c.bf16 %v1859_v0, %v1858_v21  ;;  %v858_v47 = vld [vmem:[#allocation2 + $0x151] sm:$0xff]  ;;  %v3822_v14 = vunpack.i.h.bf16 %v3820_v45 }
 0x1ee   : > { %v1914_v18 = vsel %vm429_vm0, %v1882_v34, %v3786_v61  ;;  %v1915_v52 = vsel %vm429_vm0, %v1883_v39, %v3787_v57  ;;  %v5323_v39 = vpop.f32.mrf.mxu0 }
 0x1ef   : > { %v1946_v20 = vsel %vm1835_vm3, %v1914_v18, %v3791_v43  ;;  %v1947_v17 = vsel %vm1835_vm3, %v1915_v52, %v3792_v15  ;;  %2635 = vrot.lane.b32.xlu2 %v3970_v59, %s4044_s14  ;;  %2639 = vrot.lane.b32.xlu1 %v3971_v32, %s4044_s14  ;;  %v3821_v15 = vunpack.i.l.bf16 %v3820_v45  ;;  %v3767_v52 = vunpack.i.h.bf16 %v5246_v36  ;;  %v3976_v59 = vld [vmem:[%s4152_s8 + $0x70] sm:$0xff]  ;;  %v738_v32 = vld [vmem:[#allocation2 + $0x1e0] sm:$0xff] }
 0x1f0   : > { %v1986_v23 = vpack.c.bf16 %v1947_v17, %v1946_v20  ;;  %2637 = vrot.lane.b32.xlu0 %v3972_v13, %s4044_s14  ;;  %v5300_v60 = vpop.f32.mrf.mxu1  ;;  %v3977_v13 = vld [vmem:[%s4152_s8 + $0x78] sm:$0xff]  ;;  %v1795_v45 = vsel %vm599_vm1, %v738_v32, %v3766_v40 }
 0x1f1   : > { %v5291_v46 = vpop.permute.xlu1 %3799  ;;  %v5329_v2 = vpop.permute.xlu2 %3834  ;;  %v1796_v25 = vsel %vm599_vm1, %v5769_v55, %v3767_v52  ;;  %v1827_v33 = vsel %vm429_vm0, %v1795_v45, %v3771_v35 }
 0x1f2   : > { %v5295_v41 = vpop.permute.xlu0 %3794  ;;  %2340 = vmatmul.bf16.gmra.mxu2 %v1986_v23  ;;  %v1828_v48 = vsel %vm429_vm0, %v1796_v25, %v3772_v6  ;;  %v3802_v26 = vunpack.i.h.bf16 %v5291_v46 }
 0x1f6   : > { %v5362_v0 = vpop.f32.mrf.mxu0 }
 0x1f7   : > { %2641 = vrot.lane.b32.xlu2 %v3973_v54, %s4044_s14  ;;  %2645 = vrot.lane.b32.xlu1 %v3974_v4, %s4044_s14  ;;  %v3777_v4 = vunpack.i.h.bf16 %v5210_v27 }
 0x1f8   : > { %2643 = vrot.lane.b32.xlu0 %v3975_v53, %s4044_s14  ;;  %v5319_v61 = vpop.f32.mrf.mxu1  ;;  %v3776_v53 = vunpack.i.l.bf16 %v5210_v27  ;;  %v2220_v27 = vadd.f32 %v5340_v11, %v5198_v63  ;;  %v3320_v63 = vld [vmem:[%s5753_s5] sm:$0xff] }
 0x1f9   : > { %v3815_v37 = vpop.permute.xlu1 %3814  ;;  %2790 = vmatpush.bf16.msrb.mxu3 %v3320_v63 }
 0x1fa   : > { %v3817_v58 = vunpack.i.h.bf16 %v3815_v37  ;;  %v3816_v12 = vunpack.i.l.bf16 %v3815_v37  ;;  %v3810_v57 = vpop.permute.xlu0 %3809  ;;  %v1860_v37 = vsel %vm1835_vm3, %v1827_v33, %v3776_v53  ;;  %v740_v33 = vld [vmem:[#allocation2 + $0x200] sm:$0xff] }
 0x1fb   : > { %v3812_v19 = vunpack.i.h.bf16 %v3810_v57  ;;  %v3811_v30 = vunpack.i.l.bf16 %v3810_v57  ;;  %2271 = vmatmul.bf16.gmra.mxu1 %v1997_v7 }
 0x1fd   : > { %v1885_v43 = vsel %vm599_vm1, %v859_v50, %v3812_v19  ;;  %v1884_v8 = vsel %vm599_vm1, %v858_v47, %v3811_v30 }
 0x1fe   : > { %v1916_v34 = vsel %vm429_vm0, %v1884_v8, %v3816_v12  ;;  %v1917_v18 = vsel %vm429_vm0, %v1885_v43, %v3817_v58  ;;  %v1861_v58 = vsel %vm1835_vm3, %v1828_v48, %v3777_v4  ;;  %v3860_v12 = vpop.permute.xlu2 %3859  ;;  %v860_v43 = vld [vmem:[#allocation2 + $0x171] sm:$0xff]  ;;  %v861_v8 = vld [vmem:[#allocation2 + $0x181] sm:$0xff]  ;;  %v5385_v45 = vpop.f32.mrf.mxu0 }
 0x1ff   : > { %v1948_v20 = vsel %vm1835_vm3, %v1916_v34, %v3821_v15  ;;  %v1949_v17 = vsel %vm1835_vm3, %v1917_v18, %v3822_v14  ;;  %2647 = vrot.lane.b32.xlu2 %v3976_v59, %s4044_s14  ;;  %v2000_v15 = vpack.c.bf16 %v1861_v58, %v1860_v37  ;;  %v3862_v34 = vunpack.i.h.bf16 %v3860_v12 }
 0x200   : > { %v1989_v23 = vpack.c.bf16 %v1949_v17, %v1948_v20  ;;  %2649 = vrot.lane.b32.xlu0 %v3977_v13, %s4044_s14  ;;  %v5351_v10 = vpop.f32.mrf.mxu1  ;;  %v3861_v18 = vunpack.i.l.bf16 %v3860_v12  ;;  %v3797_v20 = vunpack.i.h.bf16 %v5295_v41  ;;  %v3796_v17 = vunpack.i.l.bf16 %v5295_v41  ;;  %s2980_s14 = scalar_lea.hbm %s5755_s7, %s3326_s22 }
 0x201   : > { %v5342_v36 = vpop.permute.xlu1 %3829  ;;  %v2223_v58 = vadd.f32 %v5340_v11, %v5217_v49  ;;  %s2983_s9 = sshll.u32 %s2980_s14, 4  ;;  %s2984_s9 = int_to_ptr.hbm [resolvable:$true] %s2983_s9 }
 0x202   : > { %v5346_v5 = vpop.permute.xlu0 %3824  ;;  %2345 = vmatmul.bf16.gmra.mxu2 %v1989_v23  ;;  %v1797_v4 = vsel %vm599_vm1, %v740_v33, %v3796_v17  ;;  %s3993_s13 = sshra.s32 %s2984_s9, 4  ;;  %s3994_s13 = int_to_ptr.hbm [resolvable:$true] %s3993_s13 }
 0x203   : > { %s3995_s16 = scalar_lea.hbm %s3994_s13, 128  ;;  %p4000_p0 = scmp.lt.s32.totalorder %s3994_s13, %s5755_s7 }
 0x204   : > { %p3996_p11 = scmp.ne.s32.totalorder %s3994_s13, %s3995_s16  ;;  %p4001_p1 = scmp.lt.s32.totalorder %s3999_s21, %s3995_s16 }
 0x205   : > { %v2306_v54 = vpop.f32.mrf.mxu2 }
 0x206   : > { %v2307_v21 = vadd.f32 %v2306_v54, %v2218_v62  ;;  %v3801_v62 = vunpack.i.l.bf16 %v5291_v46  ;;  %v1798_v54 = vsel %vm599_vm1, %v4935_v51, %v3797_v20  ;;  %v3807_v46 = vunpack.i.h.bf16 %v5274_v56  ;;  %p3997_p12 = pnand %p3996_p11, %p4126_p5  ;;  %p4002_p2 = por %p4001_p1, %p4000_p0 }
 0x208   : > { %v5366_v7 = vpop.f32.mrf.mxu1  ;;  %v2396_v47 = vadd.f32 %v5236_v1, %v2307_v21  ;;  %v5396_v21 = vpop.permute.xlu2 %3864  ;;  %p3998_p13 = pneg %p3997_p12 }
 0x209   : > { %v3850_v57 = vpop.permute.xlu1 %3849 }
 0x20a   : > { %v3852_v24 = vunpack.i.h.bf16 %v3850_v57  ;;  %v3851_v19 = vunpack.i.l.bf16 %v3850_v57  ;;  %v3840_v30 = vpop.permute.xlu0 %3839  ;;  %v2475_v23 = vmax.f32 %v2396_v47, 0.0  ;;  %v1829_v57 = vsel %vm429_vm0, %v1797_v4, %v3801_v62  ;;  %p4003_p3 = pnand %p4002_p2, %p3998_p13 }
 0x20b   : > { %v3842_v50 = vunpack.i.h.bf16 %v3840_v30  ;;  %v3841_v14 = vunpack.i.l.bf16 %v3840_v30  ;;  %2276 = vmatmul.bf16.gmra.mxu1 %v2000_v15 }
 0x20d   : > { %v1887_v52 = vsel %vm599_vm1, %v861_v8, %v3842_v50  ;;  %v1886_v40 = vsel %vm599_vm1, %v860_v43, %v3841_v14  ;;  %v2308_v1 = vpop.f32.mrf.mxu2 }
 0x20e   : > { %v1918_v59 = vsel %vm429_vm0, %v1886_v40, %v3851_v19  ;;  %v1919_v32 = vsel %vm429_vm0, %v1887_v52, %v3852_v24  ;;  %v2309_v13 = vadd.f32 %v2308_v1, %v2220_v27  ;;  %v1830_v24 = vsel %vm429_vm0, %v1798_v54, %v3802_v26 }
 0x20f   : > { %v1950_v6 = vsel %vm1835_vm3, %v1918_v59, %v3861_v18  ;;  %v1951_v35 = vsel %vm1835_vm3, %v1919_v32, %v3862_v34  ;;  %v3806_v19 = vunpack.i.l.bf16 %v5274_v56  ;;  %v1863_v27 = vsel %vm1835_vm3, %v1830_v24, %v3807_v46  ;;  %v5411_v56 = vpop.f32.mrf.mxu0 }
 0x210   : > { %v1992_v55 = vpack.c.bf16 %v1951_v35, %v1950_v6  ;;  %v2398_v25 = vadd.f32 %v5270_v29, %v2309_v13  ;;  %v5394_v53 = vpop.f32.mrf.mxu1  ;;  %v2507_v29 = vpack.c.bf16 %v2475_v23, %v2475_v23  ;;  %v2225_v40 = vadd.f32 %v5340_v11, %v5253_v3  ;;  %v3875_v20 = vpop.permute.xlu2 %3874  ;;  %v862_v6 = vld [vmem:[#allocation2 + $0x191] sm:$0xff]  ;;  %v863_v35 = vld [vmem:[#allocation2 + $0x1a1] sm:$0xff] }
 0x211   : > { %v5383_v41 = vpop.permute.xlu1 %3854  ;;  %v1862_v14 = vsel %vm1835_vm3, %v1829_v57, %v3806_v19  ;;  %v3827_v59 = vunpack.i.h.bf16 %v5346_v5  ;;  %v3826_v32 = vunpack.i.l.bf16 %v5346_v5  ;;  %v3832_v13 = vunpack.i.h.bf16 %v5342_v36 }
 0x212   : > { %v5389_v48 = vpop.permute.xlu0 %3844  ;;  %v2476_v37 = vmax.f32 %v2398_v25, 0.0  ;;  %2350 = vmatmul.bf16.gmra.mxu2 %v1992_v55  ;;  %v2571_v30 = vunpack.c.l.b16 %v2507_v29  ;;  %v2003_v52 = vpack.c.bf16 %v1863_v27, %v1862_v14  ;;  %v3831_v55 = vunpack.i.l.bf16 %v5342_v36 }
 0x213   : > { %v1800_v62 = vsel %vm599_vm1, %v4997_v9, %v3827_v59  ;;  %v1799_v5 = vsel %vm599_vm1, %v4926_v28, %v3826_v32  ;;  %v3877_v33 = vunpack.i.h.bf16 %v3875_v20  ;;  %v3876_v54 = vunpack.i.l.bf16 %v3875_v20 }
 0x214   : > { %v2508_v12 = vpack.c.bf16 %v2476_v37, %v2476_v37  ;;  %v2228_v9 = vadd.f32 %v5340_v11, %v5272_v31  ;;  %v3837_v19 = vunpack.i.h.bf16 %v5329_v2 }
 0x215   : > { %v2311_v51 = vpop.f32.mrf.mxu2 }
 0x216   : > { %v2572_v47 = vunpack.c.l.b16 %v2508_v12  ;;  %v2312_v50 = vadd.f32 %v2311_v51, %v2223_v58 }
 0x217   : > { %v5437_v27 = vpop.f32.mrf.mxu0 }
 0x218   : > { %v2603_v43 = vpack.c.b16 %v2572_v47, %v2571_v30  ;;  %v5406_v8 = vpop.f32.mrf.mxu1  ;;  %v2401_v34 = vadd.f32 %v5302_v38, %v2312_v50  ;;  %v1831_v30 = vsel %vm429_vm0, %v1799_v5, %v3831_v55  ;;  %v1832_v47 = vsel %vm429_vm0, %v1800_v62, %v3832_v13 }
 0x219   : > { %v3870_v15 = vpop.permute.xlu1 %3869 }
 0x21a   : > { %v2620_v49 = vpop.permute.xlu0 %2619  ;;  %v3872_v17 = vunpack.i.h.bf16 %v3870_v15  ;;  %v3871_v1 = vunpack.i.l.bf16 %v3870_v15  ;;  %v2477_v38 = vmax.f32 %v2401_v34, 0.0  ;;  %v3836_v15 = vunpack.i.l.bf16 %v5329_v2 }
 0x21b   : > { %v2653_v18 = vsel %vm599_vm1, %v2603_v43, %v2620_v49  ;;  %2281 = vmatmul.bf16.gmra.mxu1 %v2003_v52  ;;  %v3885_v43 = vpop.permute.xlu2 %3884  ;;  %v1865_v52 = vsel %vm1835_vm3, %v1832_v47, %v3837_v19 }
 0x21c   : > { %3261 = vmatmul.msk.bf16.vlgmr.msrb.gmra.mxu3 %vm1835_vm3, %v2653_v18  ;;  %v1889_v25 = vsel %vm599_vm1, %v863_v35, %v3872_v17  ;;  %v1888_v3 = vsel %vm599_vm1, %v862_v6, %v3871_v1  ;;  %v2509_v58 = vpack.c.bf16 %v2477_v38, %v2477_v38  ;;  %v1864_v18 = vsel %vm1835_vm3, %v1831_v30, %v3836_v15  ;;  %v864_v35 = vld [vmem:[#allocation2 + $0x1b1] sm:$0xff] }
 0x21d   : > { %v2313_v63 = vpop.f32.mrf.mxu2  ;;  %v1920_v57 = vsel %vm429_vm0, %v1888_v3, %v3876_v54  ;;  %v3887_v20 = vunpack.i.h.bf16 %v3885_v43  ;;  %v3886_v17 = vunpack.i.l.bf16 %v3885_v43  ;;  %v2006_v2 = vpack.c.bf16 %v1865_v52, %v1864_v18 }
 0x21e   : > { %v2314_v23 = vadd.f32 %v2313_v63, %v2225_v40  ;;  %v2573_v49 = vunpack.c.l.b16 %v2509_v58  ;;  %v2230_v6 = vadd.f32 %v5340_v11, %v5300_v60  ;;  %v3846_v3 = vunpack.i.l.bf16 %v5389_v48 }
 0x21f   : > { %v1891_v55 = vsel %vm599_vm1, %v5100_v16, %v3887_v20  ;;  %v3856_v58 = vunpack.i.l.bf16 %v5383_v41 }
 0x220   : > { %v2403_v26 = vadd.f32 %v5323_v39, %v2314_v23  ;;  %v5426_v37 = vpop.f32.mrf.mxu1  ;;  %v1921_v39 = vsel %vm429_vm0, %v1889_v25, %v3877_v33  ;;  %v1890_v25 = vsel %vm599_vm1, %v864_v35, %v3886_v17 }
 0x221   : > { %v2622_v4 = vpop.permute.xlu1 %2621 }
 0x222   : > { %v3880_v29 = vpop.permute.xlu0 %3879  ;;  %v2478_v36 = vmax.f32 %v2403_v26, 0.0 }
 0x223   : > { %v3882_v12 = vunpack.i.h.bf16 %v3880_v29  ;;  %v3881_v46 = vunpack.i.l.bf16 %v3880_v29  ;;  %v5456_v29 = vpop.f32.mrf.mxu0 }
 0x224   : > { %v2510_v24 = vpack.c.bf16 %v2478_v36, %v2478_v36  ;;  %v3857_v36 = vunpack.i.h.bf16 %v5383_v41 }
 0x225   : > { %v1952_v28 = vsel %vm1835_vm3, %v1920_v57, %v3881_v46  ;;  %v1953_v51 = vsel %vm1835_vm3, %v1921_v39, %v3882_v12  ;;  %v2316_v50 = vpop.f32.mrf.mxu2  ;;  %v1801_v12 = vsel %vm599_vm1, %v4988_v44, %v3846_v3 }
 0x226   : > { %v1995_v14 = vpack.c.bf16 %v1953_v51, %v1952_v28  ;;  %v2574_v31 = vunpack.c.l.b16 %v2510_v24  ;;  %v2317_v34 = vadd.f32 %v2316_v50, %v2228_v9  ;;  %v2624_v28 = vpop.permute.xlu2 %2623  ;;  %v1833_v41 = vsel %vm429_vm0, %v1801_v12, %v3856_v58 }
 0x227   : > { %v3867_v50 = vunpack.i.h.bf16 %v5396_v21 }
 0x228   : > { %2355 = vmatmul.bf16.gmra.mxu2 %v1995_v14  ;;  %v2604_v40 = vpack.c.b16 %v2574_v31, %v2573_v49  ;;  %v5442_v59 = vpop.f32.mrf.mxu1  ;;  %v2406_v32 = vadd.f32 %v5362_v0, %v2317_v34  ;;  %v3847_v0 = vunpack.i.h.bf16 %v5389_v48 }
 0x229   : > { %v3895_v38 = vpop.permute.xlu1 %3894 }
 0x22a   : > { %v3890_v1 = vpop.permute.xlu0 %3889  ;;  %v2656_v63 = vsel %vm599_vm1, %v2604_v40, %v2622_v4  ;;  %v2479_v62 = vmax.f32 %v2406_v32, 0.0  ;;  %v3897_v5 = vunpack.i.h.bf16 %v3895_v38  ;;  %v3896_v33 = vunpack.i.l.bf16 %v3895_v38  ;;  %v867_v38 = vld [vmem:[#allocation2 + $0x201] sm:$0xff] }
 0x22b   : > { %v3892_v23 = vunpack.i.h.bf16 %v3890_v1  ;;  %v3891_v13 = vunpack.i.l.bf16 %v3890_v1  ;;  %2286 = vmatmul.bf16.gmra.mxu1 %v2006_v2  ;;  %v1802_v48 = vsel %vm599_vm1, %v5053_v22, %v3847_v0  ;;  %v3866_v22 = vunpack.i.l.bf16 %v5396_v21  ;;  %v5477_v40 = vpop.f32.mrf.mxu0  ;;  %v866_v2 = vld [vmem:[#allocation2 + $0x1f1] sm:$0xff] }
 0x22c   : > { %3262 = vmatmul.msk.bf16.gmra.mxu3 %vm1835_vm3, %v2656_v63  ;;  %v2511_v57 = vpack.c.bf16 %v2479_v62, %v2479_v62  ;;  %v1834_v19 = vsel %vm429_vm0, %v1802_v48, %v3857_v36  ;;  %v2238_v48 = vadd.f32 %v5340_v11, %v5366_v7 }
 0x22d   : > { %v2318_v26 = vpop.f32.mrf.mxu2  ;;  %v1923_v4 = vsel %vm429_vm0, %v1891_v55, %v3892_v23  ;;  %v1922_v60 = vsel %vm429_vm0, %v1890_v25, %v3891_v13  ;;  %v1866_v49 = vsel %vm1835_vm3, %v1833_v41, %v3866_v22  ;;  %v5484_v23 = vpop.f32.mrf.mxu3  ;;  %v2235_v13 = vadd.f32 %v5340_v11, %v5351_v10  ;;  %v991_v41 = vld [vmem:[#allocation2 + $0x1a2] sm:$0xff] }
 0x22e   : > { %v2319_v54 = vadd.f32 %v2318_v26, %v2230_v6  ;;  %v1954_v9 = vsel %vm1835_vm3, %v1922_v60, %v3896_v33  ;;  %v1955_v24 = vsel %vm1835_vm3, %v1923_v4, %v3897_v5  ;;  %v2575_v14 = vunpack.c.l.b16 %v2511_v57 }
 0x22f   : > { %v1998_v47 = vpack.c.bf16 %v1955_v24, %v1954_v9 }
 0x230   : > { %v2408_v16 = vadd.f32 %v5385_v45, %v2319_v54  ;;  %v5465_v46 = vpop.f32.mrf.mxu1  ;;  %v2233_v45 = vadd.f32 %v5340_v11, %v5319_v61  ;;  %v1867_v61 = vsel %vm1835_vm3, %v1834_v19, %v3867_v50 }
 0x231   : > { %v3905_v31 = vpop.permute.xlu1 %3904  ;;  %v2009_v1 = vpack.c.bf16 %v1867_v61, %v1866_v49  ;;  %v868_v49 = vld [vmem:[#allocation2 + $0x211] sm:$0xff]  ;;  %v869_v61 = vld [vmem:[#allocation2 + $0x221] sm:$0xff] }
 0x232   : > { %v2480_v39 = vmax.f32 %v2408_v16, 0.0  ;;  %v3900_v44 = vpop.permute.xlu0 %3899  ;;  %v3907_v32 = vunpack.i.h.bf16 %v3905_v31  ;;  %v3906_v63 = vunpack.i.l.bf16 %v3905_v31 }
 0x233   : > { %v3902_v34 = vunpack.i.h.bf16 %v3900_v44  ;;  %v3901_v18 = vunpack.i.l.bf16 %v3900_v44  ;;  %v5497_v36 = vpop.f32.mrf.mxu0 }
 0x234   : > { %v2512_v51 = vpack.c.bf16 %v2480_v39, %v2480_v39 }
 0x235   : > { %v2321_v30 = vpop.f32.mrf.mxu2  ;;  %v1893_v6 = vsel %vm599_vm1, %v867_v38, %v3902_v34  ;;  %v1892_v35 = vsel %vm599_vm1, %v866_v2, %v3901_v18  ;;  %v5501_v9 = vpop.f32.mrf.mxu3 }
 0x236   : > { %v2576_v15 = vunpack.c.l.b16 %v2512_v51  ;;  %v2322_v43 = vadd.f32 %v2321_v30, %v2233_v45  ;;  %v1924_v3 = vsel %vm429_vm0, %v1892_v35, %v3906_v63  ;;  %v1925_v26 = vsel %vm429_vm0, %v1893_v6, %v3907_v32  ;;  %v992_v51 = vld [vmem:[#allocation2 + $0x1b2] sm:$0xff] }
 0x237   : > { %v1996_v50 = vpack.c.bf16 %v992_v51, %v991_v41  ;;  %v2245_v41 = vadd.f32 %v5340_v11, %v5426_v37  ;;  %v870_v51 = vld [vmem:[#allocation2 + $0x231] sm:$0xff] }
 0x238   : > { %2360 = vmatmul.bf16.gmra.mxu2 %v1998_v47  ;;  %v2605_v52 = vpack.c.b16 %v2576_v15, %v2575_v14  ;;  %v5479_v20 = vpop.f32.mrf.mxu1  ;;  %v2411_v17 = vadd.f32 %v5411_v56, %v2322_v43  ;;  %v3910_v56 = vpop.permute.xlu2 %3909  ;;  %v2240_v15 = vadd.f32 %v5340_v11, %v5394_v53 }
 0x239   : > { %v3912_v62 = vunpack.i.h.bf16 %v3910_v56  ;;  %v3911_v5 = vunpack.i.l.bf16 %v3910_v56  ;;  %v3915_v24 = vpop.permute.xlu1 %3914 }
 0x23a   : > { %v2659_v21 = vsel %vm599_vm1, %v2605_v52, %v2624_v28  ;;  %v2481_v25 = vmax.f32 %v2411_v17, 0.0  ;;  %v2626_v54 = vpop.permute.xlu0 %2625  ;;  %v3917_v19 = vunpack.i.h.bf16 %v3915_v24  ;;  %v3916_v44 = vunpack.i.l.bf16 %v3915_v24 }
 0x23b   : > { %2291 = vmatmul.bf16.gmra.mxu1 %v2009_v1  ;;  %v1956_v58 = vsel %vm1835_vm3, %v1924_v3, %v3911_v5  ;;  %v1957_v16 = vsel %vm1835_vm3, %v1925_v26, %v3912_v62  ;;  %v2243_v3 = vadd.f32 %v5340_v11, %v5406_v8 }
 0x23c   : > { %3263 = vmatmul.msk.bf16.gmra.mxu3 %vm1835_vm3, %v2659_v21  ;;  %v2513_v10 = vpack.c.bf16 %v2481_v25, %v2481_v25  ;;  %v2001_v39 = vpack.c.bf16 %v1957_v16, %v1956_v58  ;;  %v1895_v31 = vsel %vm599_vm1, %v869_v61, %v3917_v19  ;;  %v1894_v34 = vsel %vm599_vm1, %v868_v49, %v3916_v44 }
 0x23d   : > { %v2323_v55 = vpop.f32.mrf.mxu2  ;;  %v5513_v2 = vpop.f32.mrf.mxu3 }
 0x23e   : > { %v2324_v0 = vadd.f32 %v2323_v55, %v2235_v13 }
 0x240   : > { %v2413_v33 = vadd.f32 %v5437_v27, %v2324_v0  ;;  %v5493_v4 = vpop.f32.mrf.mxu1  ;;  %v2577_v27 = vunpack.c.l.b16 %v2513_v10  ;;  %v3920_v43 = vpop.permute.xlu2 %3919 }
 0x241   : > { %v3922_v32 = vunpack.i.h.bf16 %v3920_v43  ;;  %v3921_v63 = vunpack.i.l.bf16 %v3920_v43  ;;  %v2628_v38 = vpop.permute.xlu1 %2627 }
 0x242   : > { %v2482_v60 = vmax.f32 %v2413_v33, 0.0  ;;  %v3925_v14 = vpop.permute.xlu0 %3924 }
 0x243   : > { %v3927_v52 = vunpack.i.h.bf16 %v3925_v14  ;;  %v3926_v17 = vunpack.i.l.bf16 %v3925_v14  ;;  %v1926_v13 = vsel %vm429_vm0, %v1894_v34, %v3921_v63  ;;  %v1927_v6 = vsel %vm429_vm0, %v1895_v31, %v3922_v32 }
 0x244   : > { %v2514_v12 = vpack.c.bf16 %v2482_v60, %v2482_v60 }
 0x245   : > { %v2326_v57 = vpop.f32.mrf.mxu2  ;;  %v1958_v25 = vsel %vm1835_vm3, %v1926_v13, %v3926_v17  ;;  %v1959_v0 = vsel %vm1835_vm3, %v1927_v6, %v3927_v52 }
 0x246   : > { %v2578_v28 = vunpack.c.l.b16 %v2514_v12  ;;  %v2327_v45 = vadd.f32 %v2326_v57, %v2238_v48  ;;  %v2004_v5 = vpack.c.bf16 %v1959_v0, %v1958_v25  ;;  %v5524_v57 = vpop.f32.mrf.mxu3 }
 0x248   : > { %2365 = vmatmul.bf16.gmra.mxu2 %v2001_v39  ;;  %v2606_v22 = vpack.c.b16 %v2578_v28, %v2577_v27  ;;  %v5503_v30 = vpop.f32.mrf.mxu1  ;;  %v2416_v47 = vadd.f32 %v5456_v29, %v2327_v45  ;;  %v2422_v29 = vpop.f32.mrf.mxu0 }
 0x249   : > { %v3940_v24 = vpop.permute.xlu1 %3939 }
 0x24a   : > { %v2662_v7 = vsel %vm599_vm1, %v2606_v22, %v2626_v54  ;;  %v2483_v21 = vmax.f32 %v2416_v47, 0.0  ;;  %v3935_v58 = vpop.permute.xlu0 %3934  ;;  %v871_v22 = vld [vmem:[#allocation2 + $0x241] sm:$0xff] }
 0x24b   : > { %3231 = vmatmul.msk.bf16.vlgmr.msra.gmra.mxu1 %vm599_vm1, %v1996_v50  ;;  %v3937_v28 = vunpack.i.h.bf16 %v3935_v58  ;;  %v3936_v45 = vunpack.i.l.bf16 %v3935_v58  ;;  %v3941_v50 = vunpack.i.l.bf16 %v3940_v24 }
 0x24c   : > { %3264 = vmatmul.msk.bf16.gmra.mxu3 %vm1835_vm3, %v2662_v7  ;;  %v2515_v56 = vpack.c.bf16 %v2483_v21, %v2483_v21  ;;  %v3942_v7 = vunpack.i.h.bf16 %v3940_v24 }
 0x24d   : > { %v2328_v18 = vpop.f32.mrf.mxu2 }
 0x24e   : > { %v2329_v1 = vadd.f32 %v2328_v18, %v2240_v15  ;;  %v2579_v33 = vunpack.c.l.b16 %v2515_v56  ;;  %v5541_v21 = vpop.f32.mrf.mxu3 }
 0x250   : > { %v2418_v53 = vadd.f32 %v5477_v40, %v2329_v1  ;;  %v5518_v35 = vpop.f32.mrf.mxu1  ;;  %v3930_v40 = vpop.permute.xlu2 %3929  ;;  %v2248_v1 = vadd.f32 %v5340_v11, %v5442_v59  ;;  %v872_v59 = vld [vmem:[#allocation2 + $0x251] sm:$0xff] }
 0x251   : > { %v2425_v60 = vpop.f32.mrf.mxu0  ;;  %v3932_v48 = vunpack.i.h.bf16 %v3930_v40  ;;  %v3931_v12 = vunpack.i.l.bf16 %v3930_v40  ;;  %v3950_v56 = vpop.permute.xlu1 %3949 }
 0x252   : > { %v2484_v55 = vmax.f32 %v2418_v53, 0.0  ;;  %v3945_v63 = vpop.permute.xlu0 %3944  ;;  %v3951_v40 = vunpack.i.l.bf16 %v3950_v56 }
 0x253   : > { %v1897_v19 = vsel %vm599_vm1, %v871_v22, %v3932_v48  ;;  %v1896_v44 = vsel %vm599_vm1, %v870_v51, %v3931_v12  ;;  %v3946_v25 = vunpack.i.l.bf16 %v3945_v63 }
 0x254   : > { %v2516_v26 = vpack.c.bf16 %v2484_v55, %v2484_v55  ;;  %v1929_v15 = vsel %vm429_vm0, %v1897_v19, %v3937_v28  ;;  %v1928_v43 = vsel %vm429_vm0, %v1896_v44, %v3936_v45  ;;  %v3947_v55 = vunpack.i.h.bf16 %v3945_v63 }
 0x255   : > { %v2331_v62 = vpop.f32.mrf.mxu2  ;;  %v1960_v18 = vsel %vm1835_vm3, %v1928_v43, %v3941_v50  ;;  %v1961_v52 = vsel %vm1835_vm3, %v1929_v15, %v3942_v7  ;;  %v1898_v58 = vsel %vm599_vm1, %v872_v59, %v3946_v25  ;;  %v2253_v44 = vadd.f32 %v5340_v11, %v5479_v20 }
 0x256   : > { %v2580_v54 = vunpack.c.l.b16 %v2516_v26  ;;  %v2332_v10 = vadd.f32 %v2331_v62, %v2243_v3  ;;  %v5554_v12 = vpop.f32.mrf.mxu3  ;;  %v2255_v20 = vadd.f32 %v5340_v11, %v5493_v4 }
 0x258   : > { %2370 = vmatmul.bf16.gmra.mxu2 %v2004_v5  ;;  %v2607_v16 = vpack.c.b16 %v2580_v54, %v2579_v33  ;;  %v5526_v39 = vpop.f32.mrf.mxu1  ;;  %v2421_v27 = vadd.f32 %v5497_v36, %v2332_v10  ;;  %v2630_v17 = vpop.permute.xlu2 %2629  ;;  %v3952_v5 = vunpack.i.h.bf16 %v3950_v56  ;;  %v2250_v54 = vadd.f32 %v5340_v11, %v5465_v46 }
 0x259   : > { %v2427_v61 = vpop.f32.mrf.mxu0  ;;  %v1899_v10 = vsel %vm599_vm1, %v5248_v42, %v3947_v55  ;;  %v2258_v56 = vadd.f32 %v5340_v11, %v5503_v30  ;;  %v2634_v4 = vpop.permute.xlu1 %2633  ;;  %v2260_v30 = vadd.f32 %v5340_v11, %v5518_v35 }
 0x25a   : > { %v2665_v8 = vsel %vm599_vm1, %v2607_v16, %v2628_v38  ;;  %v2485_v36 = vmax.f32 %v2421_v27, 0.0  ;;  %v2007_v38 = vpack.c.bf16 %v1961_v52, %v1960_v18  ;;  %v1931_v24 = vsel %vm429_vm0, %v1899_v10, %v3952_v5 }
 0x25c   : > { %3265 = vmatmul.msk.bf16.gmra.mxu3 %vm1835_vm3, %v2665_v8  ;;  %v2517_v37 = vpack.c.bf16 %v2485_v36, %v2485_v36  ;;  %v1930_v8 = vsel %vm429_vm0, %v1898_v58, %v3951_v40 }
 0x25d   : > { %v2333_v47 = vpop.f32.mrf.mxu2 }
 0x25e   : > { %v2334_v14 = vadd.f32 %v2333_v47, %v2245_v41 }
 0x260   : > { %v2423_v49 = vadd.f32 %v2422_v29, %v2334_v14  ;;  %v5537_v31 = vpop.f32.mrf.mxu1  ;;  %v2581_v29 = vunpack.c.l.b16 %v2517_v37  ;;  %v3955_v16 = vpop.permute.xlu2 %3954 }
 0x261   : > { %v2430_v33 = vpop.f32.mrf.mxu0  ;;  %v3957_v28 = vunpack.i.h.bf16 %v3955_v16  ;;  %v3956_v45 = vunpack.i.l.bf16 %v3955_v16 }
 0x262   : > { %v2486_v34 = vmax.f32 %v2423_v49, 0.0  ;;  %v2632_v49 = vpop.permute.xlu0 %2631 }
 0x263   : > { %v1962_v42 = vsel %vm1835_vm3, %v1930_v8, %v3956_v45  ;;  %v1963_v19 = vsel %vm1835_vm3, %v1931_v24, %v3957_v28  ;;  %v2263_v28 = vadd.f32 %v5340_v11, %v5526_v39  ;;  %v2265_v39 = vadd.f32 %v5340_v11, %v5537_v31 }
 0x264   : > { %v2518_v32 = vpack.c.bf16 %v2486_v34, %v2486_v34  ;;  %v2010_v50 = vpack.c.bf16 %v1963_v19, %v1962_v42 }
 0x265   : > { %v2336_v53 = vpop.f32.mrf.mxu2 }
 0x266   : > { %v2582_v13 = vunpack.c.l.b16 %v2518_v32  ;;  %v2337_v6 = vadd.f32 %v2336_v53, %v2248_v1 }
 0x268   : > { %2375 = vmatmul.bf16.gmra.mxu2 %v2007_v38  ;;  %v2608_v0 = vpack.c.b16 %v2582_v13, %v2581_v29  ;;  %v5545_v3 = vpop.f32.mrf.mxu1  ;;  %v2426_v26 = vadd.f32 %v2425_v60, %v2337_v6  ;;  %v2636_v35 = vpop.permute.xlu2 %2635 }
 0x269   : > { %v2432_v43 = vpop.f32.mrf.mxu0 }
 0x26a   : > { %v2668_v62 = vsel %vm599_vm1, %v2608_v0, %v2630_v17  ;;  %v2487_v60 = vmax.f32 %v2426_v26, 0.0 }
 0x26c   : > { %3266 = vmatmul.msk.bf16.gmra.mxu3 %vm1835_vm3, %v2668_v62  ;;  %v2519_v46 = vpack.c.bf16 %v2487_v60, %v2487_v60 }
 0x26d   : > { %v2338_v48 = vpop.f32.mrf.mxu2 }
 0x26e   : > { %v2339_v27 = vadd.f32 %v2338_v48, %v2250_v54  ;;  %v2583_v36 = vunpack.c.l.b16 %v2519_v46 }
 0x270   : > { %v2428_v41 = vadd.f32 %v2427_v61, %v2339_v27  ;;  %v5558_v51 = vpop.f32.mrf.mxu1  ;;  %v5564_v61 = vpop.f32.mrf.mxu3 }
 0x271   : > { %v2435_v53 = vpop.f32.mrf.mxu0 }
 0x272   : > { %v2488_v22 = vmax.f32 %v2428_v41, 0.0 }
 0x274   : > { %v2520_v47 = vpack.c.bf16 %v2488_v22, %v2488_v22 }
 0x275   : > { %v2341_v7 = vpop.f32.mrf.mxu2 }
 0x276   : > { %v2584_v14 = vunpack.c.l.b16 %v2520_v47  ;;  %v2342_v15 = vadd.f32 %v2341_v7, %v2253_v44 }
 0x278   : > { %2380 = vmatmul.bf16.gmra.mxu2 %v2010_v50  ;;  %v2609_v37 = vpack.c.b16 %v2584_v14, %v2583_v36  ;;  %v5566_v34 = vpop.f32.mrf.mxu1  ;;  %v2431_v18 = vadd.f32 %v2430_v33, %v2342_v15  ;;  %v5572_v38 = vpop.f32.mrf.mxu3 }
 0x279   : > { %v2437_v54 = vpop.f32.mrf.mxu0 }
 0x27a   : > { %v2671_v52 = vsel %vm599_vm1, %v2609_v37, %v2632_v49  ;;  %v2489_v1 = vmax.f32 %v2431_v18, 0.0 }
 0x27c   : > { %3267 = vmatmul.msk.bf16.gmra.mxu3 %vm1835_vm3, %v2671_v52  ;;  %v2521_v13 = vpack.c.bf16 %v2489_v1, %v2489_v1  ;;  %v5601_v52 = vld [vmem:[%s5754_s6] ss:$0 sm:$0xff] }
 0x27d   : > { %v2343_v17 = vpop.f32.mrf.mxu2 }
 0x27e   : > { %v2344_v32 = vadd.f32 %v2343_v17, %v2255_v20  ;;  %v2585_v0 = vunpack.c.l.b16 %v2521_v13 }
 0x280   : > { %v2433_v63 = vadd.f32 %v2432_v43, %v2344_v32  ;;  %v5574_v29 = vpop.f32.mrf.mxu1  ;;  %v5582_v10 = vpop.f32.mrf.mxu3 }
 0x281   : > { %v2440_v41 = vpop.f32.mrf.mxu0 }
 0x282   : > { %v2490_v6 = vmax.f32 %v2433_v63, 0.0 }
 0x284   : > { %v2522_v55 = vpack.c.bf16 %v2490_v6, %v2490_v6 }
 0x285   : > { %v2346_v25 = vpop.f32.mrf.mxu2 }
 0x286   : > { %v2586_v26 = vunpack.c.l.b16 %v2522_v55  ;;  %v2347_v62 = vadd.f32 %v2346_v25, %v2258_v56  ;;  %v2638_v56 = vpop.permute.xlu0 %2637 }
 0x288   : > { %v2610_v5 = vpack.c.b16 %v2586_v26, %v2585_v0  ;;  %v5578_v40 = vpop.f32.mrf.mxu1  ;;  %v2436_v59 = vadd.f32 %v2435_v53, %v2347_v62  ;;  %v5590_v22 = vpop.f32.mrf.mxu3 }
 0x289   : > { %v2442_v37 = vpop.f32.mrf.mxu0 }
 0x28a   : > { %v2674_v33 = vsel %vm599_vm1, %v2610_v5, %v2634_v4  ;;  %v2491_v16 = vmax.f32 %v2436_v59, 0.0 }
 0x28c   : > { %3268 = vmatmul.msk.bf16.gmra.mxu3 %vm1835_vm3, %v2674_v33  ;;  %v2523_v8 = vpack.c.bf16 %v2491_v16, %v2491_v16 }
 0x28d   : > { %v2348_v58 = vpop.f32.mrf.mxu2 }
 0x28e   : > { %v2349_v48 = vadd.f32 %v2348_v58, %v2260_v30  ;;  %v2587_v42 = vunpack.c.l.b16 %v2523_v8  ;;  %v2273_v58 = vadd.f32 %v5340_v11, %v5566_v34 }
 0x290   : > { %v2438_v60 = vadd.f32 %v2437_v54, %v2349_v48  ;;  %v5586_v27 = vpop.f32.mrf.mxu1 }
 0x292   : > { %v2492_v24 = vmax.f32 %v2438_v60, 0.0 }
 0x294   : > { %v2524_v45 = vpack.c.bf16 %v2492_v24, %v2492_v24 }
 0x295   : > { %v2351_v46 = vpop.f32.mrf.mxu2 }
 0x296   : > { %v2588_v19 = vunpack.c.l.b16 %v2524_v45  ;;  %v2352_v44 = vadd.f32 %v2351_v46, %v2263_v28 }
 0x298   : > { %v2611_v47 = vpack.c.b16 %v2588_v19, %v2587_v42  ;;  %v5592_v7 = vpop.f32.mrf.mxu1  ;;  %v2441_v50 = vadd.f32 %v2440_v41, %v2352_v44  ;;  %v2275_v42 = vadd.f32 %v5340_v11, %v5574_v29 }
 0x29a   : > { %v2677_v36 = vsel %vm599_vm1, %v2611_v47, %v2636_v35  ;;  %v2493_v15 = vmax.f32 %v2441_v50, 0.0 }
 0x29c   : > { %3269 = vmatmul.msk.bf16.gmra.mxu3 %vm1835_vm3, %v2677_v36  ;;  %v2525_v17 = vpack.c.bf16 %v2493_v15, %v2493_v15  ;;  %v2268_v36 = vadd.f32 %v5340_v11, %v5545_v3  ;;  %v2270_v3 = vadd.f32 %v5340_v11, %v5558_v51 }
 0x29d   : > { %v2353_v14 = vpop.f32.mrf.mxu2 }
 0x29e   : > { %v2354_v43 = vadd.f32 %v2353_v14, %v2265_v39  ;;  %v2589_v63 = vunpack.c.l.b16 %v2525_v17 }
 0x29f   : > { %v2792_v49 = vpop.f32.mrf.mxu3 }
 0x2a0   : > { %v2443_v18 = vadd.f32 %v2442_v37, %v2354_v43  ;;  %v5603_v20 = vpop.f32.mrf.mxu1  ;;  %v2793_v31 = vadd.f32 %v5601_v52, %v2792_v49  ;;  %v2278_v43 = vadd.f32 %v5340_v11, %v5578_v40 }
 0x2a2   : > { %v2494_v1 = vmax.f32 %v2443_v18, 0.0  ;;  %v2872_v25 = vmax.f32 %v2793_v31, 0.0 }
 0x2a4   : > { %v2526_v32 = vpack.c.bf16 %v2494_v1, %v2494_v1 }
 0x2a6   : > { %v2590_v53 = vunpack.c.l.b16 %v2526_v32 }
 0x2a7   : > { %v2794_v13 = vpop.f32.mrf.mxu3 }
 0x2a8   : > { %v2795_v6 = vadd.f32 %v5601_v52, %v2794_v13  ;;  %v2612_v55 = vpack.c.b16 %v2590_v53, %v2589_v63  ;;  %v5610_v26 = vpop.f32.mrf.mxu1 }
 0x2aa   : > { %v2873_v0 = vmax.f32 %v2795_v6, 0.0  ;;  %v2680_v62 = vsel %vm599_vm1, %v2612_v55, %v2638_v56 }
 0x2ab   : > { %v2356_v4 = vpop.f32.mrf.mxu2 }
 0x2ac   : > { %v3330_v5 = vpack.c.bf16 %v2873_v0, %v2872_v25  ;;  %3270 = vmatmul.msk.bf16.gmra.mxu3 %vm1835_vm3, %v2680_v62  ;;  %v2357_v15 = vadd.f32 %v2356_v4, %v2268_v36  ;;  %v2280_v25 = vadd.f32 %v5340_v11, %v5586_v27  ;;  %v2283_v27 = vadd.f32 %v5340_v11, %v5592_v7  ;;  %v3978_v7 = vld [vmem:[%s5752_s4] ss:$0 sm:$0xff] }
 0x2ae   : > { %3331 = vst [vmem:[%s5614_s19] sm:$0xff] %v3330_v5  }
 0x2af   : > { %v2797_v59 = vpop.f32.mrf.mxu3 }
 0x2b0   : > { %v5617_v33 = vpop.f32.mrf.mxu1  ;;  %v2798_v30 = vadd.f32 %v5601_v52, %v2797_v59 }
 0x2b2   : > { %v2874_v28 = vmax.f32 %v2798_v30, 0.0 }
 0x2b3   : > { %v2358_v54 = vpop.f32.mrf.mxu2 }
 0x2b4   : > { %v2359_v6 = vadd.f32 %v2358_v54, %v2270_v3 }
 0x2b7   : > { %v2799_v48 = vpop.f32.mrf.mxu3 }
 0x2b8   : > { %v5622_v16 = vpop.f32.mrf.mxu1  ;;  %v2800_v60 = vadd.f32 %v5601_v52, %v2799_v48 }
 0x2ba   : > { %v2875_v45 = vmax.f32 %v2800_v60, 0.0 }
 0x2bb   : > { %v2361_v8 = vpop.f32.mrf.mxu2 }
 0x2bc   : > { %v2362_v24 = vadd.f32 %v2361_v8, %v2273_v58  ;;  %v3335_v41 = vpack.c.bf16 %v2875_v45, %v2874_v28  ;;  %v2640_v45 = vpop.permute.xlu1 %2639 }
 0x2be   : > { %v2451_v46 = vadd.f32 %v5484_v23, %v2362_v24  ;;  %3407 = vst [vmem:[%s5614_s19 + $0x8] sm:$0xff] %v3335_v41  }
 0x2bf   : > { %v2802_v44 = vpop.f32.mrf.mxu3 }
 0x2c0   : > { %v5629_v19 = vpop.f32.mrf.mxu1  ;;  %v2497_v35 = vmax.f32 %v2451_v46, 0.0  ;;  %v2803_v23 = vadd.f32 %v5601_v52, %v2802_v44 }
 0x2c2   : > { %v2529_v39 = vpack.c.bf16 %v2497_v35, %v2497_v35  ;;  %v2876_v63 = vmax.f32 %v2803_v23, 0.0  ;;  %v2285_v23 = vadd.f32 %v3978_v7, %v5603_v20 }
 0x2c3   : > { %v2363_v34 = vpop.f32.mrf.mxu2 }
 0x2c4   : > { %v2364_v47 = vadd.f32 %v2363_v34, %v2275_v42  ;;  %v2593_v1 = vunpack.c.l.b16 %v2529_v39 }
 0x2c6   : > { %v2453_v50 = vadd.f32 %v5501_v9, %v2364_v47 }
 0x2c7   : > { %v2804_v37 = vpop.f32.mrf.mxu3 }
 0x2c8   : > { %v2498_v14 = vmax.f32 %v2453_v50, 0.0  ;;  %v2445_v29 = vpop.f32.mrf.mxu1  ;;  %v2805_v18 = vadd.f32 %v5601_v52, %v2804_v37 }
 0x2c9   : > { %v2446_v31 = vadd.f32 %v2445_v29, %v2357_v15 }
 0x2ca   : > { %v2530_v49 = vpack.c.bf16 %v2498_v14, %v2498_v14  ;;  %v2877_v53 = vmax.f32 %v2805_v18, 0.0 }
 0x2cb   : > { %v2366_v17 = vpop.f32.mrf.mxu2  ;;  %v2495_v55 = vmax.f32 %v2446_v31, 0.0 }
 0x2cc   : > { %v2594_v9 = vunpack.c.l.b16 %v2530_v49  ;;  %v2367_v32 = vadd.f32 %v2366_v17, %v2278_v43  ;;  %v3340_v56 = vpack.c.bf16 %v2877_v53, %v2876_v63  ;;  %v2642_v17 = vpop.permute.xlu2 %2641 }
 0x2cd   : > { %v2527_v51 = vpack.c.bf16 %v2495_v55, %v2495_v55 }
 0x2ce   : > { %v2614_v13 = vpack.c.b16 %v2594_v9, %v2593_v1  ;;  %v2456_v40 = vadd.f32 %v5513_v2, %v2367_v32  ;;  %3408 = vst [vmem:[%s5614_s19 + $0x10] sm:$0xff] %v3340_v56  }
 0x2cf   : > { %v2807_v62 = vpop.f32.mrf.mxu3  ;;  %v2591_v24 = vunpack.c.l.b16 %v2527_v51  ;;  %v2644_v51 = vpop.permute.xlu0 %2643 }
 0x2d0   : > { %v2447_v0 = vpop.f32.mrf.mxu1  ;;  %v2499_v59 = vmax.f32 %v2456_v40, 0.0  ;;  %v2808_v28 = vadd.f32 %v5601_v52, %v2807_v62  ;;  %v2686_v63 = vsel %vm599_vm1, %v2614_v13, %v2642_v17 }
 0x2d1   : > { %v2448_v4 = vadd.f32 %v2447_v0, %v2359_v6 }
 0x2d2   : > { %v2531_v54 = vpack.c.bf16 %v2499_v59, %v2499_v59  ;;  %v2878_v36 = vmax.f32 %v2808_v28, 0.0 }
 0x2d3   : > { %v2368_v5 = vpop.f32.mrf.mxu2  ;;  %v2496_v58 = vmax.f32 %v2448_v4, 0.0 }
 0x2d4   : > { %v2369_v30 = vadd.f32 %v2368_v5, %v2280_v25  ;;  %v2595_v35 = vunpack.c.l.b16 %v2531_v54  ;;  %v2293_v54 = vadd.f32 %v3978_v7, %v5622_v16  ;;  %v2295_v16 = vadd.f32 %v3978_v7, %v5629_v19  ;;  %v2648_v17 = vpop.permute.xlu2 %2647 }
 0x2d5   : > { %v2528_v60 = vpack.c.bf16 %v2496_v58, %v2496_v58 }
 0x2d6   : > { %v2458_v48 = vadd.f32 %v5524_v57, %v2369_v30 }
 0x2d7   : > { %v2592_v2 = vunpack.c.l.b16 %v2528_v60  ;;  %v2809_v46 = vpop.f32.mrf.mxu3 }
 0x2d8   : > { %v2500_v8 = vmax.f32 %v2458_v48, 0.0  ;;  %v2810_v44 = vadd.f32 %v5601_v52, %v2809_v46 }
 0x2d9   : > { %v2613_v42 = vpack.c.b16 %v2592_v2, %v2591_v24 }
 0x2da   : > { %v2532_v41 = vpack.c.bf16 %v2500_v8, %v2500_v8  ;;  %v2879_v39 = vmax.f32 %v2810_v44, 0.0 }
 0x2db   : > { %v2371_v34 = vpop.f32.mrf.mxu2  ;;  %v2683_v50 = vsel %vm599_vm1, %v2613_v42, %v2640_v45 }
 0x2dc   : > { %v2596_v57 = vunpack.c.l.b16 %v2532_v41  ;;  %v2372_v47 = vadd.f32 %v2371_v34, %v2283_v27  ;;  %3271 = vmatmul.msk.bf16.gmra.mxu3 %vm1835_vm3, %v2683_v50  ;;  %v3345_v15 = vpack.c.bf16 %v2879_v39, %v2878_v36  ;;  %v2646_v36 = vpop.permute.xlu1 %2645 }
 0x2de   : > { %v2615_v14 = vpack.c.b16 %v2596_v57, %v2595_v35  ;;  %v2461_v11 = vadd.f32 %v5541_v21, %v2372_v47  ;;  %3409 = vst [vmem:[%s5614_s19 + $0x18] sm:$0xff] %v3345_v15   ;;  %v2288_v21 = vadd.f32 %v3978_v7, %v5610_v26  ;;  %v2290_v26 = vadd.f32 %v3978_v7, %v5617_v33 }
 0x2df   : > { %v2812_v43 = vpop.f32.mrf.mxu3 }
 0x2e0   : > { %v2501_v49 = vmax.f32 %v2461_v11, 0.0  ;;  %v2813_v32 = vadd.f32 %v5601_v52, %v2812_v43 }
 0x2e2   : > { %v2533_v1 = vpack.c.bf16 %v2501_v49, %v2501_v49  ;;  %v2880_v55 = vmax.f32 %v2813_v32, 0.0 }
 0x2e3   : > { %v2373_v29 = vpop.f32.mrf.mxu2 }
 0x2e4   : > { %v2374_v37 = vadd.f32 %v2373_v29, %v2285_v23  ;;  %v2597_v6 = vunpack.c.l.b16 %v2533_v1 }
 0x2e6   : > { %v2463_v18 = vadd.f32 %v5554_v12, %v2374_v37 }
 0x2e7   : > { %v2814_v31 = vpop.f32.mrf.mxu3 }
 0x2e8   : > { %v2502_v9 = vmax.f32 %v2463_v18, 0.0  ;;  %v2815_v20 = vadd.f32 %v5601_v52, %v2814_v31 }
 0x2ea   : > { %v2534_v3 = vpack.c.bf16 %v2502_v9, %v2502_v9  ;;  %v2881_v12 = vmax.f32 %v2815_v20, 0.0 }
 0x2eb   : > { %v2376_v53 = vpop.f32.mrf.mxu2 }
 0x2ec   : > { %v2598_v56 = vunpack.c.l.b16 %v2534_v3  ;;  %v2377_v40 = vadd.f32 %v2376_v53, %v2288_v21  ;;  %3272 = vmatmul.msk.bf16.gmra.mxu3 %vm1835_vm3, %v2686_v63  ;;  %v3350_v0 = vpack.c.bf16 %v2881_v12, %v2880_v55  ;;  %v2650_v53 = vpop.permute.xlu0 %2649 }
 0x2ee   : > { %v2616_v25 = vpack.c.b16 %v2598_v56, %v2597_v6  ;;  %v2466_v62 = vadd.f32 %v5564_v61, %v2377_v40  ;;  %3410 = vst [vmem:[%s5614_s19 + $0x20] sm:$0xff] %v3350_v0   ;;  %v2689_v61 = vsel %vm599_vm1, %v2615_v14, %v2644_v51 }
 0x2ef   : > { %v2817_v4 = vpop.f32.mrf.mxu3 }
 0x2f0   : > { %v2503_v13 = vmax.f32 %v2466_v62, 0.0  ;;  %v2818_v60 = vadd.f32 %v5601_v52, %v2817_v4  ;;  %v2692_v43 = vsel %vm599_vm1, %v2616_v25, %v2646_v36 }
 0x2f2   : > { %v2535_v58 = vpack.c.bf16 %v2503_v13, %v2503_v13  ;;  %v2882_v41 = vmax.f32 %v2818_v60, 0.0 }
 0x2f3   : > { %v2378_v5 = vpop.f32.mrf.mxu2 }
 0x2f4   : > { %v2379_v59 = vadd.f32 %v2378_v5, %v2290_v26  ;;  %v2599_v28 = vunpack.c.l.b16 %v2535_v58 }
 0x2f6   : > { %v2468_v30 = vadd.f32 %v5572_v38, %v2379_v59 }
 0x2f7   : > { %v2819_v24 = vpop.f32.mrf.mxu3 }
 0x2f8   : > { %v2504_v48 = vmax.f32 %v2468_v30, 0.0  ;;  %v2820_v33 = vadd.f32 %v5601_v52, %v2819_v24 }
 0x2fa   : > { %v2536_v8 = vpack.c.bf16 %v2504_v48, %v2504_v48  ;;  %v2883_v38 = vmax.f32 %v2820_v33, 0.0 }
 0x2fb   : > { %v2381_v2 = vpop.f32.mrf.mxu2 }
 0x2fc   : > { %v2600_v27 = vunpack.c.l.b16 %v2536_v8  ;;  %v2382_v45 = vadd.f32 %v2381_v2, %v2293_v54  ;;  %3273 = vmatmul.msk.bf16.gmra.mxu3 %vm1835_vm3, %v2689_v61  ;;  %v3355_v42 = vpack.c.bf16 %v2883_v38, %v2882_v41 }
 0x2fe   : > { %v2617_v46 = vpack.c.b16 %v2600_v27, %v2599_v28  ;;  %v2471_v44 = vadd.f32 %v5582_v10, %v2382_v45  ;;  %3411 = vst [vmem:[%s5614_s19 + $0x28] sm:$0xff] %v3355_v42  }
 0x2ff   : > { %v2822_v34 = vpop.f32.mrf.mxu3 }
 0x300   : > { %v2505_v57 = vmax.f32 %v2471_v44, 0.0  ;;  %v2823_v15 = vadd.f32 %v5601_v52, %v2822_v34  ;;  %v2695_v32 = vsel %vm599_vm1, %v2617_v46, %v2648_v17 }
 0x302   : > { %v2537_v39 = vpack.c.bf16 %v2505_v57, %v2505_v57  ;;  %v2884_v7 = vmax.f32 %v2823_v15, 0.0 }
 0x303   : > { %v2383_v35 = vpop.f32.mrf.mxu2 }
 0x304   : > { %v2384_v47 = vadd.f32 %v2383_v35, %v2295_v16  ;;  %v2601_v29 = vunpack.c.l.b16 %v2537_v39 }
 0x306   : > { %v2473_v50 = vadd.f32 %v5590_v22, %v2384_v47 }
 0x307   : > { %v2824_v23 = vpop.f32.mrf.mxu3 }
 0x308   : > { %v2506_v14 = vmax.f32 %v2473_v50, 0.0  ;;  %v2825_v10 = vadd.f32 %v5601_v52, %v2824_v23 }
 0x30a   : > { %v2538_v11 = vpack.c.bf16 %v2506_v14, %v2506_v14  ;;  %v2885_v49 = vmax.f32 %v2825_v10, 0.0 }
 0x30c   : > { %v2602_v19 = vunpack.c.l.b16 %v2538_v11  ;;  %3274 = vmatmul.msk.bf16.gmra.mxu3 %vm1835_vm3, %v2692_v43  ;;  %v3360_v37 = vpack.c.bf16 %v2885_v49, %v2884_v7 }
 0x30e   : > { %v2618_v22 = vpack.c.b16 %v2602_v19, %v2601_v29  ;;  %3412 = vst [vmem:[%s5614_s19 + $0x30] sm:$0xff] %v3360_v37  }
 0x30f   : > { %v2827_v18 = vpop.f32.mrf.mxu3 }
 0x310   : > { %v2828_v1 = vadd.f32 %v5601_v52, %v2827_v18  ;;  %v2698_v40 = vsel %vm599_vm1, %v2618_v22, %v2650_v53 }
 0x312   : > { %v2886_v3 = vmax.f32 %v2828_v1, 0.0 }
 0x317   : > { %v2829_v9 = vpop.f32.mrf.mxu3 }
 0x318   : > { %v2830_v21 = vadd.f32 %v5601_v52, %v2829_v9 }
 0x31a   : > { %v2887_v31 = vmax.f32 %v2830_v21, 0.0 }
 0x31c   : > { %3275 = vmatmul.msk.bf16.gmra.mxu3 %vm1835_vm3, %v2695_v32  ;;  %v3365_v63 = vpack.c.bf16 %v2887_v31, %v2886_v3 }
 0x31e   : > { %3413 = vst [vmem:[%s5614_s19 + $0x38] sm:$0xff] %v3365_v63  }
 0x31f   : > { %v2832_v20 = vpop.f32.mrf.mxu3 }
 0x320   : > { %v2833_v6 = vadd.f32 %v5601_v52, %v2832_v20 }
 0x322   : > { %v2888_v12 = vmax.f32 %v2833_v6, 0.0 }
 0x327   : > { %v2834_v56 = vpop.f32.mrf.mxu3 }
 0x328   : > { %v2835_v55 = vadd.f32 %v5601_v52, %v2834_v56 }
 0x32a   : > { %v2889_v25 = vmax.f32 %v2835_v55, 0.0 }
 0x32c   : > { %3276 = vmatmul.msk.bf16.gmra.mxu3 %vm1835_vm3, %v2698_v40  ;;  %v3370_v0 = vpack.c.bf16 %v2889_v25, %v2888_v12 }
 0x32e   : > { %3414 = vst [vmem:[%s5614_s19 + $0x40] sm:$0xff] %v3370_v0  }
 0x32f   : > { %v2837_v62 = vpop.f32.mrf.mxu3 }
 0x330   : > { %v2838_v26 = vadd.f32 %v5601_v52, %v2837_v62 }
 0x332   : > { %v2890_v13 = vmax.f32 %v2838_v26, 0.0 }
 0x337   : > { %v2839_v4 = vpop.f32.mrf.mxu3 }
 0x338   : > { %v2840_v5 = vadd.f32 %v5601_v52, %v2839_v4 }
 0x33a   : > { %v2891_v59 = vmax.f32 %v2840_v5, 0.0 }
 0x33c   : > { %v3375_v30 = vpack.c.bf16 %v2891_v59, %v2890_v13 }
 0x33e   : > { %3415 = vst [vmem:[%s5614_s19 + $0x48] sm:$0xff] %v3375_v30  }
 0x35f   : > { %v2842_v51 = vpop.f32.mrf.mxu3 }
 0x360   : > { %v2843_v58 = vadd.f32 %v5601_v52, %v2842_v51 }
 0x362   : > { %v2892_v54 = vmax.f32 %v2843_v58, 0.0 }
 0x367   : > { %v2844_v48 = vpop.f32.mrf.mxu3 }
 0x368   : > { %v2845_v60 = vadd.f32 %v5601_v52, %v2844_v48 }
 0x36a   : > { %v2893_v8 = vmax.f32 %v2845_v60, 0.0 }
 0x36c   : > { %v3380_v24 = vpack.c.bf16 %v2893_v8, %v2892_v54 }
 0x36e   : > { %3416 = vst [vmem:[%s5614_s19 + $0x50] sm:$0xff] %v3380_v24  }
 0x36f   : > { %v2847_v61 = vpop.f32.mrf.mxu3 }
 0x370   : > { %v2848_v33 = vadd.f32 %v5601_v52, %v2847_v61 }
 0x372   : > { %v2894_v27 = vmax.f32 %v2848_v33, 0.0 }
 0x377   : > { %v2849_v2 = vpop.f32.mrf.mxu3 }
 0x378   : > { %v2850_v28 = vadd.f32 %v5601_v52, %v2849_v2 }
 0x37a   : > { %v2895_v45 = vmax.f32 %v2850_v28, 0.0 }
 0x37c   : > { %v3385_v41 = vpack.c.bf16 %v2895_v45, %v2894_v27 }
 0x37e   : > { %3417 = vst [vmem:[%s5614_s19 + $0x58] sm:$0xff] %v3385_v41  }
 0x37f   : > { %v2852_v38 = vpop.f32.mrf.mxu3 }
 0x380   : > { %v2853_v46 = vadd.f32 %v5601_v52, %v2852_v38 }
 0x382   : > { %v2896_v16 = vmax.f32 %v2853_v46, 0.0 }
 0x387   : > { %v2854_v42 = vpop.f32.mrf.mxu3 }
 0x388   : > { %v2855_v44 = vadd.f32 %v5601_v52, %v2854_v42 }
 0x38a   : > { %v2897_v34 = vmax.f32 %v2855_v44, 0.0 }
 0x38c   : > { %v3390_v35 = vpack.c.bf16 %v2897_v34, %v2896_v16 }
 0x38e   : > { %3418 = vst [vmem:[%s5614_s19 + $0x60] sm:$0xff] %v3390_v35  }
 0x38f   : > { %v2857_v57 = vpop.f32.mrf.mxu3 }
 0x390   : > { %v2858_v47 = vadd.f32 %v5601_v52, %v2857_v57 }
 0x392   : > { %v2898_v39 = vmax.f32 %v2858_v47, 0.0 }
 0x397   : > { %v2859_v50 = vpop.f32.mrf.mxu3 }
 0x398   : > { %v2860_v36 = vadd.f32 %v5601_v52, %v2859_v50 }
 0x39a   : > { %v2899_v14 = vmax.f32 %v2860_v36, 0.0 }
 0x39c   : > { %v3395_v15 = vpack.c.bf16 %v2899_v14, %v2898_v39 }
 0x39e   : > { %3419 = vst [vmem:[%s5614_s19 + $0x68] sm:$0xff] %v3395_v15  }
 0x39f   : > { %v2862_v11 = vpop.f32.mrf.mxu3 }
 0x3a0   : > { %v2863_v23 = vadd.f32 %v5601_v52, %v2862_v11 }
 0x3a2   : > { %v2900_v29 = vmax.f32 %v2863_v23, 0.0 }
 0x3a7   : > { %v2864_v43 = vpop.f32.mrf.mxu3 }
 0x3a8   : > { %v2865_v10 = vadd.f32 %v5601_v52, %v2864_v43 }
 0x3aa   : > { %v2901_v19 = vmax.f32 %v2865_v10, 0.0 }
 0x3ac   : > { %v3400_v7 = vpack.c.bf16 %v2901_v19, %v2900_v29 }
 0x3ae   : > { %3420 = vst [vmem:[%s5614_s19 + $0x70] sm:$0xff] %v3400_v7  }
 0x3af   : > { %v2867_v49 = vpop.f32.mrf.mxu3 }
 0x3b0   : > { %v2868_v22 = vadd.f32 %v5601_v52, %v2867_v49 }
 0x3b2   : > { %v2902_v17 = vmax.f32 %v2868_v22, 0.0 }
 0x3b7   : > { %v2869_v37 = vpop.f32.mrf.mxu3 }
 0x3b8   : > { %v2870_v18 = vadd.f32 %v5601_v52, %v2869_v37 }
 0x3ba   : > { %v2903_v1 = vmax.f32 %v2870_v18, 0.0 }
 0x3bc   : > { %v3405_v9 = vpack.c.bf16 %v2903_v1, %v2902_v17 }
 0x3be   : > { %3421 = vst [vmem:[%s5614_s19 + $0x78] sm:$0xff] %v3405_v9  }
 0x3bf   : > { %4006 = shalt.err (!%p4003_p3)
}
 0x3c0   : > { %s4047_s17 = smov 4  }
 0x3c1   : > { %3434 = dma.vmem_to_hbm [thread:$0]  (%p4126_p5), %s2982_s29, 2048, %s2984_s9, %s2969_s28, %s4045_s15, %s4045_s15, %s4047_s17  }
 0x3c2 PF: > { %p3440_p4 = scmp.ge.s32.totalorder %s4041_s27, 2  ;;  %s2998_s19 = sand.u32 1, %s4029_s24  }
 0x3c3   : > { %s2999_s8 = scalar_lea.sflag [#allocation4], %s2998_s19 }
 0x3c4   : > { %p3437_p7 = pnand %p3440_p4, %p4130_p6 }
 0x3c6   : > { %p3438_p8 = pneg %p3437_p7 }
 0x3c8   : > { %4024 = dma.done.wait (%p3438_p8), %s2999_s8, 2048  }
 0x3c9   : > { %4026 = vsyncadd (%p3438_p8), %s2999_s8, 4294965248  ;;  %p17_p9 = scmp.ge.s32.totalorder %s4113_s30, 4   ;;  %s5770_s24 = smov %s4033_s25 }
 0x3ca   : > { %s5771_s25 = smov %s4037_s26  ;;  %s5772_s26 = smov %s4124_s10 }
 0x3cb   : > { %s5773_s27 = smov %s4113_s30  ;;  %19 = sbr.rel (!%p17_p9) target bundleno = 3 (0x3), region = 85 }
 0x3d0   :  { %3005 = vsyncpa [#allocation4], 1 }
 0x3d1   :  { %3007 = vsyncpa [#allocation4 + $0x1], 1 }

</bundles_post_ra>
